<compile_context>
chip_gen: v6e
topology: v6e:2x2x1
jax: 0.10.0
libtpu: 0.0.40
codegen_flags: <defaults>
</compile_context>

<pallas_src>
import functools

import jax
import jax.numpy as jnp
from jax.experimental import pallas as pl
from jax.experimental.pallas import tpu as pltpu


def _round_up(x, m):
    return (x + m - 1) // m * m


def _full_spec(shape):
    nd = len(shape)
    return pl.BlockSpec(shape, lambda *_: (0,) * nd)


# ---------------------------------------------------------------------------
# Fused Pallas kernel: input projection + bidirectional recurrence + Linear
# ---------------------------------------------------------------------------
def _bilstm_fused_kernel(x_ref, w_in_ref, b_in_ref,
                         whh_f_ref, whh_b_ref,
                         w_out_ref, b_out_ref,
                         out_ref,
                         gin, hcat,
                         *, T, Bp, Hp, mxu_dtype):
    G4 = 4 * Hp

    # ---- hoisted input projection: both directions, ONE matmul, written
    # straight into the scratch (no split / re-read / re-store round trip) ----
    gin[...] = (jnp.dot(x_ref[...], w_in_ref[...],
                        preferred_element_type=jnp.float32)
                + b_in_ref[...]).astype(gin.dtype)          # [T*Bp, 8*Hp]

    # Grid-invariant weights loaded once, reused across all unrolled steps.
    whh_f = whh_f_ref[...]
    whh_b = whh_b_ref[...]

    def cell(gates_in, h, c, whh):
        # Recurrent projection only; gate layout [i, f, g, o], each gate in its
        # own Hp-lane (128-aligned) block so the slices below are free.
        gates = gates_in.astype(jnp.float32) + jnp.dot(
            h.astype(mxu_dtype), whh, preferred_element_type=jnp.float32)
        i = jax.nn.sigmoid(gates[:, 0 * Hp:1 * Hp])
        f = jax.nn.sigmoid(gates[:, 1 * Hp:2 * Hp])
        g = jnp.tanh(gates[:, 2 * Hp:3 * Hp])
        o = jax.nn.sigmoid(gates[:, 3 * Hp:4 * Hp])
        c_new = f * c + i * g
        h_new = o * jnp.tanh(c_new)
        return h_new, c_new

    def rows(t):
        # Bp-row (multiple-of-8) aligned window for time index t.
        return pl.ds(pl.multiple_of(t * Bp, Bp), Bp)

    def step(t, carry):
        h_f, c_f, h_b, c_b = carry
        rf = rows(t)                  # forward consumes time t
        rb = rows(T - 1 - t)          # backward consumes time T-1-t
        h_f, c_f = cell(gin[rf, 0:G4], h_f, c_f, whh_f)
        h_b, c_b = cell(gin[rb, G4:2 * G4], h_b, c_b, whh_b)
        # One [T*Bp, 2*Hp] scratch: forward half / backward half, both lane
        # offsets 128-aligned, stored at the true time index.
        hcat[rf, 0:Hp] = h_f.astype(hcat.dtype)
        hcat[rb, Hp:2 * Hp] = h_b.astype(hcat.dtype)
        return h_f, c_f, h_b, c_b

    z = jnp.zeros((Bp, Hp), jnp.float32)
    jax.lax.fori_loop(0, T, step, (z, z, z, z),
                      unroll=(T if T <= 32 else 8))

    # ---- fused output Linear: ONE big [T*Bp, 2*Hp] x [2*Hp, Op] matmul, with a
    # lane-dense (Op = multiple of 128) output store ----
    out = (jnp.dot(hcat[...], w_out_ref[...],
                   preferred_element_type=jnp.float32)
           + b_out_ref[...])
    out_ref[...] = out.astype(out_ref.dtype)


# ---------------------------------------------------------------------------
# Wrapper: layout / padding / parameter packing, single pallas_call
# ---------------------------------------------------------------------------
def bidirectional_lstm(x, params, *, mxu_dtype=jnp.float32):
    """x: [B, T, input_size] (batch_first, like PyTorch). Returns [B, T, output_size].

    mxu_dtype=jnp.bfloat16 is the fast path on v5e/v6e/v7x (MXU-native); h/c state,
    gate nonlinearities and accumulation stay f32 regardless.
    """
    B, T, I = x.shape
    H = params["whh_f"].shape[1]          # weight_hh: [4H, H]
    O = params["w_lin"].shape[0]          # linear weight: [O, 2H]

    # Hp: lane-aligned hidden (per-gate block). NOTE: for production H >= 256 on
    # v6e/v7x, aligning to 256 fills one MXU K-pass per recurrent step.
    Hp = _round_up(H, 128)
    Bp = _round_up(B, 8)                  # sublane-aligned batch
    Op = _round_up(O, 128)                # lane-dense output store

    # time-major, batch padded, flattened: row = t*Bp + b
    # (padded batch rows carry bias-driven garbage state; they are stripped below
    #  and never feed any reduction.)
    x_tm = jnp.transpose(x, (1, 0, 2))                       # [T, B, I]
    x_tm = jnp.pad(x_tm, ((0, 0), (0, Bp - B), (0, 0)))      # [T, Bp, I]
    x2d = x_tm.reshape(T * Bp, I).astype(mxu_dtype)          # [T*Bp, I]

    def pad_gates_ih(w):      # [4H, I] -> [I, 4Hp], gate k at lanes [k*Hp, k*Hp+H)
        wt = w.T
        blocks = [jnp.pad(wt[:, k * H:(k + 1) * H], ((0, 0), (0, Hp - H)))
                  for k in range(4)]
        return jnp.concatenate(blocks, axis=1)

    def pad_gates_hh(w):      # [4H, H] -> [Hp, 4Hp] (zero-padded rows & lanes)
        wt = w.T
        blocks = [jnp.pad(wt[:, k * H:(k + 1) * H], ((0, Hp - H), (0, Hp - H)))
                  for k in range(4)]
        return jnp.concatenate(blocks, axis=1)

    def pad_gates_bias(b):    # [4H] -> [1, 4Hp]
        blocks = [jnp.pad(b[k * H:(k + 1) * H], (0, Hp - H)) for k in range(4)]
        return jnp.concatenate(blocks).reshape(1, 4 * Hp)

    # Combined input-projection weight for BOTH directions: [I, 8Hp]
    w_in = jnp.concatenate([pad_gates_ih(params["wih_f"]),
                            pad_gates_ih(params["wih_b"])], axis=1).astype(mxu_dtype)
    b_in = jnp.concatenate(
        [pad_gates_bias(params["bih_f"] + params["bhh_f"]),
         pad_gates_bias(params["bih_b"] + params["bhh_b"])], axis=1
    ).astype(jnp.float32)                                    # [1, 8Hp]

    whh_f = pad_gates_hh(params["whh_f"]).astype(mxu_dtype)  # [Hp, 4Hp]
    whh_b = pad_gates_hh(params["whh_b"]).astype(mxu_dtype)  # [Hp, 4Hp]

    # Stacked output Linear weight: rows [0:Hp) forward h, rows [Hp:2Hp) backward h;
    # columns padded to Op for a lane-dense output.
    w_lin = params["w_lin"]                                  # [O, 2H]
    wl_f = jnp.pad(w_lin[:, :H].T, ((0, Hp - H), (0, Op - O)))   # [Hp, Op]
    wl_b = jnp.pad(w_lin[:, H:].T, ((0, Hp - H), (0, Op - O)))   # [Hp, Op]
    w_out = jnp.concatenate([wl_f, wl_b], axis=0).astype(mxu_dtype)   # [2Hp, Op]
    b_out = jnp.pad(params["b_lin"], (0, Op - O)).reshape(1, Op).astype(jnp.float32)

    # Scratch dtype follows the MXU operand dtype (halves scratch VMEM for bf16);
    # h/c state and gate math stay f32 inside the kernel.
    sdt = jnp.dtype(mxu_dtype)

    kernel = functools.partial(_bilstm_fused_kernel,
                               T=T, Bp=Bp, Hp=Hp, mxu_dtype=mxu_dtype)

    operands = (x2d, w_in, b_in, whh_f, whh_b, w_out, b_out)

    # Explicit VMEM budget (scoped defaults are far below physical on all gens).
    scratch_bytes = (T * Bp) * (8 * Hp + 2 * Hp) * sdt.itemsize
    io_bytes = sum(int(a.size) * a.dtype.itemsize for a in operands) * 2
    io_bytes += (T * Bp) * Op * 4 * 2
    try:
        phys_vmem = int(pltpu.get_tpu_info().vmem_capacity_bytes)
    except Exception:
        phys_vmem = 64 * 1024 * 1024          # conservative (v7x per-TC)
    vmem_limit = int(min(phys_vmem,
                         max(32 * 1024 * 1024,
                             scratch_bytes + io_bytes + (4 << 20))))

    out2d = pl.pallas_call(
        kernel,
        out_shape=jax.ShapeDtypeStruct((T * Bp, Op), jnp.float32),
        in_specs=[_full_spec(a.shape) for a in operands],
        out_specs=_full_spec((T * Bp, Op)),
        scratch_shapes=[
            pltpu.VMEM((T * Bp, 8 * Hp), sdt),   # gin (both directions)
            pltpu.VMEM((T * Bp, 2 * Hp), sdt),   # hcat (fwd | bwd lane halves)
        ],
        compiler_params=pltpu.CompilerParams(vmem_limit_bytes=vmem_limit),
    )(*operands)

    # strip batch / output-lane padding, back to batch-first
    out = out2d.reshape(T, Bp, Op)[:, :B, :O]                # [T, B, O]
    return jnp.transpose(out, (1, 0, 2))                     # [B, T, O]


# ---------------------------------------------------------------------------
# Pure-JAX reference (for correctness check only)
# ---------------------------------------------------------------------------
def _lstm_ref_dir(x, wih, whh, bih, bhh):
    B, T, _ = x.shape
    H = whh.shape[1]

    def step(carry, xt):
        h, c = carry
        gates = xt @ wih.T + h @ whh.T + bih + bhh
        i = jax.nn.sigmoid(gates[:, 0 * H:1 * H])
        f = jax.nn.sigmoid(gates[:, 1 * H:2 * H])
        g = jnp.tanh(gates[:, 2 * H:3 * H])
        o = jax.nn.sigmoid(gates[:, 3 * H:4 * H])
        c = f * c + i * g
        h = o * jnp.tanh(c)
        return (h, c), h

    h0 = jnp.zeros((B, H), jnp.float32)
    c0 = jnp.zeros((B, H), jnp.float32)
    _, hs = jax.lax.scan(step, (h0, c0), jnp.transpose(x, (1, 0, 2)))
    return jnp.transpose(hs, (1, 0, 2))


def _ref_forward(x, p):
    h_f = _lstm_ref_dir(x, p["wih_f"], p["whh_f"], p["bih_f"], p["bhh_f"])
    h_b = _lstm_ref_dir(x[:, ::-1, :], p["wih_b"], p["whh_b"],
                        p["bih_b"], p["bhh_b"])[:, ::-1, :]
    rec = jnp.concatenate([h_f, h_b], axis=-1)
    return rec @ p["w_lin"].T + p["b_lin"]


# ---------------------------------------------------------------------------
if __name__ == "__main__":
    B, T, I, H, O = 2, 8, 16, 32, 16   # batch, num_steps, input_size, hidden_size, output_size

    key = jax.random.PRNGKey(0)
    keys = jax.random.split(key, 11)
    bound = float(1.0 / (H ** 0.5))    # PyTorch default LSTM/Linear init scale

    def u(k, shp):
        return jax.random.uniform(k, shp, jnp.float32, -bound, bound)

    params = {
        "wih_f": u(keys[0], (4 * H, I)),
        "whh_f": u(keys[1], (4 * H, H)),
        "bih_f": u(keys[2], (4 * H,)),
        "bhh_f": u(keys[3], (4 * H,)),
        "wih_b": u(keys[4], (4 * H, I)),
        "whh_b": u(keys[5], (4 * H, H)),
        "bih_b": u(keys[6], (4 * H,)),
        "bhh_b": u(keys[7], (4 * H,)),
        "w_lin": u(keys[8], (O, 2 * H)),
        "b_lin": u(keys[9], (O,)),
    }
    x = jax.random.normal(keys[10], (B, T, I), jnp.float32)

    ref = _ref_forward(x, params)

    # f32 MXU operands: matches the f32 reference tightly.
    out_f32 = jax.block_until_ready(bidirectional_lstm(x, params))
    assert out_f32.shape == (B, T, O), out_f32.shape
    err_f32 = float(jnp.max(jnp.abs(out_f32 - ref)))
    assert jnp.allclose(out_f32, ref, atol=5e-3, rtol=5e-3), f"f32 max abs err {err_f32}"

    # bf16 MXU operands + bf16 scratch (fast path on all generations);
    # h/c state + gate math stay f32.
    out_bf16 = jax.block_until_ready(
        bidirectional_lstm(x, params, mxu_dtype=jnp.bfloat16))
    err_bf16 = float(jnp.max(jnp.abs(out_bf16 - ref)))
    assert jnp.allclose(out_bf16, ref, atol=5e-2, rtol=5e-2), f"bf16 max abs err {err_bf16}"

    print("KERNEL_OK")
</pallas_src>

<mosaic_0001>
module attributes {stable_mosaic.version = 11 : i64} {
  func.func @_bilstm_fused_kernel(%arg0: memref<64x16xf32, #tpu.memory_space<vmem>>, %arg1: memref<16x1024xf32, #tpu.memory_space<vmem>>, %arg2: memref<1x1024xf32, #tpu.memory_space<vmem>>, %arg3: memref<128x512xf32, #tpu.memory_space<vmem>>, %arg4: memref<128x512xf32, #tpu.memory_space<vmem>>, %arg5: memref<256x128xf32, #tpu.memory_space<vmem>>, %arg6: memref<1x128xf32, #tpu.memory_space<vmem>>, %arg7: memref<64x128xf32, #tpu.memory_space<vmem>>, %arg8: memref<64x1024xf32, #tpu.memory_space<vmem>>, %arg9: memref<64x256xf32, #tpu.memory_space<vmem>>) attributes {dimension_semantics = [], scalar_prefetch = 0 : i64, scratch_operands = 2 : i64, tpu.core_type = #tpu.core_type<tc>} {
    %c0 = arith.constant 0 : index
    %c0_0 = arith.constant 0 : index
    %0 = vector.load %arg0[%c0, %c0_0] : memref<64x16xf32, #tpu.memory_space<vmem>>, vector<64x16xf32>
    %c0_1 = arith.constant 0 : index
    %c0_2 = arith.constant 0 : index
    %1 = vector.load %arg1[%c0_1, %c0_2] : memref<16x1024xf32, #tpu.memory_space<vmem>>, vector<16x1024xf32>
    %cst = arith.constant dense<0.000000e+00> : vector<64x1024xf32>
    %2 = tpu.matmul %0, %1, %cst {dimension_numbers = #tpu.dot_dimension_numbers<[1], [0], [0], [1], [0, 0, 1, 1], [], []>} : vector<64x16xf32>, vector<16x1024xf32>, vector<64x1024xf32> -> vector<64x1024xf32>
    %c0_3 = arith.constant 0 : index
    %c0_4 = arith.constant 0 : index
    %3 = vector.load %arg2[%c0_3, %c0_4] : memref<1x1024xf32, #tpu.memory_space<vmem>>, vector<1x1024xf32>
    %4 = vector.broadcast %3 : vector<1x1024xf32> to vector<64x1024xf32>
    %5 = arith.addf %2, %4 : vector<64x1024xf32>
    %c0_5 = arith.constant 0 : index
    %c0_6 = arith.constant 0 : index
    %6 = vector.load %arg8[%c0_5, %c0_6] : memref<64x1024xf32, #tpu.memory_space<vmem>>, vector<64x1024xf32>
    tpu.vector_store %arg8[%c0_5, %c0_6], %5 {strides = array<i32>} : memref<64x1024xf32, #tpu.memory_space<vmem>>, vector<64x1024xf32>,
    %c0_7 = arith.constant 0 : index
    %c0_8 = arith.constant 0 : index
    %7 = vector.load %arg3[%c0_7, %c0_8] : memref<128x512xf32, #tpu.memory_space<vmem>>, vector<128x512xf32>
    %c0_9 = arith.constant 0 : index
    %c0_10 = arith.constant 0 : index
    %8 = vector.load %arg4[%c0_9, %c0_10] : memref<128x512xf32, #tpu.memory_space<vmem>>, vector<128x512xf32>
    %cst_11 = arith.constant 0.000000e+00 : f32
    %9 = vector.broadcast %cst_11 : f32 to vector<8x128xf32>
    %c0_i32 = arith.constant 0 : i32
    %c8_i32 = arith.constant 8 : i32
    %10 = arith.muli %c0_i32, %c8_i32 : i32
    %11 = tpu.assume_multiple %10, 8 : i32
    %c7_i32 = arith.constant 7 : i32
    %12 = arith.subi %c7_i32, %c0_i32 : i32
    %c8_i32_12 = arith.constant 8 : i32
    %13 = arith.muli %12, %c8_i32_12 : i32
    %14 = tpu.assume_multiple %13, 8 : i32
    %15 = arith.index_cast %11 : i32 to index
    %c0_13 = arith.constant 0 : index
    %16 = vector.load %arg8[%15, %c0_13] : memref<64x1024xf32, #tpu.memory_space<vmem>>, vector<8x512xf32>
    %cst_14 = arith.constant dense<0.000000e+00> : vector<8x512xf32>
    %17 = tpu.matmul %9, %7, %cst_14 {dimension_numbers = #tpu.dot_dimension_numbers<[1], [0], [0], [1], [0, 0, 1, 1], [], []>} : vector<8x128xf32>, vector<128x512xf32>, vector<8x512xf32> -> vector<8x512xf32>
    %18 = arith.addf %16, %17 : vector<8x512xf32>
    %19 = vector.extract_strided_slice %18 {offsets = [0, 0], sizes = [8, 128], strides = [1, 1]} : vector<8x512xf32> to vector<8x128xf32>
    %20 = arith.negf %19 : vector<8x128xf32>
    %21 = math.exp %20 : vector<8x128xf32>
    %cst_15 = arith.constant 1.000000e+00 : f32
    %22 = vector.broadcast %cst_15 : f32 to vector<8x128xf32>
    %23 = arith.addf %22, %21 : vector<8x128xf32>
    %24 = arith.divf %22, %23 : vector<8x128xf32>
    %25 = vector.extract_strided_slice %18 {offsets = [0, 128], sizes = [8, 128], strides = [1, 1]} : vector<8x512xf32> to vector<8x128xf32>
    %26 = arith.negf %25 : vector<8x128xf32>
    %27 = math.exp %26 : vector<8x128xf32>
    %cst_16 = arith.constant 1.000000e+00 : f32
    %28 = vector.broadcast %cst_16 : f32 to vector<8x128xf32>
    %29 = arith.addf %28, %27 : vector<8x128xf32>
    %30 = arith.divf %28, %29 : vector<8x128xf32>
    %31 = vector.extract_strided_slice %18 {offsets = [0, 256], sizes = [8, 128], strides = [1, 1]} : vector<8x512xf32> to vector<8x128xf32>
    %32 = math.tanh %31 : vector<8x128xf32>
    %33 = vector.extract_strided_slice %18 {offsets = [0, 384], sizes = [8, 128], strides = [1, 1]} : vector<8x512xf32> to vector<8x128xf32>
    %34 = arith.negf %33 : vector<8x128xf32>
    %35 = math.exp %34 : vector<8x128xf32>
    %cst_17 = arith.constant 1.000000e+00 : f32
    %36 = vector.broadcast %cst_17 : f32 to vector<8x128xf32>
    %37 = arith.addf %36, %35 : vector<8x128xf32>
    %38 = arith.divf %36, %37 : vector<8x128xf32>
    %39 = arith.mulf %30, %9 : vector<8x128xf32>
    %40 = arith.mulf %24, %32 : vector<8x128xf32>
    %41 = arith.addf %39, %40 : vector<8x128xf32>
    %42 = math.tanh %41 : vector<8x128xf32>
    %43 = arith.mulf %38, %42 : vector<8x128xf32>
    %44 = arith.index_cast %14 : i32 to index
    %c512 = arith.constant 512 : index
    %45 = vector.load %arg8[%44, %c512] : memref<64x1024xf32, #tpu.memory_space<vmem>>, vector<8x512xf32>
    %cst_18 = arith.constant dense<0.000000e+00> : vector<8x512xf32>
    %46 = tpu.matmul %9, %8, %cst_18 {dimension_numbers = #tpu.dot_dimension_numbers<[1], [0], [0], [1], [0, 0, 1, 1], [], []>} : vector<8x128xf32>, vector<128x512xf32>, vector<8x512xf32> -> vector<8x512xf32>
    %47 = arith.addf %45, %46 : vector<8x512xf32>
    %48 = vector.extract_strided_slice %47 {offsets = [0, 0], sizes = [8, 128], strides = [1, 1]} : vector<8x512xf32> to vector<8x128xf32>
    %49 = arith.negf %48 : vector<8x128xf32>
    %50 = math.exp %49 : vector<8x128xf32>
    %cst_19 = arith.constant 1.000000e+00 : f32
    %51 = vector.broadcast %cst_19 : f32 to vector<8x128xf32>
    %52 = arith.addf %51, %50 : vector<8x128xf32>
    %53 = arith.divf %51, %52 : vector<8x128xf32>
    %54 = vector.extract_strided_slice %47 {offsets = [0, 128], sizes = [8, 128], strides = [1, 1]} : vector<8x512xf32> to vector<8x128xf32>
    %55 = arith.negf %54 : vector<8x128xf32>
    %56 = math.exp %55 : vector<8x128xf32>
    %cst_20 = arith.constant 1.000000e+00 : f32
    %57 = vector.broadcast %cst_20 : f32 to vector<8x128xf32>
    %58 = arith.addf %57, %56 : vector<8x128xf32>
    %59 = arith.divf %57, %58 : vector<8x128xf32>
    %60 = vector.extract_strided_slice %47 {offsets = [0, 256], sizes = [8, 128], strides = [1, 1]} : vector<8x512xf32> to vector<8x128xf32>
    %61 = math.tanh %60 : vector<8x128xf32>
    %62 = vector.extract_strided_slice %47 {offsets = [0, 384], sizes = [8, 128], strides = [1, 1]} : vector<8x512xf32> to vector<8x128xf32>
    %63 = arith.negf %62 : vector<8x128xf32>
    %64 = math.exp %63 : vector<8x128xf32>
    %cst_21 = arith.constant 1.000000e+00 : f32
    %65 = vector.broadcast %cst_21 : f32 to vector<8x128xf32>
    %66 = arith.addf %65, %64 : vector<8x128xf32>
    %67 = arith.divf %65, %66 : vector<8x128xf32>
    %68 = arith.mulf %59, %9 : vector<8x128xf32>
    %69 = arith.mulf %53, %61 : vector<8x128xf32>
    %70 = arith.addf %68, %69 : vector<8x128xf32>
    %71 = math.tanh %70 : vector<8x128xf32>
    %72 = arith.mulf %67, %71 : vector<8x128xf32>
    %73 = arith.index_cast %11 : i32 to index
    %c0_22 = arith.constant 0 : index
    %74 = vector.load %arg9[%73, %c0_22] : memref<64x256xf32, #tpu.memory_space<vmem>>, vector<8x128xf32>
    tpu.vector_store %arg9[%73, %c0_22], %43 {strides = array<i32>} : memref<64x256xf32, #tpu.memory_space<vmem>>, vector<8x128xf32>,
    %75 = arith.index_cast %14 : i32 to index
    %c128 = arith.constant 128 : index
    %76 = vector.load %arg9[%75, %c128] : memref<64x256xf32, #tpu.memory_space<vmem>>, vector<8x128xf32>
    tpu.vector_store %arg9[%75, %c128], %72 {strides = array<i32>} : memref<64x256xf32, #tpu.memory_space<vmem>>, vector<8x128xf32>,
    %c1_i32 = arith.constant 1 : i32
    %c8_i32_23 = arith.constant 8 : i32
    %77 = arith.muli %c1_i32, %c8_i32_23 : i32
    %78 = tpu.assume_multiple %77, 8 : i32
    %c7_i32_24 = arith.constant 7 : i32
    %79 = arith.subi %c7_i32_24, %c1_i32 : i32
    %c8_i32_25 = arith.constant 8 : i32
    %80 = arith.muli %79, %c8_i32_25 : i32
    %81 = tpu.assume_multiple %80, 8 : i32
    %82 = arith.index_cast %78 : i32 to index
    %c0_26 = arith.constant 0 : index
    %83 = vector.load %arg8[%82, %c0_26] : memref<64x1024xf32, #tpu.memory_space<vmem>>, vector<8x512xf32>
    %cst_27 = arith.constant dense<0.000000e+00> : vector<8x512xf32>
    %84 = tpu.matmul %43, %7, %cst_27 {dimension_numbers = #tpu.dot_dimension_numbers<[1], [0], [0], [1], [0, 0, 1, 1], [], []>} : vector<8x128xf32>, vector<128x512xf32>, vector<8x512xf32> -> vector<8x512xf32>
    %85 = arith.addf %83, %84 : vector<8x512xf32>
    %86 = vector.extract_strided_slice %85 {offsets = [0, 0], sizes = [8, 128], strides = [1, 1]} : vector<8x512xf32> to vector<8x128xf32>
    %87 = arith.negf %86 : vector<8x128xf32>
    %88 = math.exp %87 : vector<8x128xf32>
    %cst_28 = arith.constant 1.000000e+00 : f32
    %89 = vector.broadcast %cst_28 : f32 to vector<8x128xf32>
    %90 = arith.addf %89, %88 : vector<8x128xf32>
    %91 = arith.divf %89, %90 : vector<8x128xf32>
    %92 = vector.extract_strided_slice %85 {offsets = [0, 128], sizes = [8, 128], strides = [1, 1]} : vector<8x512xf32> to vector<8x128xf32>
    %93 = arith.negf %92 : vector<8x128xf32>
    %94 = math.exp %93 : vector<8x128xf32>
    %cst_29 = arith.constant 1.000000e+00 : f32
    %95 = vector.broadcast %cst_29 : f32 to vector<8x128xf32>
    %96 = arith.addf %95, %94 : vector<8x128xf32>
    %97 = arith.divf %95, %96 : vector<8x128xf32>
    %98 = vector.extract_strided_slice %85 {offsets = [0, 256], sizes = [8, 128], strides = [1, 1]} : vector<8x512xf32> to vector<8x128xf32>
    %99 = math.tanh %98 : vector<8x128xf32>
    %100 = vector.extract_strided_slice %85 {offsets = [0, 384], sizes = [8, 128], strides = [1, 1]} : vector<8x512xf32> to vector<8x128xf32>
    %101 = arith.negf %100 : vector<8x128xf32>
    %102 = math.exp %101 : vector<8x128xf32>
    %cst_30 = arith.constant 1.000000e+00 : f32
    %103 = vector.broadcast %cst_30 : f32 to vector<8x128xf32>
    %104 = arith.addf %103, %102 : vector<8x128xf32>
    %105 = arith.divf %103, %104 : vector<8x128xf32>
    %106 = arith.mulf %97, %41 : vector<8x128xf32>
    %107 = arith.mulf %91, %99 : vector<8x128xf32>
    %108 = arith.addf %106, %107 : vector<8x128xf32>
    %109 = math.tanh %108 : vector<8x128xf32>
    %110 = arith.mulf %105, %109 : vector<8x128xf32>
    %111 = arith.index_cast %81 : i32 to index
    %c512_31 = arith.constant 512 : index
    %112 = vector.load %arg8[%111, %c512_31] : memref<64x1024xf32, #tpu.memory_space<vmem>>, vector<8x512xf32>
    %cst_32 = arith.constant dense<0.000000e+00> : vector<8x512xf32>
    %113 = tpu.matmul %72, %8, %cst_32 {dimension_numbers = #tpu.dot_dimension_numbers<[1], [0], [0], [1], [0, 0, 1, 1], [], []>} : vector<8x128xf32>, vector<128x512xf32>, vector<8x512xf32> -> vector<8x512xf32>
    %114 = arith.addf %112, %113 : vector<8x512xf32>
    %115 = vector.extract_strided_slice %114 {offsets = [0, 0], sizes = [8, 128], strides = [1, 1]} : vector<8x512xf32> to vector<8x128xf32>
    %116 = arith.negf %115 : vector<8x128xf32>
    %117 = math.exp %116 : vector<8x128xf32>
    %cst_33 = arith.constant 1.000000e+00 : f32
    %118 = vector.broadcast %cst_33 : f32 to vector<8x128xf32>
    %119 = arith.addf %118, %117 : vector<8x128xf32>
    %120 = arith.divf %118, %119 : vector<8x128xf32>
    %121 = vector.extract_strided_slice %114 {offsets = [0, 128], sizes = [8, 128], strides = [1, 1]} : vector<8x512xf32> to vector<8x128xf32>
    %122 = arith.negf %121 : vector<8x128xf32>
    %123 = math.exp %122 : vector<8x128xf32>
    %cst_34 = arith.constant 1.000000e+00 : f32
    %124 = vector.broadcast %cst_34 : f32 to vector<8x128xf32>
    %125 = arith.addf %124, %123 : vector<8x128xf32>
    %126 = arith.divf %124, %125 : vector<8x128xf32>
    %127 = vector.extract_strided_slice %114 {offsets = [0, 256], sizes = [8, 128], strides = [1, 1]} : vector<8x512xf32> to vector<8x128xf32>
    %128 = math.tanh %127 : vector<8x128xf32>
    %129 = vector.extract_strided_slice %114 {offsets = [0, 384], sizes = [8, 128], strides = [1, 1]} : vector<8x512xf32> to vector<8x128xf32>
    %130 = arith.negf %129 : vector<8x128xf32>
    %131 = math.exp %130 : vector<8x128xf32>
    %cst_35 = arith.constant 1.000000e+00 : f32
    %132 = vector.broadcast %cst_35 : f32 to vector<8x128xf32>
    %133 = arith.addf %132, %131 : vector<8x128xf32>
    %134 = arith.divf %132, %133 : vector<8x128xf32>
    %135 = arith.mulf %126, %70 : vector<8x128xf32>
    %136 = arith.mulf %120, %128 : vector<8x128xf32>
    %137 = arith.addf %135, %136 : vector<8x128xf32>
    %138 = math.tanh %137 : vector<8x128xf32>
    %139 = arith.mulf %134, %138 : vector<8x128xf32>
    %140 = arith.index_cast %78 : i32 to index
    %c0_36 = arith.constant 0 : index
    %141 = vector.load %arg9[%140, %c0_36] : memref<64x256xf32, #tpu.memory_space<vmem>>, vector<8x128xf32>
    tpu.vector_store %arg9[%140, %c0_36], %110 {strides = array<i32>} : memref<64x256xf32, #tpu.memory_space<vmem>>, vector<8x128xf32>,
    %142 = arith.index_cast %81 : i32 to index
    %c128_37 = arith.constant 128 : index
    %143 = vector.load %arg9[%142, %c128_37] : memref<64x256xf32, #tpu.memory_space<vmem>>, vector<8x128xf32>
    tpu.vector_store %arg9[%142, %c128_37], %139 {strides = array<i32>} : memref<64x256xf32, #tpu.memory_space<vmem>>, vector<8x128xf32>,
    %c2_i32 = arith.constant 2 : i32
    %c8_i32_38 = arith.constant 8 : i32
    %144 = arith.muli %c2_i32, %c8_i32_38 : i32
    %145 = tpu.assume_multiple %144, 8 : i32
    %c7_i32_39 = arith.constant 7 : i32
    %146 = arith.subi %c7_i32_39, %c2_i32 : i32
    %c8_i32_40 = arith.constant 8 : i32
    %147 = arith.muli %146, %c8_i32_40 : i32
    %148 = tpu.assume_multiple %147, 8 : i32
    %149 = arith.index_cast %145 : i32 to index
    %c0_41 = arith.constant 0 : index
    %150 = vector.load %arg8[%149, %c0_41] : memref<64x1024xf32, #tpu.memory_space<vmem>>, vector<8x512xf32>
    %cst_42 = arith.constant dense<0.000000e+00> : vector<8x512xf32>
    %151 = tpu.matmul %110, %7, %cst_42 {dimension_numbers = #tpu.dot_dimension_numbers<[1], [0], [0], [1], [0, 0, 1, 1], [], []>} : vector<8x128xf32>, vector<128x512xf32>, vector<8x512xf32> -> vector<8x512xf32>
    %152 = arith.addf %150, %151 : vector<8x512xf32>
    %153 = vector.extract_strided_slice %152 {offsets = [0, 0], sizes = [8, 128], strides = [1, 1]} : vector<8x512xf32> to vector<8x128xf32>
    %154 = arith.negf %153 : vector<8x128xf32>
    %155 = math.exp %154 : vector<8x128xf32>
    %cst_43 = arith.constant 1.000000e+00 : f32
    %156 = vector.broadcast %cst_43 : f32 to vector<8x128xf32>
    %157 = arith.addf %156, %155 : vector<8x128xf32>
    %158 = arith.divf %156, %157 : vector<8x128xf32>
    %159 = vector.extract_strided_slice %152 {offsets = [0, 128], sizes = [8, 128], strides = [1, 1]} : vector<8x512xf32> to vector<8x128xf32>
    %160 = arith.negf %159 : vector<8x128xf32>
    %161 = math.exp %160 : vector<8x128xf32>
    %cst_44 = arith.constant 1.000000e+00 : f32
    %162 = vector.broadcast %cst_44 : f32 to vector<8x128xf32>
    %163 = arith.addf %162, %161 : vector<8x128xf32>
    %164 = arith.divf %162, %163 : vector<8x128xf32>
    %165 = vector.extract_strided_slice %152 {offsets = [0, 256], sizes = [8, 128], strides = [1, 1]} : vector<8x512xf32> to vector<8x128xf32>
    %166 = math.tanh %165 : vector<8x128xf32>
    %167 = vector.extract_strided_slice %152 {offsets = [0, 384], sizes = [8, 128], strides = [1, 1]} : vector<8x512xf32> to vector<8x128xf32>
    %168 = arith.negf %167 : vector<8x128xf32>
    %169 = math.exp %168 : vector<8x128xf32>
    %cst_45 = arith.constant 1.000000e+00 : f32
    %170 = vector.broadcast %cst_45 : f32 to vector<8x128xf32>
    %171 = arith.addf %170, %169 : vector<8x128xf32>
    %172 = arith.divf %170, %171 : vector<8x128xf32>
    %173 = arith.mulf %164, %108 : vector<8x128xf32>
    %174 = arith.mulf %158, %166 : vector<8x128xf32>
    %175 = arith.addf %173, %174 : vector<8x128xf32>
    %176 = math.tanh %175 : vector<8x128xf32>
    %177 = arith.mulf %172, %176 : vector<8x128xf32>
    %178 = arith.index_cast %148 : i32 to index
    %c512_46 = arith.constant 512 : index
    %179 = vector.load %arg8[%178, %c512_46] : memref<64x1024xf32, #tpu.memory_space<vmem>>, vector<8x512xf32>
    %cst_47 = arith.constant dense<0.000000e+00> : vector<8x512xf32>
    %180 = tpu.matmul %139, %8, %cst_47 {dimension_numbers = #tpu.dot_dimension_numbers<[1], [0], [0], [1], [0, 0, 1, 1], [], []>} : vector<8x128xf32>, vector<128x512xf32>, vector<8x512xf32> -> vector<8x512xf32>
    %181 = arith.addf %179, %180 : vector<8x512xf32>
    %182 = vector.extract_strided_slice %181 {offsets = [0, 0], sizes = [8, 128], strides = [1, 1]} : vector<8x512xf32> to vector<8x128xf32>
    %183 = arith.negf %182 : vector<8x128xf32>
    %184 = math.exp %183 : vector<8x128xf32>
    %cst_48 = arith.constant 1.000000e+00 : f32
    %185 = vector.broadcast %cst_48 : f32 to vector<8x128xf32>
    %186 = arith.addf %185, %184 : vector<8x128xf32>
    %187 = arith.divf %185, %186 : vector<8x128xf32>
    %188 = vector.extract_strided_slice %181 {offsets = [0, 128], sizes = [8, 128], strides = [1, 1]} : vector<8x512xf32> to vector<8x128xf32>
    %189 = arith.negf %188 : vector<8x128xf32>
    %190 = math.exp %189 : vector<8x128xf32>
    %cst_49 = arith.constant 1.000000e+00 : f32
    %191 = vector.broadcast %cst_49 : f32 to vector<8x128xf32>
    %192 = arith.addf %191, %190 : vector<8x128xf32>
    %193 = arith.divf %191, %192 : vector<8x128xf32>
    %194 = vector.extract_strided_slice %181 {offsets = [0, 256], sizes = [8, 128], strides = [1, 1]} : vector<8x512xf32> to vector<8x128xf32>
    %195 = math.tanh %194 : vector<8x128xf32>
    %196 = vector.extract_strided_slice %181 {offsets = [0, 384], sizes = [8, 128], strides = [1, 1]} : vector<8x512xf32> to vector<8x128xf32>
    %197 = arith.negf %196 : vector<8x128xf32>
    %198 = math.exp %197 : vector<8x128xf32>
    %cst_50 = arith.constant 1.000000e+00 : f32
    %199 = vector.broadcast %cst_50 : f32 to vector<8x128xf32>
    %200 = arith.addf %199, %198 : vector<8x128xf32>
    %201 = arith.divf %199, %200 : vector<8x128xf32>
    %202 = arith.mulf %193, %137 : vector<8x128xf32>
    %203 = arith.mulf %187, %195 : vector<8x128xf32>
    %204 = arith.addf %202, %203 : vector<8x128xf32>
    %205 = math.tanh %204 : vector<8x128xf32>
    %206 = arith.mulf %201, %205 : vector<8x128xf32>
    %207 = arith.index_cast %145 : i32 to index
    %c0_51 = arith.constant 0 : index
    %208 = vector.load %arg9[%207, %c0_51] : memref<64x256xf32, #tpu.memory_space<vmem>>, vector<8x128xf32>
    tpu.vector_store %arg9[%207, %c0_51], %177 {strides = array<i32>} : memref<64x256xf32, #tpu.memory_space<vmem>>, vector<8x128xf32>,
    %209 = arith.index_cast %148 : i32 to index
    %c128_52 = arith.constant 128 : index
    %210 = vector.load %arg9[%209, %c128_52] : memref<64x256xf32, #tpu.memory_space<vmem>>, vector<8x128xf32>
    tpu.vector_store %arg9[%209, %c128_52], %206 {strides = array<i32>} : memref<64x256xf32, #tpu.memory_space<vmem>>, vector<8x128xf32>,
    %c3_i32 = arith.constant 3 : i32
    %c8_i32_53 = arith.constant 8 : i32
    %211 = arith.muli %c3_i32, %c8_i32_53 : i32
    %212 = tpu.assume_multiple %211, 8 : i32
    %c7_i32_54 = arith.constant 7 : i32
    %213 = arith.subi %c7_i32_54, %c3_i32 : i32
    %c8_i32_55 = arith.constant 8 : i32
    %214 = arith.muli %213, %c8_i32_55 : i32
    %215 = tpu.assume_multiple %214, 8 : i32
    %216 = arith.index_cast %212 : i32 to index
    %c0_56 = arith.constant 0 : index
    %217 = vector.load %arg8[%216, %c0_56] : memref<64x1024xf32, #tpu.memory_space<vmem>>, vector<8x512xf32>
    %cst_57 = arith.constant dense<0.000000e+00> : vector<8x512xf32>
    %218 = tpu.matmul %177, %7, %cst_57 {dimension_numbers = #tpu.dot_dimension_numbers<[1], [0], [0], [1], [0, 0, 1, 1], [], []>} : vector<8x128xf32>, vector<128x512xf32>, vector<8x512xf32> -> vector<8x512xf32>
    %219 = arith.addf %217, %218 : vector<8x512xf32>
    %220 = vector.extract_strided_slice %219 {offsets = [0, 0], sizes = [8, 128], strides = [1, 1]} : vector<8x512xf32> to vector<8x128xf32>
    %221 = arith.negf %220 : vector<8x128xf32>
    %222 = math.exp %221 : vector<8x128xf32>
    %cst_58 = arith.constant 1.000000e+00 : f32
    %223 = vector.broadcast %cst_58 : f32 to vector<8x128xf32>
    %224 = arith.addf %223, %222 : vector<8x128xf32>
    %225 = arith.divf %223, %224 : vector<8x128xf32>
    %226 = vector.extract_strided_slice %219 {offsets = [0, 128], sizes = [8, 128], strides = [1, 1]} : vector<8x512xf32> to vector<8x128xf32>
    %227 = arith.negf %226 : vector<8x128xf32>
    %228 = math.exp %227 : vector<8x128xf32>
    %cst_59 = arith.constant 1.000000e+00 : f32
    %229 = vector.broadcast %cst_59 : f32 to vector<8x128xf32>
    %230 = arith.addf %229, %228 : vector<8x128xf32>
    %231 = arith.divf %229, %230 : vector<8x128xf32>
    %232 = vector.extract_strided_slice %219 {offsets = [0, 256], sizes = [8, 128], strides = [1, 1]} : vector<8x512xf32> to vector<8x128xf32>
    %233 = math.tanh %232 : vector<8x128xf32>
    %234 = vector.extract_strided_slice %219 {offsets = [0, 384], sizes = [8, 128], strides = [1, 1]} : vector<8x512xf32> to vector<8x128xf32>
    %235 = arith.negf %234 : vector<8x128xf32>
    %236 = math.exp %235 : vector<8x128xf32>
    %cst_60 = arith.constant 1.000000e+00 : f32
    %237 = vector.broadcast %cst_60 : f32 to vector<8x128xf32>
    %238 = arith.addf %237, %236 : vector<8x128xf32>
    %239 = arith.divf %237, %238 : vector<8x128xf32>
    %240 = arith.mulf %231, %175 : vector<8x128xf32>
    %241 = arith.mulf %225, %233 : vector<8x128xf32>
    %242 = arith.addf %240, %241 : vector<8x128xf32>
    %243 = math.tanh %242 : vector<8x128xf32>
    %244 = arith.mulf %239, %243 : vector<8x128xf32>
    %245 = arith.index_cast %215 : i32 to index
    %c512_61 = arith.constant 512 : index
    %246 = vector.load %arg8[%245, %c512_61] : memref<64x1024xf32, #tpu.memory_space<vmem>>, vector<8x512xf32>
    %cst_62 = arith.constant dense<0.000000e+00> : vector<8x512xf32>
    %247 = tpu.matmul %206, %8, %cst_62 {dimension_numbers = #tpu.dot_dimension_numbers<[1], [0], [0], [1], [0, 0, 1, 1], [], []>} : vector<8x128xf32>, vector<128x512xf32>, vector<8x512xf32> -> vector<8x512xf32>
    %248 = arith.addf %246, %247 : vector<8x512xf32>
    %249 = vector.extract_strided_slice %248 {offsets = [0, 0], sizes = [8, 128], strides = [1, 1]} : vector<8x512xf32> to vector<8x128xf32>
    %250 = arith.negf %249 : vector<8x128xf32>
    %251 = math.exp %250 : vector<8x128xf32>
    %cst_63 = arith.constant 1.000000e+00 : f32
    %252 = vector.broadcast %cst_63 : f32 to vector<8x128xf32>
    %253 = arith.addf %252, %251 : vector<8x128xf32>
    %254 = arith.divf %252, %253 : vector<8x128xf32>
    %255 = vector.extract_strided_slice %248 {offsets = [0, 128], sizes = [8, 128], strides = [1, 1]} : vector<8x512xf32> to vector<8x128xf32>
    %256 = arith.negf %255 : vector<8x128xf32>
    %257 = math.exp %256 : vector<8x128xf32>
    %cst_64 = arith.constant 1.000000e+00 : f32
    %258 = vector.broadcast %cst_64 : f32 to vector<8x128xf32>
    %259 = arith.addf %258, %257 : vector<8x128xf32>
    %260 = arith.divf %258, %259 : vector<8x128xf32>
    %261 = vector.extract_strided_slice %248 {offsets = [0, 256], sizes = [8, 128], strides = [1, 1]} : vector<8x512xf32> to vector<8x128xf32>
    %262 = math.tanh %261 : vector<8x128xf32>
    %263 = vector.extract_strided_slice %248 {offsets = [0, 384], sizes = [8, 128], strides = [1, 1]} : vector<8x512xf32> to vector<8x128xf32>
    %264 = arith.negf %263 : vector<8x128xf32>
    %265 = math.exp %264 : vector<8x128xf32>
    %cst_65 = arith.constant 1.000000e+00 : f32
    %266 = vector.broadcast %cst_65 : f32 to vector<8x128xf32>
    %267 = arith.addf %266, %265 : vector<8x128xf32>
    %268 = arith.divf %266, %267 : vector<8x128xf32>
    %269 = arith.mulf %260, %204 : vector<8x128xf32>
    %270 = arith.mulf %254, %262 : vector<8x128xf32>
    %271 = arith.addf %269, %270 : vector<8x128xf32>
    %272 = math.tanh %271 : vector<8x128xf32>
    %273 = arith.mulf %268, %272 : vector<8x128xf32>
    %274 = arith.index_cast %212 : i32 to index
    %c0_66 = arith.constant 0 : index
    %275 = vector.load %arg9[%274, %c0_66] : memref<64x256xf32, #tpu.memory_space<vmem>>, vector<8x128xf32>
    tpu.vector_store %arg9[%274, %c0_66], %244 {strides = array<i32>} : memref<64x256xf32, #tpu.memory_space<vmem>>, vector<8x128xf32>,
    %276 = arith.index_cast %215 : i32 to index
    %c128_67 = arith.constant 128 : index
    %277 = vector.load %arg9[%276, %c128_67] : memref<64x256xf32, #tpu.memory_space<vmem>>, vector<8x128xf32>
    tpu.vector_store %arg9[%276, %c128_67], %273 {strides = array<i32>} : memref<64x256xf32, #tpu.memory_space<vmem>>, vector<8x128xf32>,
    %c4_i32 = arith.constant 4 : i32
    %c8_i32_68 = arith.constant 8 : i32
    %278 = arith.muli %c4_i32, %c8_i32_68 : i32
    %279 = tpu.assume_multiple %278, 8 : i32
    %c7_i32_69 = arith.constant 7 : i32
    %280 = arith.subi %c7_i32_69, %c4_i32 : i32
    %c8_i32_70 = arith.constant 8 : i32
    %281 = arith.muli %280, %c8_i32_70 : i32
    %282 = tpu.assume_multiple %281, 8 : i32
    %283 = arith.index_cast %279 : i32 to index
    %c0_71 = arith.constant 0 : index
    %284 = vector.load %arg8[%283, %c0_71] : memref<64x1024xf32, #tpu.memory_space<vmem>>, vector<8x512xf32>
    %cst_72 = arith.constant dense<0.000000e+00> : vector<8x512xf32>
    %285 = tpu.matmul %244, %7, %cst_72 {dimension_numbers = #tpu.dot_dimension_numbers<[1], [0], [0], [1], [0, 0, 1, 1], [], []>} : vector<8x128xf32>, vector<128x512xf32>, vector<8x512xf32> -> vector<8x512xf32>
    %286 = arith.addf %284, %285 : vector<8x512xf32>
    %287 = vector.extract_strided_slice %286 {offsets = [0, 0], sizes = [8, 128], strides = [1, 1]} : vector<8x512xf32> to vector<8x128xf32>
    %288 = arith.negf %287 : vector<8x128xf32>
    %289 = math.exp %288 : vector<8x128xf32>
    %cst_73 = arith.constant 1.000000e+00 : f32
    %290 = vector.broadcast %cst_73 : f32 to vector<8x128xf32>
    %291 = arith.addf %290, %289 : vector<8x128xf32>
    %292 = arith.divf %290, %291 : vector<8x128xf32>
    %293 = vector.extract_strided_slice %286 {offsets = [0, 128], sizes = [8, 128], strides = [1, 1]} : vector<8x512xf32> to vector<8x128xf32>
    %294 = arith.negf %293 : vector<8x128xf32>
    %295 = math.exp %294 : vector<8x128xf32>
    %cst_74 = arith.constant 1.000000e+00 : f32
    %296 = vector.broadcast %cst_74 : f32 to vector<8x128xf32>
    %297 = arith.addf %296, %295 : vector<8x128xf32>
    %298 = arith.divf %296, %297 : vector<8x128xf32>
    %299 = vector.extract_strided_slice %286 {offsets = [0, 256], sizes = [8, 128], strides = [1, 1]} : vector<8x512xf32> to vector<8x128xf32>
    %300 = math.tanh %299 : vector<8x128xf32>
    %301 = vector.extract_strided_slice %286 {offsets = [0, 384], sizes = [8, 128], strides = [1, 1]} : vector<8x512xf32> to vector<8x128xf32>
    %302 = arith.negf %301 : vector<8x128xf32>
    %303 = math.exp %302 : vector<8x128xf32>
    %cst_75 = arith.constant 1.000000e+00 : f32
    %304 = vector.broadcast %cst_75 : f32 to vector<8x128xf32>
    %305 = arith.addf %304, %303 : vector<8x128xf32>
    %306 = arith.divf %304, %305 : vector<8x128xf32>
    %307 = arith.mulf %298, %242 : vector<8x128xf32>
    %308 = arith.mulf %292, %300 : vector<8x128xf32>
    %309 = arith.addf %307, %308 : vector<8x128xf32>
    %310 = math.tanh %309 : vector<8x128xf32>
    %311 = arith.mulf %306, %310 : vector<8x128xf32>
    %312 = arith.index_cast %282 : i32 to index
    %c512_76 = arith.constant 512 : index
    %313 = vector.load %arg8[%312, %c512_76] : memref<64x1024xf32, #tpu.memory_space<vmem>>, vector<8x512xf32>
    %cst_77 = arith.constant dense<0.000000e+00> : vector<8x512xf32>
    %314 = tpu.matmul %273, %8, %cst_77 {dimension_numbers = #tpu.dot_dimension_numbers<[1], [0], [0], [1], [0, 0, 1, 1], [], []>} : vector<8x128xf32>, vector<128x512xf32>, vector<8x512xf32> -> vector<8x512xf32>
    %315 = arith.addf %313, %314 : vector<8x512xf32>
    %316 = vector.extract_strided_slice %315 {offsets = [0, 0], sizes = [8, 128], strides = [1, 1]} : vector<8x512xf32> to vector<8x128xf32>
    %317 = arith.negf %316 : vector<8x128xf32>
    %318 = math.exp %317 : vector<8x128xf32>
    %cst_78 = arith.constant 1.000000e+00 : f32
    %319 = vector.broadcast %cst_78 : f32 to vector<8x128xf32>
    %320 = arith.addf %319, %318 : vector<8x128xf32>
    %321 = arith.divf %319, %320 : vector<8x128xf32>
    %322 = vector.extract_strided_slice %315 {offsets = [0, 128], sizes = [8, 128], strides = [1, 1]} : vector<8x512xf32> to vector<8x128xf32>
    %323 = arith.negf %322 : vector<8x128xf32>
    %324 = math.exp %323 : vector<8x128xf32>
    %cst_79 = arith.constant 1.000000e+00 : f32
    %325 = vector.broadcast %cst_79 : f32 to vector<8x128xf32>
    %326 = arith.addf %325, %324 : vector<8x128xf32>
    %327 = arith.divf %325, %326 : vector<8x128xf32>
    %328 = vector.extract_strided_slice %315 {offsets = [0, 256], sizes = [8, 128], strides = [1, 1]} : vector<8x512xf32> to vector<8x128xf32>
    %329 = math.tanh %328 : vector<8x128xf32>
    %330 = vector.extract_strided_slice %315 {offsets = [0, 384], sizes = [8, 128], strides = [1, 1]} : vector<8x512xf32> to vector<8x128xf32>
    %331 = arith.negf %330 : vector<8x128xf32>
    %332 = math.exp %331 : vector<8x128xf32>
    %cst_80 = arith.constant 1.000000e+00 : f32
    %333 = vector.broadcast %cst_80 : f32 to vector<8x128xf32>
    %334 = arith.addf %333, %332 : vector<8x128xf32>
    %335 = arith.divf %333, %334 : vector<8x128xf32>
    %336 = arith.mulf %327, %271 : vector<8x128xf32>
    %337 = arith.mulf %321, %329 : vector<8x128xf32>
    %338 = arith.addf %336, %337 : vector<8x128xf32>
    %339 = math.tanh %338 : vector<8x128xf32>
    %340 = arith.mulf %335, %339 : vector<8x128xf32>
    %341 = arith.index_cast %279 : i32 to index
    %c0_81 = arith.constant 0 : index
    %342 = vector.load %arg9[%341, %c0_81] : memref<64x256xf32, #tpu.memory_space<vmem>>, vector<8x128xf32>
    tpu.vector_store %arg9[%341, %c0_81], %311 {strides = array<i32>} : memref<64x256xf32, #tpu.memory_space<vmem>>, vector<8x128xf32>,
    %343 = arith.index_cast %282 : i32 to index
    %c128_82 = arith.constant 128 : index
    %344 = vector.load %arg9[%343, %c128_82] : memref<64x256xf32, #tpu.memory_space<vmem>>, vector<8x128xf32>
    tpu.vector_store %arg9[%343, %c128_82], %340 {strides = array<i32>} : memref<64x256xf32, #tpu.memory_space<vmem>>, vector<8x128xf32>,
    %c5_i32 = arith.constant 5 : i32
    %c8_i32_83 = arith.constant 8 : i32
    %345 = arith.muli %c5_i32, %c8_i32_83 : i32
    %346 = tpu.assume_multiple %345, 8 : i32
    %c7_i32_84 = arith.constant 7 : i32
    %347 = arith.subi %c7_i32_84, %c5_i32 : i32
    %c8_i32_85 = arith.constant 8 : i32
    %348 = arith.muli %347, %c8_i32_85 : i32
    %349 = tpu.assume_multiple %348, 8 : i32
    %350 = arith.index_cast %346 : i32 to index
    %c0_86 = arith.constant 0 : index
    %351 = vector.load %arg8[%350, %c0_86] : memref<64x1024xf32, #tpu.memory_space<vmem>>, vector<8x512xf32>
    %cst_87 = arith.constant dense<0.000000e+00> : vector<8x512xf32>
    %352 = tpu.matmul %311, %7, %cst_87 {dimension_numbers = #tpu.dot_dimension_numbers<[1], [0], [0], [1], [0, 0, 1, 1], [], []>} : vector<8x128xf32>, vector<128x512xf32>, vector<8x512xf32> -> vector<8x512xf32>
    %353 = arith.addf %351, %352 : vector<8x512xf32>
    %354 = vector.extract_strided_slice %353 {offsets = [0, 0], sizes = [8, 128], strides = [1, 1]} : vector<8x512xf32> to vector<8x128xf32>
    %355 = arith.negf %354 : vector<8x128xf32>
    %356 = math.exp %355 : vector<8x128xf32>
    %cst_88 = arith.constant 1.000000e+00 : f32
    %357 = vector.broadcast %cst_88 : f32 to vector<8x128xf32>
    %358 = arith.addf %357, %356 : vector<8x128xf32>
    %359 = arith.divf %357, %358 : vector<8x128xf32>
    %360 = vector.extract_strided_slice %353 {offsets = [0, 128], sizes = [8, 128], strides = [1, 1]} : vector<8x512xf32> to vector<8x128xf32>
    %361 = arith.negf %360 : vector<8x128xf32>
    %362 = math.exp %361 : vector<8x128xf32>
    %cst_89 = arith.constant 1.000000e+00 : f32
    %363 = vector.broadcast %cst_89 : f32 to vector<8x128xf32>
    %364 = arith.addf %363, %362 : vector<8x128xf32>
    %365 = arith.divf %363, %364 : vector<8x128xf32>
    %366 = vector.extract_strided_slice %353 {offsets = [0, 256], sizes = [8, 128], strides = [1, 1]} : vector<8x512xf32> to vector<8x128xf32>
    %367 = math.tanh %366 : vector<8x128xf32>
    %368 = vector.extract_strided_slice %353 {offsets = [0, 384], sizes = [8, 128], strides = [1, 1]} : vector<8x512xf32> to vector<8x128xf32>
    %369 = arith.negf %368 : vector<8x128xf32>
    %370 = math.exp %369 : vector<8x128xf32>
    %cst_90 = arith.constant 1.000000e+00 : f32
    %371 = vector.broadcast %cst_90 : f32 to vector<8x128xf32>
    %372 = arith.addf %371, %370 : vector<8x128xf32>
    %373 = arith.divf %371, %372 : vector<8x128xf32>
    %374 = arith.mulf %365, %309 : vector<8x128xf32>
    %375 = arith.mulf %359, %367 : vector<8x128xf32>
    %376 = arith.addf %374, %375 : vector<8x128xf32>
    %377 = math.tanh %376 : vector<8x128xf32>
    %378 = arith.mulf %373, %377 : vector<8x128xf32>
    %379 = arith.index_cast %349 : i32 to index
    %c512_91 = arith.constant 512 : index
    %380 = vector.load %arg8[%379, %c512_91] : memref<64x1024xf32, #tpu.memory_space<vmem>>, vector<8x512xf32>
    %cst_92 = arith.constant dense<0.000000e+00> : vector<8x512xf32>
    %381 = tpu.matmul %340, %8, %cst_92 {dimension_numbers = #tpu.dot_dimension_numbers<[1], [0], [0], [1], [0, 0, 1, 1], [], []>} : vector<8x128xf32>, vector<128x512xf32>, vector<8x512xf32> -> vector<8x512xf32>
    %382 = arith.addf %380, %381 : vector<8x512xf32>
    %383 = vector.extract_strided_slice %382 {offsets = [0, 0], sizes = [8, 128], strides = [1, 1]} : vector<8x512xf32> to vector<8x128xf32>
    %384 = arith.negf %383 : vector<8x128xf32>
    %385 = math.exp %384 : vector<8x128xf32>
    %cst_93 = arith.constant 1.000000e+00 : f32
    %386 = vector.broadcast %cst_93 : f32 to vector<8x128xf32>
    %387 = arith.addf %386, %385 : vector<8x128xf32>
    %388 = arith.divf %386, %387 : vector<8x128xf32>
    %389 = vector.extract_strided_slice %382 {offsets = [0, 128], sizes = [8, 128], strides = [1, 1]} : vector<8x512xf32> to vector<8x128xf32>
    %390 = arith.negf %389 : vector<8x128xf32>
    %391 = math.exp %390 : vector<8x128xf32>
    %cst_94 = arith.constant 1.000000e+00 : f32
    %392 = vector.broadcast %cst_94 : f32 to vector<8x128xf32>
    %393 = arith.addf %392, %391 : vector<8x128xf32>
    %394 = arith.divf %392, %393 : vector<8x128xf32>
    %395 = vector.extract_strided_slice %382 {offsets = [0, 256], sizes = [8, 128], strides = [1, 1]} : vector<8x512xf32> to vector<8x128xf32>
    %396 = math.tanh %395 : vector<8x128xf32>
    %397 = vector.extract_strided_slice %382 {offsets = [0, 384], sizes = [8, 128], strides = [1, 1]} : vector<8x512xf32> to vector<8x128xf32>
    %398 = arith.negf %397 : vector<8x128xf32>
    %399 = math.exp %398 : vector<8x128xf32>
    %cst_95 = arith.constant 1.000000e+00 : f32
    %400 = vector.broadcast %cst_95 : f32 to vector<8x128xf32>
    %401 = arith.addf %400, %399 : vector<8x128xf32>
    %402 = arith.divf %400, %401 : vector<8x128xf32>
    %403 = arith.mulf %394, %338 : vector<8x128xf32>
    %404 = arith.mulf %388, %396 : vector<8x128xf32>
    %405 = arith.addf %403, %404 : vector<8x128xf32>
    %406 = math.tanh %405 : vector<8x128xf32>
    %407 = arith.mulf %402, %406 : vector<8x128xf32>
    %408 = arith.index_cast %346 : i32 to index
    %c0_96 = arith.constant 0 : index
    %409 = vector.load %arg9[%408, %c0_96] : memref<64x256xf32, #tpu.memory_space<vmem>>, vector<8x128xf32>
    tpu.vector_store %arg9[%408, %c0_96], %378 {strides = array<i32>} : memref<64x256xf32, #tpu.memory_space<vmem>>, vector<8x128xf32>,
    %410 = arith.index_cast %349 : i32 to index
    %c128_97 = arith.constant 128 : index
    %411 = vector.load %arg9[%410, %c128_97] : memref<64x256xf32, #tpu.memory_space<vmem>>, vector<8x128xf32>
    tpu.vector_store %arg9[%410, %c128_97], %407 {strides = array<i32>} : memref<64x256xf32, #tpu.memory_space<vmem>>, vector<8x128xf32>,
    %c6_i32 = arith.constant 6 : i32
    %c8_i32_98 = arith.constant 8 : i32
    %412 = arith.muli %c6_i32, %c8_i32_98 : i32
    %413 = tpu.assume_multiple %412, 8 : i32
    %c7_i32_99 = arith.constant 7 : i32
    %414 = arith.subi %c7_i32_99, %c6_i32 : i32
    %c8_i32_100 = arith.constant 8 : i32
    %415 = arith.muli %414, %c8_i32_100 : i32
    %416 = tpu.assume_multiple %415, 8 : i32
    %417 = arith.index_cast %413 : i32 to index
    %c0_101 = arith.constant 0 : index
    %418 = vector.load %arg8[%417, %c0_101] : memref<64x1024xf32, #tpu.memory_space<vmem>>, vector<8x512xf32>
    %cst_102 = arith.constant dense<0.000000e+00> : vector<8x512xf32>
    %419 = tpu.matmul %378, %7, %cst_102 {dimension_numbers = #tpu.dot_dimension_numbers<[1], [0], [0], [1], [0, 0, 1, 1], [], []>} : vector<8x128xf32>, vector<128x512xf32>, vector<8x512xf32> -> vector<8x512xf32>
    %420 = arith.addf %418, %419 : vector<8x512xf32>
    %421 = vector.extract_strided_slice %420 {offsets = [0, 0], sizes = [8, 128], strides = [1, 1]} : vector<8x512xf32> to vector<8x128xf32>
    %422 = arith.negf %421 : vector<8x128xf32>
    %423 = math.exp %422 : vector<8x128xf32>
    %cst_103 = arith.constant 1.000000e+00 : f32
    %424 = vector.broadcast %cst_103 : f32 to vector<8x128xf32>
    %425 = arith.addf %424, %423 : vector<8x128xf32>
    %426 = arith.divf %424, %425 : vector<8x128xf32>
    %427 = vector.extract_strided_slice %420 {offsets = [0, 128], sizes = [8, 128], strides = [1, 1]} : vector<8x512xf32> to vector<8x128xf32>
    %428 = arith.negf %427 : vector<8x128xf32>
    %429 = math.exp %428 : vector<8x128xf32>
    %cst_104 = arith.constant 1.000000e+00 : f32
    %430 = vector.broadcast %cst_104 : f32 to vector<8x128xf32>
    %431 = arith.addf %430, %429 : vector<8x128xf32>
    %432 = arith.divf %430, %431 : vector<8x128xf32>
    %433 = vector.extract_strided_slice %420 {offsets = [0, 256], sizes = [8, 128], strides = [1, 1]} : vector<8x512xf32> to vector<8x128xf32>
    %434 = math.tanh %433 : vector<8x128xf32>
    %435 = vector.extract_strided_slice %420 {offsets = [0, 384], sizes = [8, 128], strides = [1, 1]} : vector<8x512xf32> to vector<8x128xf32>
    %436 = arith.negf %435 : vector<8x128xf32>
    %437 = math.exp %436 : vector<8x128xf32>
    %cst_105 = arith.constant 1.000000e+00 : f32
    %438 = vector.broadcast %cst_105 : f32 to vector<8x128xf32>
    %439 = arith.addf %438, %437 : vector<8x128xf32>
    %440 = arith.divf %438, %439 : vector<8x128xf32>
    %441 = arith.mulf %432, %376 : vector<8x128xf32>
    %442 = arith.mulf %426, %434 : vector<8x128xf32>
    %443 = arith.addf %441, %442 : vector<8x128xf32>
    %444 = math.tanh %443 : vector<8x128xf32>
    %445 = arith.mulf %440, %444 : vector<8x128xf32>
    %446 = arith.index_cast %416 : i32 to index
    %c512_106 = arith.constant 512 : index
    %447 = vector.load %arg8[%446, %c512_106] : memref<64x1024xf32, #tpu.memory_space<vmem>>, vector<8x512xf32>
    %cst_107 = arith.constant dense<0.000000e+00> : vector<8x512xf32>
    %448 = tpu.matmul %407, %8, %cst_107 {dimension_numbers = #tpu.dot_dimension_numbers<[1], [0], [0], [1], [0, 0, 1, 1], [], []>} : vector<8x128xf32>, vector<128x512xf32>, vector<8x512xf32> -> vector<8x512xf32>
    %449 = arith.addf %447, %448 : vector<8x512xf32>
    %450 = vector.extract_strided_slice %449 {offsets = [0, 0], sizes = [8, 128], strides = [1, 1]} : vector<8x512xf32> to vector<8x128xf32>
    %451 = arith.negf %450 : vector<8x128xf32>
    %452 = math.exp %451 : vector<8x128xf32>
    %cst_108 = arith.constant 1.000000e+00 : f32
    %453 = vector.broadcast %cst_108 : f32 to vector<8x128xf32>
    %454 = arith.addf %453, %452 : vector<8x128xf32>
    %455 = arith.divf %453, %454 : vector<8x128xf32>
    %456 = vector.extract_strided_slice %449 {offsets = [0, 128], sizes = [8, 128], strides = [1, 1]} : vector<8x512xf32> to vector<8x128xf32>
    %457 = arith.negf %456 : vector<8x128xf32>
    %458 = math.exp %457 : vector<8x128xf32>
    %cst_109 = arith.constant 1.000000e+00 : f32
    %459 = vector.broadcast %cst_109 : f32 to vector<8x128xf32>
    %460 = arith.addf %459, %458 : vector<8x128xf32>
    %461 = arith.divf %459, %460 : vector<8x128xf32>
    %462 = vector.extract_strided_slice %449 {offsets = [0, 256], sizes = [8, 128], strides = [1, 1]} : vector<8x512xf32> to vector<8x128xf32>
    %463 = math.tanh %462 : vector<8x128xf32>
    %464 = vector.extract_strided_slice %449 {offsets = [0, 384], sizes = [8, 128], strides = [1, 1]} : vector<8x512xf32> to vector<8x128xf32>
    %465 = arith.negf %464 : vector<8x128xf32>
    %466 = math.exp %465 : vector<8x128xf32>
    %cst_110 = arith.constant 1.000000e+00 : f32
    %467 = vector.broadcast %cst_110 : f32 to vector<8x128xf32>
    %468 = arith.addf %467, %466 : vector<8x128xf32>
    %469 = arith.divf %467, %468 : vector<8x128xf32>
    %470 = arith.mulf %461, %405 : vector<8x128xf32>
    %471 = arith.mulf %455, %463 : vector<8x128xf32>
    %472 = arith.addf %470, %471 : vector<8x128xf32>
    %473 = math.tanh %472 : vector<8x128xf32>
    %474 = arith.mulf %469, %473 : vector<8x128xf32>
    %475 = arith.index_cast %413 : i32 to index
    %c0_111 = arith.constant 0 : index
    %476 = vector.load %arg9[%475, %c0_111] : memref<64x256xf32, #tpu.memory_space<vmem>>, vector<8x128xf32>
    tpu.vector_store %arg9[%475, %c0_111], %445 {strides = array<i32>} : memref<64x256xf32, #tpu.memory_space<vmem>>, vector<8x128xf32>,
    %477 = arith.index_cast %416 : i32 to index
    %c128_112 = arith.constant 128 : index
    %478 = vector.load %arg9[%477, %c128_112] : memref<64x256xf32, #tpu.memory_space<vmem>>, vector<8x128xf32>
    tpu.vector_store %arg9[%477, %c128_112], %474 {strides = array<i32>} : memref<64x256xf32, #tpu.memory_space<vmem>>, vector<8x128xf32>,
    %c7_i32_113 = arith.constant 7 : i32
    %c8_i32_114 = arith.constant 8 : i32
    %479 = arith.muli %c7_i32_113, %c8_i32_114 : i32
    %480 = tpu.assume_multiple %479, 8 : i32
    %c7_i32_115 = arith.constant 7 : i32
    %481 = arith.subi %c7_i32_115, %c7_i32_113 : i32
    %c8_i32_116 = arith.constant 8 : i32
    %482 = arith.muli %481, %c8_i32_116 : i32
    %483 = tpu.assume_multiple %482, 8 : i32
    %484 = arith.index_cast %480 : i32 to index
    %c0_117 = arith.constant 0 : index
    %485 = vector.load %arg8[%484, %c0_117] : memref<64x1024xf32, #tpu.memory_space<vmem>>, vector<8x512xf32>
    %cst_118 = arith.constant dense<0.000000e+00> : vector<8x512xf32>
    %486 = tpu.matmul %445, %7, %cst_118 {dimension_numbers = #tpu.dot_dimension_numbers<[1], [0], [0], [1], [0, 0, 1, 1], [], []>} : vector<8x128xf32>, vector<128x512xf32>, vector<8x512xf32> -> vector<8x512xf32>
    %487 = arith.addf %485, %486 : vector<8x512xf32>
    %488 = vector.extract_strided_slice %487 {offsets = [0, 0], sizes = [8, 128], strides = [1, 1]} : vector<8x512xf32> to vector<8x128xf32>
    %489 = arith.negf %488 : vector<8x128xf32>
    %490 = math.exp %489 : vector<8x128xf32>
    %cst_119 = arith.constant 1.000000e+00 : f32
    %491 = vector.broadcast %cst_119 : f32 to vector<8x128xf32>
    %492 = arith.addf %491, %490 : vector<8x128xf32>
    %493 = arith.divf %491, %492 : vector<8x128xf32>
    %494 = vector.extract_strided_slice %487 {offsets = [0, 128], sizes = [8, 128], strides = [1, 1]} : vector<8x512xf32> to vector<8x128xf32>
    %495 = arith.negf %494 : vector<8x128xf32>
    %496 = math.exp %495 : vector<8x128xf32>
    %cst_120 = arith.constant 1.000000e+00 : f32
    %497 = vector.broadcast %cst_120 : f32 to vector<8x128xf32>
    %498 = arith.addf %497, %496 : vector<8x128xf32>
    %499 = arith.divf %497, %498 : vector<8x128xf32>
    %500 = vector.extract_strided_slice %487 {offsets = [0, 256], sizes = [8, 128], strides = [1, 1]} : vector<8x512xf32> to vector<8x128xf32>
    %501 = math.tanh %500 : vector<8x128xf32>
    %502 = vector.extract_strided_slice %487 {offsets = [0, 384], sizes = [8, 128], strides = [1, 1]} : vector<8x512xf32> to vector<8x128xf32>
    %503 = arith.negf %502 : vector<8x128xf32>
    %504 = math.exp %503 : vector<8x128xf32>
    %cst_121 = arith.constant 1.000000e+00 : f32
    %505 = vector.broadcast %cst_121 : f32 to vector<8x128xf32>
    %506 = arith.addf %505, %504 : vector<8x128xf32>
    %507 = arith.divf %505, %506 : vector<8x128xf32>
    %508 = arith.mulf %499, %443 : vector<8x128xf32>
    %509 = arith.mulf %493, %501 : vector<8x128xf32>
    %510 = arith.addf %508, %509 : vector<8x128xf32>
    %511 = math.tanh %510 : vector<8x128xf32>
    %512 = arith.mulf %507, %511 : vector<8x128xf32>
    %513 = arith.index_cast %483 : i32 to index
    %c512_122 = arith.constant 512 : index
    %514 = vector.load %arg8[%513, %c512_122] : memref<64x1024xf32, #tpu.memory_space<vmem>>, vector<8x512xf32>
    %cst_123 = arith.constant dense<0.000000e+00> : vector<8x512xf32>
    %515 = tpu.matmul %474, %8, %cst_123 {dimension_numbers = #tpu.dot_dimension_numbers<[1], [0], [0], [1], [0, 0, 1, 1], [], []>} : vector<8x128xf32>, vector<128x512xf32>, vector<8x512xf32> -> vector<8x512xf32>
    %516 = arith.addf %514, %515 : vector<8x512xf32>
    %517 = vector.extract_strided_slice %516 {offsets = [0, 0], sizes = [8, 128], strides = [1, 1]} : vector<8x512xf32> to vector<8x128xf32>
    %518 = arith.negf %517 : vector<8x128xf32>
    %519 = math.exp %518 : vector<8x128xf32>
    %cst_124 = arith.constant 1.000000e+00 : f32
    %520 = vector.broadcast %cst_124 : f32 to vector<8x128xf32>
    %521 = arith.addf %520, %519 : vector<8x128xf32>
    %522 = arith.divf %520, %521 : vector<8x128xf32>
    %523 = vector.extract_strided_slice %516 {offsets = [0, 128], sizes = [8, 128], strides = [1, 1]} : vector<8x512xf32> to vector<8x128xf32>
    %524 = arith.negf %523 : vector<8x128xf32>
    %525 = math.exp %524 : vector<8x128xf32>
    %cst_125 = arith.constant 1.000000e+00 : f32
    %526 = vector.broadcast %cst_125 : f32 to vector<8x128xf32>
    %527 = arith.addf %526, %525 : vector<8x128xf32>
    %528 = arith.divf %526, %527 : vector<8x128xf32>
    %529 = vector.extract_strided_slice %516 {offsets = [0, 256], sizes = [8, 128], strides = [1, 1]} : vector<8x512xf32> to vector<8x128xf32>
    %530 = math.tanh %529 : vector<8x128xf32>
    %531 = vector.extract_strided_slice %516 {offsets = [0, 384], sizes = [8, 128], strides = [1, 1]} : vector<8x512xf32> to vector<8x128xf32>
    %532 = arith.negf %531 : vector<8x128xf32>
    %533 = math.exp %532 : vector<8x128xf32>
    %cst_126 = arith.constant 1.000000e+00 : f32
    %534 = vector.broadcast %cst_126 : f32 to vector<8x128xf32>
    %535 = arith.addf %534, %533 : vector<8x128xf32>
    %536 = arith.divf %534, %535 : vector<8x128xf32>
    %537 = arith.mulf %528, %472 : vector<8x128xf32>
    %538 = arith.mulf %522, %530 : vector<8x128xf32>
    %539 = arith.addf %537, %538 : vector<8x128xf32>
    %540 = math.tanh %539 : vector<8x128xf32>
    %541 = arith.mulf %536, %540 : vector<8x128xf32>
    %542 = arith.index_cast %480 : i32 to index
    %c0_127 = arith.constant 0 : index
    %543 = vector.load %arg9[%542, %c0_127] : memref<64x256xf32, #tpu.memory_space<vmem>>, vector<8x128xf32>
    tpu.vector_store %arg9[%542, %c0_127], %512 {strides = array<i32>} : memref<64x256xf32, #tpu.memory_space<vmem>>, vector<8x128xf32>,
    %544 = arith.index_cast %483 : i32 to index
    %c128_128 = arith.constant 128 : index
    %545 = vector.load %arg9[%544, %c128_128] : memref<64x256xf32, #tpu.memory_space<vmem>>, vector<8x128xf32>
    tpu.vector_store %arg9[%544, %c128_128], %541 {strides = array<i32>} : memref<64x256xf32, #tpu.memory_space<vmem>>, vector<8x128xf32>,
    %c8_i32_129 = arith.constant 8 : i32
    %c0_130 = arith.constant 0 : index
    %c0_131 = arith.constant 0 : index
    %546 = vector.load %arg9[%c0_130, %c0_131] : memref<64x256xf32, #tpu.memory_space<vmem>>, vector<64x256xf32>
    %c0_132 = arith.constant 0 : index
    %c0_133 = arith.constant 0 : index
    %547 = vector.load %arg5[%c0_132, %c0_133] : memref<256x128xf32, #tpu.memory_space<vmem>>, vector<256x128xf32>
    %cst_134 = arith.constant dense<0.000000e+00> : vector<64x128xf32>
    %548 = tpu.matmul %546, %547, %cst_134 {dimension_numbers = #tpu.dot_dimension_numbers<[1], [0], [0], [1], [0, 0, 1, 1], [], []>} : vector<64x256xf32>, vector<256x128xf32>, vector<64x128xf32> -> vector<64x128xf32>
    %c0_135 = arith.constant 0 : index
    %c0_136 = arith.constant 0 : index
    %549 = vector.load %arg6[%c0_135, %c0_136] : memref<1x128xf32, #tpu.memory_space<vmem>>, vector<1x128xf32>
    %550 = vector.broadcast %549 : vector<1x128xf32> to vector<64x128xf32>
    %551 = arith.addf %548, %550 : vector<64x128xf32>
    %c0_137 = arith.constant 0 : index
    %c0_138 = arith.constant 0 : index
    %552 = vector.load %arg7[%c0_137, %c0_138] : memref<64x128xf32, #tpu.memory_space<vmem>>, vector<64x128xf32>
    tpu.vector_store %arg7[%c0_137, %c0_138], %551 {strides = array<i32>} : memref<64x128xf32, #tpu.memory_space<vmem>>, vector<64x128xf32>,
    return
  }
}

</mosaic_0001>

<bundles_post_ra>
// kernel: tpu_custom_call.1
= control target key start
LH: loop header
LB: loop body
LE: loop exit
PB: predicated region body
PF: predicated region fallthrough
CT: control target
= control target key end

     0   :  { %12 = vsyncpa [#allocation5], 0  ;;  %s7093_s0 = inlined_call_operand.vmem [shape: f32[64,16], index: 0, kind: input, shape index: {}]   ;;  %s7094_s1 = inlined_call_operand.hbm [shape: f32[16,1024], index: 1, kind: input, shape index: {}]   ;;  %s7095_s2 = inlined_call_operand.vmem [shape: f32[1,1024], index: 2, kind: input, shape index: {}]   ;;  %s7096_s3 = inlined_call_operand.hbm [shape: f32[128,512], index: 3, kind: input, shape index: {}]   ;;  %s7097_s4 = inlined_call_operand.hbm [shape: f32[128,512], index: 4, kind: input, shape index: {}]   ;;  %s7098_s5 = inlined_call_operand.hbm [shape: f32[256,128], index: 5, kind: input, shape index: {}]   ;;  %s7099_s6 = inlined_call_operand.vmem [shape: f32[1,128], index: 6, kind: input, shape index: {}]   ;;  %s7100_s7 = inlined_call_operand.hbm [shape: f32[64,128], index: 7, kind: output, shape index: {}]  }
   0x1   :  { %13 = vsyncpa [#allocation8], 0 }
   0x2   :  { %14 = vsyncpa [#allocation11], 0 }
   0x3   :  { %15 = vsyncpa [#allocation6], 0  ;;  %s4635_s24 = smov [#allocation7]  }
   0x4   :  { %s37_s25 = sshll.u32 %s4635_s24, 4  ;;  %s38_s25 = int_to_ptr.vmem [resolvable:$true] %s37_s25 }
   0x5   :  { %s4535_s26 = scalar_lea.vmem %s38_s25, 8192  ;;  %p4540_p1 = scmp.lt.s32.totalorder %s38_s25, %s38_s25 }
   0x6   :  { %p4536_p0 = scmp.ne.s32.totalorder %s38_s25, %s4535_s26  ;;  %p4541_p2 = scmp.lt.s32.totalorder %s4535_s26, %s4535_s26 }
   0x8   :  { %p4542_p3 = por %p4541_p2, %p4540_p1 }
   0xa   :  { %p4543_p4 = pnand %p4542_p3, %p4536_p0 }
   0xc   :  { %4546 = shalt.err (!%p4543_p4)
}
   0xd   :  { %s4636_s27 = smov 512   ;;  %s4637_s28 = smov 32  }
   0xe   :  { %43 = dma.hbm_to_vmem [thread:$0]  %s7096_s3, 8192, %s38_s25, [#allocation8], %s4636_s27, %s4636_s27, %s4637_s28  }
   0xf   :  { %s4638_s8 = smov [#allocation4]  }
  0x10   :  { %s23_s9 = sshll.u32 %s4638_s8, 4  ;;  %s24_s9 = int_to_ptr.vmem [resolvable:$true] %s23_s9 }
  0x11   :  { %s4555_s10 = scalar_lea.vmem %s24_s9, 2048  ;;  %p4560_p6 = scmp.lt.s32.totalorder %s24_s9, %s24_s9 }
  0x12   :  { %p4556_p5 = scmp.ne.s32.totalorder %s24_s9, %s4555_s10  ;;  %p4561_p7 = scmp.lt.s32.totalorder %s4555_s10, %s4555_s10 }
  0x14   :  { %p4562_p8 = por %p4561_p7, %p4560_p6 }
  0x16   :  { %p4563_p9 = pnand %p4562_p8, %p4556_p5 }
  0x18   :  { %4566 = shalt.err (!%p4563_p9)
}
  0x19   :  { %s4639_s11 = smov 1024   ;;  %s4640_s12 = smov 64  }
  0x1a   :  { %29 = dma.hbm_to_vmem [thread:$0]  %s7094_s1, 2048, %s24_s9, [#allocation5], %s4639_s11, %s4639_s11, %s4640_s12  }
  0x1b   :  { %s4641_s15 = smov [#allocation9]   ;;  %s4642_s17 = smov [#allocation10]  }
  0x1c   :  { %s49_s16 = sshll.u32 %s4641_s15, 4  ;;  %s61_s3 = sshll.u32 %s4642_s17, 4  ;;  %s50_s16 = int_to_ptr.vmem [resolvable:$true] %s49_s16  ;;  %s62_s3 = int_to_ptr.vmem [resolvable:$true] %s61_s3 }
  0x1d   :  { %s4575_s18 = scalar_lea.vmem %s50_s16, 8192  ;;  %p4580_p11 = scmp.lt.s32.totalorder %s50_s16, %s50_s16 }
  0x1e   :  { %p4576_p10 = scmp.ne.s32.totalorder %s50_s16, %s4575_s18  ;;  %p4581_p12 = scmp.lt.s32.totalorder %s4575_s18, %s4575_s18 }
  0x20   :  { %p4582_p13 = por %p4581_p12, %p4580_p11 }
  0x22   :  { %p4583_p0 = pnand %p4582_p13, %p4576_p10 }
  0x24   :  { %4586 = shalt.err (!%p4583_p0)
}
  0x25   :  { %55 = dma.hbm_to_vmem [thread:$0]  %s7097_s4, 8192, %s50_s16, [#allocation8], %s4636_s27, %s4636_s27, %s4637_s28  }
  0x26   :  { %s4595_s1 = scalar_lea.vmem %s62_s3, 4096  ;;  %p4600_p2 = scmp.lt.s32.totalorder %s62_s3, %s62_s3 }
  0x27   :  { %p4596_p1 = scmp.ne.s32.totalorder %s62_s3, %s4595_s1  ;;  %p4601_p3 = scmp.lt.s32.totalorder %s4595_s1, %s4595_s1 }
  0x29   :  { %p4602_p4 = por %p4601_p3, %p4600_p2 }
  0x2b   :  { %p4603_p5 = pnand %p4602_p4, %p4596_p1 }
  0x2d   :  { %4606 = shalt.err (!%p4603_p5)
}
  0x2e   :  { %s4643_s21 = smov 128   ;;  %s4644_s22 = smov 8  }
  0x2f   :  { %67 = dma.hbm_to_vmem [thread:$0]  %s7098_s5, 4096, %s62_s3, [#allocation11], %s4643_s21, %s4643_s21, %s4644_s22  }
  0x30   :  { %4627 = dma.done.wait [#allocation5], 2048  }
  0x31   :  { %4628 = vsyncadd [#allocation5], 4294965248 }
  0x32   :  { %4629 = dma.done.wait [#allocation8], 16384  }
  0x33   :  { %4630 = vsyncadd [#allocation8], 4294950912 }
  0x34   :  { %4631 = dma.done.wait [#allocation11], 4096  }
  0x35   :  { %4632 = vsyncadd [#allocation11], 4294963200  ;;  %v7128_v0 = vmov 0.0   ;;  %v99_v1 = vld [vmem:[#allocation4 + $0x48] sm:$0xff]  ;;  %v98_v3 = vld [vmem:[#allocation4 + $0x40] sm:$0xff]  ;;  %vm148_vm0 = vcmask 130048  }
  0x36   :  { %237 = vmatprep.mubr.f32.mxu1 %v7128_v0  ;;  %463 = vmatprep.mubr.f32.mxu0 %v7128_v0  ;;  %v103_v2 = vld [vmem:[#allocation4 + $0x68] sm:$0xff]  ;;  %v102_v4 = vld [vmem:[#allocation4 + $0x60] sm:$0xff]  ;;  %v101_v10 = vld [vmem:[#allocation4 + $0x58] sm:$0xff] }
  0x37   :  { %201 = vmatprep.subr.mxu1 %v99_v1  ;;  %427 = vmatprep.subr.mxu0 %v103_v2  ;;  %v91_v5 = vld [vmem:[#allocation4 + $0x8] sm:$0xff]  ;;  %v90_v7 = vld [vmem:[#allocation4] sm:$0xff]  ;;  %v100_v12 = vld [vmem:[#allocation4 + $0x50] sm:$0xff] }
  0x38   :  { %v95_v6 = vld [vmem:[#allocation4 + $0x28] sm:$0xff]  ;;  %202 = vmatpush1.msra.mxu1 %v98_v3  ;;  %428 = vmatpush1.msra.mxu0 %v102_v4  ;;  %v94_v8 = vld [vmem:[#allocation4 + $0x20] sm:$0xff]  ;;  %v93_v20 = vld [vmem:[#allocation4 + $0x18] sm:$0xff] }
  0x39   :  { %v4713_v9 = vld [vmem:[%s7093_s0] sm:$0xff]  ;;  %203 = vmatprep.subr.mxu1 %v91_v5  ;;  %429 = vmatprep.subr.mxu0 %v95_v6  ;;  %v4715_v11 = vld [vmem:[#allocation7 + $0x1e8] sm:$0xff]  ;;  %v4755_v22 = vld [vmem:[%s7093_s0 + $0x10] sm:$0xff] }
  0x3a   :  { %204 = vmatpush1.msra.mxu1 %v90_v7  ;;  %430 = vmatpush1.msra.mxu0 %v94_v8  ;;  %v4717_v13 = vld [vmem:[#allocation7 + $0x1e0] sm:$0xff]  ;;  %v4721_v14 = vld [vmem:[#allocation7 + $0x1c8] sm:$0xff]  ;;  %v4777_v27 = vld [vmem:[%s7093_s0 + $0x18] sm:$0xff] }
  0x3b   :  { %3866 = vmatmul.mubr.msk.f32.vlgmr.msra.gmra.mxu1 %vm148_vm0, %v4713_v9  ;;  %314 = vmatprep.subr.mxu1 %v101_v10  ;;  %v4726_v15 = vld [vmem:[#allocation7 + $0x1c0] sm:$0xff]  ;;  %v4732_v16 = vld [vmem:[%s7093_s0 + $0x8] sm:$0xff]  ;;  %v92_v34 = vld [vmem:[#allocation4 + $0x10] sm:$0xff] }
  0x3c   :  { %3882 = vmatmul.mubr.msk.f32.vlgmr.msra.gmra.mxu0 %vm148_vm0, %v4713_v9  ;;  %824 = vmatprep.subr.mxu0 %v4715_v11  ;;  %v4736_v17 = vld [vmem:[#allocation7 + $0x1a8] sm:$0xff]  ;;  %v4740_v18 = vld [vmem:[#allocation7 + $0x1a0] sm:$0xff]  ;;  %v105_v42 = vld [vmem:[#allocation4 + $0x78] sm:$0xff] }
  0x3d   :  { %315 = vmatpush1.msra.mxu1 %v100_v12  ;;  %825 = vmatpush1.msra.mxu0 %v4717_v13  ;;  %v4746_v19 = vld [vmem:[#allocation7 + $0x188] sm:$0xff]  ;;  %v4750_v21 = vld [vmem:[#allocation7 + $0x180] sm:$0xff]  ;;  %v4847_v44 = vld [vmem:[%s7093_s0 + $0x30] sm:$0xff] }
  0x3e   :  { %826 = vmatprep.subr.mxu0 %v4721_v14  ;;  %243 = vmatprep.mubr.f32.mxu1 %v7128_v0  ;;  %v4759_v23 = vld [vmem:[#allocation7 + $0x168] sm:$0xff]  ;;  %v4762_v24 = vld [vmem:[#allocation7 + $0x160] sm:$0xff]  ;;  %v4869_v49 = vld [vmem:[%s7093_s0 + $0x38] sm:$0xff] }
  0x3f   :  { %469 = vmatprep.mubr.f32.mxu0 %v7128_v0  ;;  %827 = vmatpush1.msra.mxu0 %v4726_v15  ;;  %v4767_v25 = vld [vmem:[#allocation7 + $0x148] sm:$0xff]  ;;  %v4772_v26 = vld [vmem:[#allocation7 + $0x140] sm:$0xff]  ;;  %v104_v54 = vld [vmem:[#allocation4 + $0x70] sm:$0xff] }
  0x40   :  { %3867 = vmatmul.mubr.msk.f32.gmra.mxu1 %vm148_vm0, %v4732_v16  ;;  %3883 = vmatmul.mubr.msk.f32.gmra.mxu0 %vm148_vm0, %v4732_v16  ;;  %v4781_v28 = vld [vmem:[#allocation7 + $0x128] sm:$0xff]  ;;  %v4785_v29 = vld [vmem:[#allocation7 + $0x120] sm:$0xff]  ;;  %v97_v57 = vld [vmem:[#allocation4 + $0x38] sm:$0xff] }
  0x41   :  { %828 = vmatprep.subr.mxu0 %v4736_v17  ;;  %249 = vmatprep.mubr.f32.mxu1 %v7128_v0  ;;  %v4790_v30 = vld [vmem:[#allocation7 + $0x108] sm:$0xff]  ;;  %v4795_v31 = vld [vmem:[#allocation7 + $0x100] sm:$0xff]  ;;  %v96_v61 = vld [vmem:[#allocation4 + $0x30] sm:$0xff] }
  0x42   :  { %829 = vmatpush1.msra.mxu0 %v4740_v18  ;;  %475 = vmatprep.mubr.f32.mxu0 %v7128_v0  ;;  %v4800_v32 = vld [vmem:[%s7093_s0 + $0x20] sm:$0xff]  ;;  %v4804_v33 = vld [vmem:[#allocation7 + $0xe8] sm:$0xff]  ;;  %v4915_v63 = vld [vmem:[#allocation7 + $0x1f8] sm:$0xff] }
  0x43   :  { %830 = vmatprep.subr.mxu0 %v4746_v19  ;;  %316 = vmatprep.subr.mxu1 %v93_v20  ;;  %v4808_v35 = vld [vmem:[#allocation7 + $0xe0] sm:$0xff]  ;;  %v4813_v36 = vld [vmem:[#allocation7 + $0xc8] sm:$0xff] }
  0x44   :  { %831 = vmatpush1.msra.mxu0 %v4750_v21  ;;  %3868 = vmatmul.mubr.msk.f32.gmra.mxu1 %vm148_vm0, %v4755_v22  ;;  %v4818_v37 = vld [vmem:[#allocation7 + $0xc0] sm:$0xff]  ;;  %v4824_v38 = vld [vmem:[%s7093_s0 + $0x28] sm:$0xff] }
  0x45   :  { %3884 = vmatmul.mubr.msk.f32.gmra.mxu0 %vm148_vm0, %v4755_v22  ;;  %832 = vmatprep.subr.mxu0 %v4759_v23  ;;  %v4828_v39 = vld [vmem:[#allocation7 + $0xa8] sm:$0xff]  ;;  %v4832_v40 = vld [vmem:[#allocation7 + $0xa0] sm:$0xff] }
  0x46   :  { %833 = vmatpush1.msra.mxu0 %v4762_v24  ;;  %255 = vmatprep.mubr.f32.mxu1 %v7128_v0  ;;  %v4838_v41 = vld [vmem:[#allocation7 + $0x88] sm:$0xff]  ;;  %v4842_v43 = vld [vmem:[#allocation7 + $0x80] sm:$0xff] }
  0x47   :  { %834 = vmatprep.subr.mxu0 %v4767_v25  ;;  %481 = vmatprep.mubr.f32.mxu0 %v7128_v0  ;;  %v4851_v45 = vld [vmem:[#allocation7 + $0x68] sm:$0xff]  ;;  %v4854_v46 = vld [vmem:[#allocation7 + $0x60] sm:$0xff] }
  0x48   :  { %835 = vmatpush1.msra.mxu0 %v4772_v26  ;;  %3869 = vmatmul.mubr.msk.f32.gmra.mxu1 %vm148_vm0, %v4777_v27  ;;  %v4859_v47 = vld [vmem:[#allocation7 + $0x48] sm:$0xff]  ;;  %v4864_v48 = vld [vmem:[#allocation7 + $0x40] sm:$0xff] }
  0x49   :  { %3885 = vmatmul.mubr.msk.f32.gmra.mxu0 %vm148_vm0, %v4777_v27  ;;  %836 = vmatprep.subr.mxu0 %v4781_v28  ;;  %v4873_v50 = vld [vmem:[#allocation7 + $0x28] sm:$0xff]  ;;  %v4877_v51 = vld [vmem:[#allocation7 + $0x20] sm:$0xff] }
  0x4a   :  { %837 = vmatpush1.msra.mxu0 %v4785_v29  ;;  %261 = vmatprep.mubr.f32.mxu1 %v7128_v0  ;;  %v4882_v52 = vld [vmem:[#allocation7 + $0x8] sm:$0xff]  ;;  %v4887_v53 = vld [vmem:[#allocation7] sm:$0xff] }
  0x4b   :  { %838 = vmatprep.subr.mxu0 %v4790_v30  ;;  %487 = vmatprep.mubr.f32.mxu0 %v7128_v0  ;;  %v4893_v55 = vld [vmem:[#allocation9 + $0x1e8] sm:$0xff]  ;;  %v4898_v56 = vld [vmem:[#allocation9 + $0x1e0] sm:$0xff] }
  0x4c   :  { %839 = vmatpush1.msra.mxu0 %v4795_v31  ;;  %3870 = vmatmul.mubr.msk.f32.gmra.mxu1 %vm148_vm0, %v4800_v32  ;;  %v4901_v58 = vld [vmem:[#allocation9 + $0x1c8] sm:$0xff]  ;;  %v4905_v59 = vld [vmem:[#allocation9 + $0x1c0] sm:$0xff] }
  0x4d   :  { %3886 = vmatmul.mubr.msk.f32.gmra.mxu0 %vm148_vm0, %v4800_v32  ;;  %840 = vmatprep.subr.mxu0 %v4804_v33  ;;  %v4908_v60 = vld [vmem:[#allocation9 + $0x1a8] sm:$0xff]  ;;  %v4913_v62 = vld [vmem:[#allocation9 + $0x1a0] sm:$0xff] }
  0x4e   :  { %317 = vmatpush1.msra.mxu1 %v92_v34  ;;  %841 = vmatpush1.msra.mxu0 %v4808_v35  ;;  %7457 = vst [vmem:[#allocation17_spill] sm:$0xff] %v4913_v62  ;;  %v4919_v1 = vld [vmem:[#allocation9 + $0x188] sm:$0xff]  ;;  %v4922_v2 = vld [vmem:[#allocation9 + $0x180] sm:$0xff] }
  0x4f   :  { %842 = vmatprep.subr.mxu0 %v4813_v36  ;;  %267 = vmatprep.mubr.f32.mxu1 %v7128_v0  ;;  %7458 = vst [vmem:[#allocation18_spill] sm:$0xff] %v4919_v1  ;;  %7459 = vst [vmem:[#allocation19_spill] sm:$0xff] %v4922_v2  ;;  %v4925_v3 = vld [vmem:[#allocation9 + $0x168] sm:$0xff]  ;;  %v4931_v4 = vld [vmem:[#allocation9 + $0x160] sm:$0xff] }
  0x50   :  { %493 = vmatprep.mubr.f32.mxu0 %v7128_v0  ;;  %843 = vmatpush1.msra.mxu0 %v4818_v37  ;;  %7460 = vst [vmem:[#allocation20_spill] sm:$0xff] %v4925_v3  ;;  %7461 = vst [vmem:[#allocation21_spill] sm:$0xff] %v4931_v4  ;;  %v4935_v5 = vld [vmem:[#allocation9 + $0x148] sm:$0xff]  ;;  %v4938_v6 = vld [vmem:[#allocation9 + $0x140] sm:$0xff] }
  0x51   :  { %3871 = vmatmul.mubr.msk.f32.gmra.mxu1 %vm148_vm0, %v4824_v38  ;;  %3887 = vmatmul.mubr.msk.f32.gmra.mxu0 %vm148_vm0, %v4824_v38  ;;  %7462 = vst [vmem:[#allocation22_spill] sm:$0xff] %v4935_v5  ;;  %7463 = vst [vmem:[#allocation23_spill] sm:$0xff] %v4938_v6  ;;  %v4942_v7 = vld [vmem:[#allocation9 + $0x128] sm:$0xff]  ;;  %v4947_v8 = vld [vmem:[#allocation9 + $0x120] sm:$0xff] }
  0x52   :  { %844 = vmatprep.subr.mxu0 %v4828_v39  ;;  %273 = vmatprep.mubr.f32.mxu1 %v7128_v0  ;;  %7464 = vst [vmem:[#allocation24_spill] sm:$0xff] %v4942_v7  ;;  %7465 = vst [vmem:[#allocation25_spill] sm:$0xff] %v4947_v8  ;;  %v4951_v10 = vld [vmem:[#allocation9 + $0x108] sm:$0xff]  ;;  %v4954_v12 = vld [vmem:[#allocation9 + $0x100] sm:$0xff] }
  0x53   :  { %845 = vmatpush1.msra.mxu0 %v4832_v40  ;;  %499 = vmatprep.mubr.f32.mxu0 %v7128_v0  ;;  %7466 = vst [vmem:[#allocation26_spill] sm:$0xff] %v4951_v10  ;;  %7467 = vst [vmem:[#allocation27_spill] sm:$0xff] %v4954_v12  ;;  %v4957_v20 = vld [vmem:[#allocation9 + $0xe8] sm:$0xff]  ;;  %v4962_v34 = vld [vmem:[#allocation9 + $0xe0] sm:$0xff] }
  0x54   :  { %846 = vmatprep.subr.mxu0 %v4838_v41  ;;  %540 = vmatprep.subr.mxu1 %v105_v42  ;;  %7468 = vst [vmem:[#allocation28_spill] sm:$0xff] %v4957_v20  ;;  %7469 = vst [vmem:[#allocation29_spill] sm:$0xff] %v4962_v34  ;;  %v4966_v42 = vld [vmem:[#allocation9 + $0xc8] sm:$0xff] }
  0x55   :  { %847 = vmatpush1.msra.mxu0 %v4842_v43  ;;  %3872 = vmatmul.mubr.msk.f32.gmra.mxu1 %vm148_vm0, %v4847_v44  ;;  %7470 = vst [vmem:[#allocation30_spill] sm:$0xff] %v4966_v42 }
  0x56   :  { %3888 = vmatmul.mubr.msk.f32.gmra.mxu0 %vm148_vm0, %v4847_v44  ;;  %848 = vmatprep.subr.mxu0 %v4851_v45 }
  0x57   :  { %849 = vmatpush1.msra.mxu0 %v4854_v46  ;;  %279 = vmatprep.mubr.f32.mxu1 %v7128_v0 }
  0x58   :  { %850 = vmatprep.subr.mxu0 %v4859_v47  ;;  %505 = vmatprep.mubr.f32.mxu0 %v7128_v0 }
  0x59   :  { %851 = vmatpush1.msra.mxu0 %v4864_v48  ;;  %3873 = vmatmul.mubr.msk.f32.gmra.mxu1 %vm148_vm0, %v4869_v49 }
  0x5a   :  { %3889 = vmatmul.mubr.msk.f32.gmra.mxu0 %vm148_vm0, %v4869_v49  ;;  %852 = vmatprep.subr.mxu0 %v4873_v50 }
  0x5b   :  { %853 = vmatpush1.msra.mxu0 %v4877_v51  ;;  %350 = vmatprep.mubr.f32.mxu1 %v7128_v0 }
  0x5c   :  { %854 = vmatprep.subr.mxu0 %v4882_v52  ;;  %888 = vmatprep.mubr.f32.mxu0 %v7128_v0 }
  0x5d   :  { %855 = vmatpush1.msra.mxu0 %v4887_v53  ;;  %3874 = vmatmul.mubr.msk.f32.vlgmr.msra.gmra.mxu1 %vm148_vm0, %v4713_v9 }
  0x5e   :  { %889 = vmatmul.mubr.f32.vlgmr.msra.gmra.mxu0 %v7128_v0  ;;  %541 = vmatpush1.msra.mxu1 %v104_v54  ;;  %v4969_v54 = vld [vmem:[#allocation9 + $0xc0] sm:$0xff] }
  0x5f   :  { %356 = vmatprep.mubr.f32.mxu1 %v7128_v0  ;;  %1001 = vmatprep.subr.mxu0 %v4893_v55  ;;  %7471 = vst [vmem:[#allocation31_spill] sm:$0xff] %v4969_v54 }
  0x60   :  { %1002 = vmatpush1.msra.mxu0 %v4898_v56  ;;  %542 = vmatprep.subr.mxu1 %v97_v57  ;;  %v4972_v57 = vld [vmem:[#allocation9 + $0xa8] sm:$0xff] }
  0x61   :  { %3875 = vmatmul.mubr.msk.f32.gmra.mxu1 %vm148_vm0, %v4732_v16  ;;  %1003 = vmatprep.subr.mxu0 %v4901_v58  ;;  %7472 = vst [vmem:[#allocation32_spill] sm:$0xff] %v4972_v57 }
  0x62   :  { %362 = vmatprep.mubr.f32.mxu1 %v7128_v0  ;;  %1004 = vmatpush1.msra.mxu0 %v4905_v59 }
  0x63   :  { %1005 = vmatprep.subr.mxu0 %v4908_v60  ;;  %543 = vmatpush1.msra.mxu1 %v96_v61  ;;  %v4977_v61 = vld [vmem:[#allocation9 + $0xa0] sm:$0xff] }
  0x64   :  { %1006 = vmatpush1.msra.mxu0 %v4913_v62  ;;  %895 = vmatprep.subr.mxu1 %v4915_v63  ;;  %7473 = vst [vmem:[#allocation33_spill] sm:$0xff] %v4977_v61  ;;  %v5174_v62 = vld [vmem:[#allocation9 + $0x190] sm:$0xff] }
  0x65   :  { %3876 = vmatmul.mubr.msk.f32.gmra.mxu1 %vm148_vm0, %v4755_v22  ;;  %1007 = vmatprep.subr.mxu0 %v4919_v1  ;;  %v5162_v1 = vld [vmem:[#allocation9 + $0x1b8] sm:$0xff] }
  0x66   :  { %368 = vmatprep.mubr.f32.mxu1 %v7128_v0  ;;  %1008 = vmatpush1.msra.mxu0 %v4922_v2  ;;  %v5147_v2 = vld [vmem:[#allocation9 + $0x1f8] sm:$0xff] }
  0x67   :  { %1009 = vmatprep.subr.mxu0 %v4925_v3  ;;  %1065 = vmatprep.mubr.f32.mxu0 %v7128_v0  ;;  %v5130_v3 = vld [vmem:[#allocation7 + $0x38] sm:$0xff]  ;;  %7510 = vst [vmem:[#allocation70_spill] sm:$0xff] %v5147_v2 }
  0x68   :  { %1010 = vmatpush1.msra.mxu0 %v4931_v4  ;;  %v5113_v4 = vld [vmem:[#allocation7 + $0x78] sm:$0xff]  ;;  %7506 = vst [vmem:[#allocation66_spill] sm:$0xff] %v5130_v3 }
  0x69   :  { %3877 = vmatmul.mubr.msk.f32.gmra.mxu1 %vm148_vm0, %v4777_v27  ;;  %1011 = vmatprep.subr.mxu0 %v4935_v5  ;;  %v5096_v5 = vld [vmem:[#allocation7 + $0xb8] sm:$0xff]  ;;  %7502 = vst [vmem:[#allocation62_spill] sm:$0xff] %v5113_v4 }
  0x6a   :  { %374 = vmatprep.mubr.f32.mxu1 %v7128_v0  ;;  %1012 = vmatpush1.msra.mxu0 %v4938_v6  ;;  %v5079_v6 = vld [vmem:[#allocation7 + $0xf8] sm:$0xff]  ;;  %7498 = vst [vmem:[#allocation58_spill] sm:$0xff] %v5096_v5 }
  0x6b   :  { %1013 = vmatprep.subr.mxu0 %v4942_v7  ;;  %v5062_v7 = vld [vmem:[#allocation7 + $0x138] sm:$0xff]  ;;  %7494 = vst [vmem:[#allocation54_spill] sm:$0xff] %v5079_v6 }
  0x6c   :  { %1014 = vmatpush1.msra.mxu0 %v4947_v8  ;;  %v5052_v8 = vld [vmem:[#allocation7 + $0x158] sm:$0xff]  ;;  %7490 = vst [vmem:[#allocation50_spill] sm:$0xff] %v5062_v7 }
  0x6d   :  { %3878 = vmatmul.mubr.msk.f32.gmra.mxu1 %vm148_vm0, %v4800_v32  ;;  %1015 = vmatprep.subr.mxu0 %v4951_v10  ;;  %v5019_v10 = vld [vmem:[#allocation9] sm:$0xff]  ;;  %7488 = vst [vmem:[#allocation48_spill] sm:$0xff] %v5052_v8 }
  0x6e   :  { %380 = vmatprep.mubr.f32.mxu1 %v7128_v0  ;;  %1016 = vmatpush1.msra.mxu0 %v4954_v12  ;;  %v4981_v12 = vld [vmem:[#allocation9 + $0x88] sm:$0xff]  ;;  %7483 = vst [vmem:[#allocation43_spill] sm:$0xff] %v5019_v10 }
  0x6f   :  { %1017 = vmatprep.subr.mxu0 %v4957_v20  ;;  %7474 = vst [vmem:[#allocation34_spill] sm:$0xff] %v4981_v12  ;;  %v4984_v20 = vld [vmem:[#allocation9 + $0x80] sm:$0xff] }
  0x70   :  { %1018 = vmatpush1.msra.mxu0 %v4962_v34  ;;  %7475 = vst [vmem:[#allocation35_spill] sm:$0xff] %v4984_v20  ;;  %v4987_v34 = vld [vmem:[#allocation9 + $0x68] sm:$0xff] }
  0x71   :  { %3879 = vmatmul.mubr.msk.f32.gmra.mxu1 %vm148_vm0, %v4824_v38  ;;  %1019 = vmatprep.subr.mxu0 %v4966_v42  ;;  %7476 = vst [vmem:[#allocation36_spill] sm:$0xff] %v4987_v34  ;;  %v4992_v42 = vld [vmem:[#allocation9 + $0x60] sm:$0xff] }
  0x72   :  { %386 = vmatprep.mubr.f32.mxu1 %v7128_v0  ;;  %1020 = vmatpush1.msra.mxu0 %v4969_v54  ;;  %7477 = vst [vmem:[#allocation37_spill] sm:$0xff] %v4992_v42  ;;  %v4996_v54 = vld [vmem:[#allocation9 + $0x48] sm:$0xff] }
  0x73   :  { %1021 = vmatprep.subr.mxu0 %v4972_v57  ;;  %7478 = vst [vmem:[#allocation38_spill] sm:$0xff] %v4996_v54  ;;  %v4999_v57 = vld [vmem:[#allocation9 + $0x40] sm:$0xff] }
  0x74   :  { %1022 = vmatpush1.msra.mxu0 %v4977_v61  ;;  %7479 = vst [vmem:[#allocation39_spill] sm:$0xff] %v4999_v57  ;;  %v5002_v61 = vld [vmem:[#allocation9 + $0x28] sm:$0xff] }
  0x75   :  { %3880 = vmatmul.mubr.msk.f32.gmra.mxu1 %vm148_vm0, %v4847_v44  ;;  %1023 = vmatprep.subr.mxu0 %v4981_v12  ;;  %7480 = vst [vmem:[#allocation40_spill] sm:$0xff] %v5002_v61  ;;  %v5007_v12 = vld [vmem:[#allocation9 + $0x20] sm:$0xff] }
  0x76   :  { %392 = vmatprep.mubr.f32.mxu1 %v7128_v0  ;;  %1024 = vmatpush1.msra.mxu0 %v4984_v20  ;;  %7481 = vst [vmem:[#allocation41_spill] sm:$0xff] %v5007_v12  ;;  %v5011_v20 = vld [vmem:[#allocation9 + $0x8] sm:$0xff] }
  0x77   :  { %1025 = vmatprep.subr.mxu0 %v4987_v34  ;;  %7482 = vst [vmem:[#allocation42_spill] sm:$0xff] %v5011_v20  ;;  %v5013_v34 = vld [vmem:[#allocation7 + $0x1f0] sm:$0xff] }
  0x78   :  { %1026 = vmatpush1.msra.mxu0 %v4992_v42  ;;  %v5016_v42 = vld [vmem:[#allocation7 + $0x1d8] sm:$0xff] }
  0x79   :  { %3881 = vmatmul.mubr.msk.f32.gmra.mxu1 %vm148_vm0, %v4869_v49  ;;  %1027 = vmatprep.subr.mxu0 %v4996_v54  ;;  %v5023_v54 = vld [vmem:[#allocation7 + $0x1d0] sm:$0xff] }
  0x7a   :  { %576 = vmatprep.mubr.f32.mxu1 %v7128_v0  ;;  %1028 = vmatpush1.msra.mxu0 %v4999_v57  ;;  %v5028_v57 = vld [vmem:[#allocation7 + $0x1b8] sm:$0xff] }
  0x7b   :  { %1029 = vmatprep.subr.mxu0 %v5002_v61  ;;  %v5031_v61 = vld [vmem:[#allocation7 + $0x1b0] sm:$0xff] }
  0x7c   :  { %1030 = vmatpush1.msra.mxu0 %v5007_v12  ;;  %v5035_v12 = vld [vmem:[#allocation7 + $0x198] sm:$0xff] }
  0x7d   :  { %3890 = vmatmul.mubr.msk.f32.vlgmr.msra.gmra.mxu1 %vm148_vm0, %v4713_v9  ;;  %1031 = vmatprep.subr.mxu0 %v5011_v20  ;;  %7484 = vst [vmem:[#allocation44_spill] sm:$0xff] %v5035_v12  ;;  %v5041_v9 = vld [vmem:[#allocation7 + $0x190] sm:$0xff]  ;;  %v5045_v20 = vld [vmem:[#allocation7 + $0x178] sm:$0xff] }
  0x7e   :  { %896 = vmatpush1.msra.mxu1 %v5013_v34  ;;  %582 = vmatprep.mubr.f32.mxu1 %v7128_v0  ;;  %7485 = vst [vmem:[#allocation45_spill] sm:$0xff] %v5041_v9  ;;  %7486 = vst [vmem:[#allocation46_spill] sm:$0xff] %v5045_v20 }
  0x7f   :  { %897 = vmatprep.subr.mxu1 %v5016_v42  ;;  %1032 = vmatpush1.msra.mxu0 %v5019_v10  ;;  %v5048_v10 = vld [vmem:[#allocation7 + $0x170] sm:$0xff] }
  0x80   :  { %898 = vmatpush1.msra.mxu1 %v5023_v54  ;;  %1066 = vmatmul.mubr.f32.vlgmr.msra.gmra.mxu0 %v7128_v0  ;;  %7487 = vst [vmem:[#allocation47_spill] sm:$0xff] %v5048_v10 }
  0x81   :  { %899 = vmatprep.subr.mxu1 %v5028_v57  ;;  %3891 = vmatmul.mubr.msk.f32.gmra.mxu1 %vm148_vm0, %v4732_v16  ;;  %v5058_v16 = vld [vmem:[#allocation7 + $0x150] sm:$0xff] }
  0x82   :  { %900 = vmatpush1.msra.mxu1 %v5031_v61  ;;  %588 = vmatprep.mubr.f32.mxu1 %v7128_v0  ;;  %7489 = vst [vmem:[#allocation49_spill] sm:$0xff] %v5058_v16 }
  0x83   :  { %901 = vmatprep.subr.mxu1 %v5035_v12  ;;  %1186 = vmatprep.subr.mxu0 %v4715_v11  ;;  %v5065_v11 = vld [vmem:[#allocation7 + $0x130] sm:$0xff] }
  0x84   :  { %902 = vmatpush1.msra.mxu1 %v5041_v9  ;;  %1187 = vmatpush1.msra.mxu0 %v4717_v13  ;;  %7491 = vst [vmem:[#allocation51_spill] sm:$0xff] %v5065_v11  ;;  %v5069_v13 = vld [vmem:[#allocation7 + $0x118] sm:$0xff] }
  0x85   :  { %903 = vmatprep.subr.mxu1 %v5045_v20  ;;  %3892 = vmatmul.mubr.msk.f32.gmra.mxu1 %vm148_vm0, %v4755_v22  ;;  %7492 = vst [vmem:[#allocation52_spill] sm:$0xff] %v5069_v13  ;;  %v5075_v22 = vld [vmem:[#allocation7 + $0x110] sm:$0xff] }
  0x86   :  { %904 = vmatpush1.msra.mxu1 %v5048_v10  ;;  %594 = vmatprep.mubr.f32.mxu1 %v7128_v0  ;;  %7493 = vst [vmem:[#allocation53_spill] sm:$0xff] %v5075_v22 }
  0x87   :  { %905 = vmatprep.subr.mxu1 %v5052_v8  ;;  %1188 = vmatprep.subr.mxu0 %v4721_v14  ;;  %v5082_v14 = vld [vmem:[#allocation7 + $0xf0] sm:$0xff] }
  0x88   :  { %906 = vmatpush1.msra.mxu1 %v5058_v16  ;;  %1189 = vmatpush1.msra.mxu0 %v4726_v15  ;;  %7495 = vst [vmem:[#allocation55_spill] sm:$0xff] %v5082_v14  ;;  %v5086_v15 = vld [vmem:[#allocation7 + $0xd8] sm:$0xff] }
  0x89   :  { %907 = vmatprep.subr.mxu1 %v5062_v7  ;;  %3893 = vmatmul.mubr.msk.f32.gmra.mxu1 %vm148_vm0, %v4777_v27  ;;  %7496 = vst [vmem:[#allocation56_spill] sm:$0xff] %v5086_v15  ;;  %v5092_v27 = vld [vmem:[#allocation7 + $0xd0] sm:$0xff] }
  0x8a   :  { %908 = vmatpush1.msra.mxu1 %v5065_v11  ;;  %600 = vmatprep.mubr.f32.mxu1 %v7128_v0  ;;  %7497 = vst [vmem:[#allocation57_spill] sm:$0xff] %v5092_v27 }
  0x8b   :  { %909 = vmatprep.subr.mxu1 %v5069_v13  ;;  %1190 = vmatprep.subr.mxu0 %v4736_v17  ;;  %v5099_v17 = vld [vmem:[#allocation7 + $0xb0] sm:$0xff] }
  0x8c   :  { %910 = vmatpush1.msra.mxu1 %v5075_v22  ;;  %1191 = vmatpush1.msra.mxu0 %v4740_v18  ;;  %7499 = vst [vmem:[#allocation59_spill] sm:$0xff] %v5099_v17  ;;  %v5103_v18 = vld [vmem:[#allocation7 + $0x98] sm:$0xff] }
  0x8d   :  { %911 = vmatprep.subr.mxu1 %v5079_v6  ;;  %3894 = vmatmul.mubr.msk.f32.gmra.mxu1 %vm148_vm0, %v4800_v32  ;;  %7500 = vst [vmem:[#allocation60_spill] sm:$0xff] %v5103_v18  ;;  %v5109_v32 = vld [vmem:[#allocation7 + $0x90] sm:$0xff] }
  0x8e   :  { %912 = vmatpush1.msra.mxu1 %v5082_v14  ;;  %606 = vmatprep.mubr.f32.mxu1 %v7128_v0  ;;  %7501 = vst [vmem:[#allocation61_spill] sm:$0xff] %v5109_v32 }
  0x8f   :  { %913 = vmatprep.subr.mxu1 %v5086_v15  ;;  %1192 = vmatprep.subr.mxu0 %v4746_v19  ;;  %v5116_v19 = vld [vmem:[#allocation7 + $0x70] sm:$0xff] }
  0x90   :  { %914 = vmatpush1.msra.mxu1 %v5092_v27  ;;  %1193 = vmatpush1.msra.mxu0 %v4750_v21  ;;  %7503 = vst [vmem:[#allocation63_spill] sm:$0xff] %v5116_v19  ;;  %v5120_v21 = vld [vmem:[#allocation7 + $0x58] sm:$0xff] }
  0x91   :  { %915 = vmatprep.subr.mxu1 %v5096_v5  ;;  %3895 = vmatmul.mubr.msk.f32.gmra.mxu1 %vm148_vm0, %v4824_v38  ;;  %7504 = vst [vmem:[#allocation64_spill] sm:$0xff] %v5120_v21  ;;  %v5126_v38 = vld [vmem:[#allocation7 + $0x50] sm:$0xff] }
  0x92   :  { %916 = vmatpush1.msra.mxu1 %v5099_v17  ;;  %612 = vmatprep.mubr.f32.mxu1 %v7128_v0  ;;  %7505 = vst [vmem:[#allocation65_spill] sm:$0xff] %v5126_v38 }
  0x93   :  { %917 = vmatprep.subr.mxu1 %v5103_v18  ;;  %1194 = vmatprep.subr.mxu0 %v4759_v23  ;;  %v5133_v23 = vld [vmem:[#allocation7 + $0x30] sm:$0xff] }
  0x94   :  { %918 = vmatpush1.msra.mxu1 %v5109_v32  ;;  %1195 = vmatpush1.msra.mxu0 %v4762_v24  ;;  %7507 = vst [vmem:[#allocation67_spill] sm:$0xff] %v5133_v23  ;;  %v5137_v24 = vld [vmem:[#allocation7 + $0x18] sm:$0xff] }
  0x95   :  { %919 = vmatprep.subr.mxu1 %v5113_v4  ;;  %3896 = vmatmul.mubr.msk.f32.gmra.mxu1 %vm148_vm0, %v4847_v44  ;;  %7508 = vst [vmem:[#allocation68_spill] sm:$0xff] %v5137_v24  ;;  %v5143_v44 = vld [vmem:[#allocation7 + $0x10] sm:$0xff] }
  0x96   :  { %920 = vmatpush1.msra.mxu1 %v5116_v19  ;;  %618 = vmatprep.mubr.f32.mxu1 %v7128_v0  ;;  %7509 = vst [vmem:[#allocation69_spill] sm:$0xff] %v5143_v44 }
  0x97   :  { %921 = vmatprep.subr.mxu1 %v5120_v21  ;;  %1196 = vmatprep.subr.mxu0 %v4767_v25  ;;  %v5150_v25 = vld [vmem:[#allocation9 + $0x1f0] sm:$0xff] }
  0x98   :  { %922 = vmatpush1.msra.mxu1 %v5126_v38  ;;  %1197 = vmatpush1.msra.mxu0 %v4772_v26  ;;  %v5154_v26 = vld [vmem:[#allocation9 + $0x1d8] sm:$0xff] }
  0x99   :  { %923 = vmatprep.subr.mxu1 %v5130_v3  ;;  %3897 = vmatmul.mubr.msk.f32.gmra.mxu1 %vm148_vm0, %v4869_v49  ;;  %v5159_v49 = vld [vmem:[#allocation9 + $0x1d0] sm:$0xff] }
  0x9a   :  { %924 = vmatpush1.msra.mxu1 %v5133_v23  ;;  %959 = vmatprep.mubr.f32.mxu1 %v7128_v0 }
  0x9b   :  { %925 = vmatprep.subr.mxu1 %v5137_v24  ;;  %1198 = vmatprep.subr.mxu0 %v4781_v28  ;;  %v5166_v28 = vld [vmem:[#allocation9 + $0x1b0] sm:$0xff] }
  0x9c   :  { %926 = vmatpush1.msra.mxu1 %v5143_v44  ;;  %1199 = vmatpush1.msra.mxu0 %v4785_v29  ;;  %v5170_v29 = vld [vmem:[#allocation9 + $0x198] sm:$0xff] }
  0x9d   :  { %1072 = vmatprep.subr.mxu1 %v5147_v2  ;;  %960 = vmatmul.mubr.f32.vlgmr.msra.gmra.mxu1 %v7128_v0 }
  0x9e   :  { %1073 = vmatpush1.msra.mxu1 %v5150_v25  ;;  %1136 = vmatprep.mubr.f32.mxu1 %v7128_v0  ;;  %v5178_v0 = vld [vmem:[#allocation9 + $0x178] sm:$0xff] }
  0x9f   :  { %1074 = vmatprep.subr.mxu1 %v5154_v26  ;;  %1200 = vmatprep.subr.mxu0 %v4790_v30  ;;  %v5182_v30 = vld [vmem:[#allocation9 + $0x170] sm:$0xff] }
  0xa0   :  { %1075 = vmatpush1.msra.mxu1 %v5159_v49  ;;  %1201 = vmatpush1.msra.mxu0 %v4795_v31  ;;  %v5186_v31 = vld [vmem:[#allocation9 + $0x158] sm:$0xff] }
  0xa1   :  { %1076 = vmatprep.subr.mxu1 %v5162_v1  ;;  %1202 = vmatprep.subr.mxu0 %v4804_v33  ;;  %v5190_v33 = vld [vmem:[#allocation9 + $0x150] sm:$0xff] }
  0xa2   :  { %1077 = vmatpush1.msra.mxu1 %v5166_v28  ;;  %1203 = vmatpush1.msra.mxu0 %v4808_v35  ;;  %v5194_v35 = vld [vmem:[#allocation9 + $0x138] sm:$0xff] }
  0xa3   :  { %1078 = vmatprep.subr.mxu1 %v5170_v29  ;;  %1204 = vmatprep.subr.mxu0 %v4813_v36  ;;  %v5198_v36 = vld [vmem:[#allocation9 + $0x130] sm:$0xff] }
  0xa4   :  { %1079 = vmatpush1.msra.mxu1 %v5174_v62  ;;  %1205 = vmatpush1.msra.mxu0 %v4818_v37  ;;  %v5202_v37 = vld [vmem:[#allocation9 + $0x118] sm:$0xff] }
  0xa5   :  { %1080 = vmatprep.subr.mxu1 %v5178_v0  ;;  %1206 = vmatprep.subr.mxu0 %v4828_v39  ;;  %v5206_v39 = vld [vmem:[#allocation9 + $0x110] sm:$0xff] }
  0xa6   :  { %1081 = vmatpush1.msra.mxu1 %v5182_v30  ;;  %1207 = vmatpush1.msra.mxu0 %v4832_v40  ;;  %v5210_v40 = vld [vmem:[#allocation9 + $0xf8] sm:$0xff] }
  0xa7   :  { %1082 = vmatprep.subr.mxu1 %v5186_v31  ;;  %1208 = vmatprep.subr.mxu0 %v4838_v41  ;;  %v5214_v41 = vld [vmem:[#allocation9 + $0xf0] sm:$0xff] }
  0xa8   :  { %1083 = vmatpush1.msra.mxu1 %v5190_v33  ;;  %1209 = vmatpush1.msra.mxu0 %v4842_v43  ;;  %7511 = vst [vmem:[#allocation71_spill] sm:$0xff] %v5214_v41  ;;  %v5218_v43 = vld [vmem:[#allocation9 + $0xd8] sm:$0xff] }
  0xa9   :  { %1084 = vmatprep.subr.mxu1 %v5194_v35  ;;  %1210 = vmatprep.subr.mxu0 %v4851_v45  ;;  %v5222_v45 = vld [vmem:[#allocation9 + $0xd0] sm:$0xff] }
  0xaa   :  { %1085 = vmatpush1.msra.mxu1 %v5198_v36  ;;  %1211 = vmatpush1.msra.mxu0 %v4854_v46  ;;  %7512 = vst [vmem:[#allocation72_spill] sm:$0xff] %v5222_v45  ;;  %v5226_v46 = vld [vmem:[#allocation9 + $0xb8] sm:$0xff] }
  0xab   :  { %1086 = vmatprep.subr.mxu1 %v5202_v37  ;;  %1212 = vmatprep.subr.mxu0 %v4859_v47  ;;  %7513 = vst [vmem:[#allocation73_spill] sm:$0xff] %v5226_v46  ;;  %v5230_v47 = vld [vmem:[#allocation9 + $0xb0] sm:$0xff] }
  0xac   :  { %1087 = vmatpush1.msra.mxu1 %v5206_v39  ;;  %1213 = vmatpush1.msra.mxu0 %v4864_v48  ;;  %7514 = vst [vmem:[#allocation74_spill] sm:$0xff] %v5230_v47  ;;  %v5234_v48 = vld [vmem:[#allocation9 + $0x98] sm:$0xff] }
  0xad   :  { %1088 = vmatprep.subr.mxu1 %v5210_v40  ;;  %1214 = vmatprep.subr.mxu0 %v4873_v50  ;;  %v5238_v50 = vld [vmem:[#allocation9 + $0x90] sm:$0xff] }
  0xae   :  { %1089 = vmatpush1.msra.mxu1 %v5214_v41  ;;  %1215 = vmatpush1.msra.mxu0 %v4877_v51  ;;  %7515 = vst [vmem:[#allocation75_spill] sm:$0xff] %v5238_v50  ;;  %v7516_v41 = vmov 0.0   ;;  %v5242_v51 = vld [vmem:[#allocation9 + $0x78] sm:$0xff] }
  0xaf   :  { %1090 = vmatprep.subr.mxu1 %v5218_v43  ;;  %1216 = vmatprep.subr.mxu0 %v4882_v52  ;;  %v5246_v52 = vld [vmem:[#allocation9 + $0x70] sm:$0xff] }
  0xb0   :  { %1091 = vmatpush1.msra.mxu1 %v5222_v45  ;;  %1217 = vmatpush1.msra.mxu0 %v4887_v53  ;;  %v5249_v45 = vld [vmem:[#allocation9 + $0x58] sm:$0xff]  ;;  %v5252_v53 = vld [vmem:[#allocation9 + $0x50] sm:$0xff] }
  0xb1   :  { %1092 = vmatprep.subr.mxu1 %v5226_v46  ;;  %1250 = vmatprep.mubr.f32.mxu0 %v7516_v41  ;;  %v5255_v46 = vld [vmem:[#allocation9 + $0x38] sm:$0xff] }
  0xb2   :  { %1093 = vmatpush1.msra.mxu1 %v5230_v47  ;;  %1363 = vmatprep.subr.mxu0 %v4893_v55  ;;  %v5258_v47 = vld [vmem:[#allocation9 + $0x30] sm:$0xff]  ;;  %v5261_v55 = vld [vmem:[#allocation9 + $0x18] sm:$0xff] }
  0xb3   :  { %1094 = vmatprep.subr.mxu1 %v5234_v48 }
  0xb4   :  { %1095 = vmatpush1.msra.mxu1 %v5238_v50  ;;  %v5264_v50 = vld [vmem:[#allocation9 + $0x10] sm:$0xff] }
  0xb5   :  { %1096 = vmatprep.subr.mxu1 %v5242_v51 }
  0xb6   :  { %1097 = vmatpush1.msra.mxu1 %v5246_v52 }
  0xb7   :  { %1098 = vmatprep.subr.mxu1 %v5249_v45 }
  0xb8   :  { %1099 = vmatpush1.msra.mxu1 %v5252_v53 }
  0xb9   :  { %1100 = vmatprep.subr.mxu1 %v5255_v46 }
  0xba   :  { %1101 = vmatpush1.msra.mxu1 %v5258_v47 }
  0xbb   :  { %1102 = vmatprep.subr.mxu1 %v5261_v55 }
  0xbc   :  { %1103 = vmatpush1.msra.mxu1 %v5264_v50 }
  0xbd   :  { %1137 = vmatmul.mubr.f32.vlgmr.msra.gmra.mxu1 %v7516_v41  ;;  %1257 = vmatprep.subr.mxu1 %v4915_v63  ;;  %v108_v63 = vlaneseq }
  0xbe   :  { %1258 = vmatpush1.msra.mxu1 %v5013_v34  ;;  %1321 = vmatprep.mubr.f32.mxu1 %v7516_v41 }
  0xbf   :  { %1259 = vmatprep.subr.mxu1 %v5016_v42 }
  0xc0   :  { %1260 = vmatpush1.msra.mxu1 %v5023_v54 }
  0xc1   :  { %1261 = vmatprep.subr.mxu1 %v5028_v57 }
  0xc2   :  { %1262 = vmatpush1.msra.mxu1 %v5031_v61 }
  0xc3   :  { %1263 = vmatprep.subr.mxu1 %v5035_v12 }
  0xc4   :  { %1264 = vmatpush1.msra.mxu1 %v5041_v9 }
  0xc5   :  { %1265 = vmatprep.subr.mxu1 %v5045_v20 }
  0xc6   :  { %1266 = vmatpush1.msra.mxu1 %v5048_v10 }
  0xc7   :  { %1267 = vmatprep.subr.mxu1 %v5052_v8 }
  0xc8   :  { %1268 = vmatpush1.msra.mxu1 %v5058_v16 }
  0xc9   :  { %1269 = vmatprep.subr.mxu1 %v5062_v7 }
  0xca   :  { %1270 = vmatpush1.msra.mxu1 %v5065_v11 }
  0xcb   :  { %1271 = vmatprep.subr.mxu1 %v5069_v13 }
  0xcc   :  { %1272 = vmatpush1.msra.mxu1 %v5075_v22 }
  0xcd   :  { %1273 = vmatprep.subr.mxu1 %v5079_v6 }
  0xce   :  { %1274 = vmatpush1.msra.mxu1 %v5082_v14 }
  0xcf   :  { %1275 = vmatprep.subr.mxu1 %v5086_v15 }
  0xd0   :  { %1276 = vmatpush1.msra.mxu1 %v5092_v27 }
  0xd1   :  { %1277 = vmatprep.subr.mxu1 %v5096_v5 }
  0xd2   :  { %1278 = vmatpush1.msra.mxu1 %v5099_v17 }
  0xd3   :  { %1279 = vmatprep.subr.mxu1 %v5103_v18 }
  0xd4   :  { %1280 = vmatpush1.msra.mxu1 %v5109_v32  ;;  %v5304_v32 = vshrl.u32 %v108_v63, 7 }
  0xd5   :  { %1281 = vmatprep.subr.mxu1 %v5113_v4 }
  0xd6   :  { %1282 = vmatpush1.msra.mxu1 %v5116_v19  ;;  %v126_v4 = vsub.s32 4, %v5304_v32  ;;  %v130_v19 = vsub.s32 5, %v5304_v32 }
  0xd7   :  { %1283 = vmatprep.subr.mxu1 %v5120_v21  ;;  %v114_v21 = vsub.s32 1, %v5304_v32 }
  0xd8   :  { %1284 = vmatpush1.msra.mxu1 %v5126_v38  ;;  %v5311_v38 = vld [vmem:[%s7095_s2] sm:$0xff] }
  0xd9   :  { %1285 = vmatprep.subr.mxu1 %v5130_v3 }
  0xda   :  { %1286 = vmatpush1.msra.mxu1 %v5133_v23  ;;  %v5314_v23 = vrot.slane %v5311_v38, %v126_v4 }
  0xdb   :  { %1287 = vmatprep.subr.mxu1 %v5137_v24  ;;  %v110_v24 = vsub.s32 0, %v5304_v32 }
  0xdc   :  { %1288 = vmatpush1.msra.mxu1 %v5143_v44 }
  0xdd   :  { %1434 = vmatprep.subr.mxu1 %v5147_v2  ;;  %v5320_v2 = vrot.slane %v5311_v38, %v130_v19  ;;  %v5329_v5 = vrot.slane %v5311_v38, %v110_v24  ;;  %v5335_v19 = vrot.slane %v5311_v38, %v114_v21 }
  0xfb   :  { %v5317_v44 = vpop.f32.mrf.mxu1 }
  0xfc   :  { %v465_v63 = vpop.f32.mrf.mxu0 }
  0xfd   :  { %v5323_v3 = vadd.f32 %v465_v63, %v5314_v23  ;;  %v5326_v18 = vpop.f32.mrf.mxu1 }
  0xfe   :  { %v467_v17 = vpop.f32.mrf.mxu0 }
  0xff   :  { %7517 = vst [vmem:[#allocation76_spill] sm:$0xff] %v5323_v3  ;;  %v5332_v4 = vadd.f32 %v467_v17, %v5320_v2 }
 0x100   :  { %v245_v27 = vpop.f32.mrf.mxu1  ;;  %v471_v15 = vpop.f32.mrf.mxu0 }
 0x101   :  { %7518 = vst [vmem:[#allocation77_spill] sm:$0xff] %v5332_v4  ;;  %v5338_v14 = vadd.f32 %v245_v27, %v5329_v5  ;;  %v5341_v63 = vadd.f32 %v471_v15, %v5314_v23 }
 0x102   :  { %v247_v3 = vpop.f32.mrf.mxu1  ;;  %v473_v6 = vpop.f32.mrf.mxu0 }
 0x103   :  { %7519 = vst [vmem:[#allocation78_spill] sm:$0xff] %v5338_v14  ;;  %7520 = vst [vmem:[#allocation79_spill] sm:$0xff] %v5341_v63  ;;  %v5344_v22 = vadd.f32 %v247_v3, %v5335_v19  ;;  %v5347_v24 = vadd.f32 %v473_v6, %v5320_v2 }
 0x104   :  { %v251_v17 = vpop.f32.mrf.mxu1 }
 0x105   :  { %7521 = vst [vmem:[#allocation80_spill] sm:$0xff] %v5344_v22  ;;  %7522 = vst [vmem:[#allocation81_spill] sm:$0xff] %v5347_v24  ;;  %v5350_v4 = vadd.f32 %v251_v17, %v5329_v5  ;;  %v477_v21 = vpop.f32.mrf.mxu0 }
 0x106   :  { %v5353_v13 = vadd.f32 %v477_v21, %v5314_v23  ;;  %v253_v27 = vpop.f32.mrf.mxu1 }
 0x107   :  { %7523 = vst [vmem:[#allocation82_spill] sm:$0xff] %v5350_v4  ;;  %v5356_v15 = vadd.f32 %v253_v27, %v5335_v19  ;;  %v479_v63 = vpop.f32.mrf.mxu0 }
 0x108   :  { %7524 = vst [vmem:[#allocation83_spill] sm:$0xff] %v5353_v13  ;;  %v5359_v14 = vadd.f32 %v479_v63, %v5320_v2  ;;  %v257_v3 = vpop.f32.mrf.mxu1 }
 0x109   :  { %7525 = vst [vmem:[#allocation84_spill] sm:$0xff] %v5356_v15  ;;  %v5362_v6 = vadd.f32 %v257_v3, %v5329_v5  ;;  %v483_v24 = vpop.f32.mrf.mxu0 }
 0x10a   :  { %7526 = vst [vmem:[#allocation85_spill] sm:$0xff] %v5359_v14  ;;  %v5365_v17 = vadd.f32 %v483_v24, %v5314_v23  ;;  %v259_v4 = vpop.f32.mrf.mxu1 }
 0x10b   :  { %7527 = vst [vmem:[#allocation86_spill] sm:$0xff] %v5362_v6  ;;  %v5368_v21 = vadd.f32 %v259_v4, %v5335_v19  ;;  %v485_v13 = vpop.f32.mrf.mxu0 }
 0x10c   :  { %7528 = vst [vmem:[#allocation87_spill] sm:$0xff] %v5365_v17  ;;  %v5371_v27 = vadd.f32 %v485_v13, %v5320_v2  ;;  %v263_v15 = vpop.f32.mrf.mxu1 }
 0x10d   :  { %7529 = vst [vmem:[#allocation88_spill] sm:$0xff] %v5368_v21  ;;  %v5374_v63 = vadd.f32 %v263_v15, %v5329_v5  ;;  %v489_v14 = vpop.f32.mrf.mxu0 }
 0x10e   :  { %7530 = vst [vmem:[#allocation89_spill] sm:$0xff] %v5371_v27  ;;  %v5377_v3 = vadd.f32 %v489_v14, %v5314_v23  ;;  %v265_v6 = vpop.f32.mrf.mxu1 }
 0x10f   :  { %7531 = vst [vmem:[#allocation90_spill] sm:$0xff] %v5374_v63  ;;  %v5380_v24 = vadd.f32 %v265_v6, %v5335_v19  ;;  %v491_v17 = vpop.f32.mrf.mxu0 }
 0x110   :  { %7532 = vst [vmem:[#allocation91_spill] sm:$0xff] %v5377_v3  ;;  %v5383_v4 = vadd.f32 %v491_v17, %v5320_v2 }
 0x111   :  { %7533 = vst [vmem:[#allocation92_spill] sm:$0xff] %v5380_v24  ;;  %v269_v21 = vpop.f32.mrf.mxu1  ;;  %v495_v22 = vpop.f32.mrf.mxu0 }
 0x112   :  { %7534 = vst [vmem:[#allocation93_spill] sm:$0xff] %v5383_v4  ;;  %v5386_v13 = vadd.f32 %v269_v21, %v5329_v5  ;;  %v5389_v15 = vadd.f32 %v495_v22, %v5314_v23 }
 0x113   :  { %v271_v27 = vpop.f32.mrf.mxu1  ;;  %v497_v63 = vpop.f32.mrf.mxu0 }
 0x114   :  { %7535 = vst [vmem:[#allocation94_spill] sm:$0xff] %v5386_v13  ;;  %7536 = vst [vmem:[#allocation95_spill] sm:$0xff] %v5389_v15  ;;  %v5392_v14 = vadd.f32 %v271_v27, %v5335_v19  ;;  %v5395_v6 = vadd.f32 %v497_v63, %v5320_v2 }
 0x115   :  { %v275_v24 = vpop.f32.mrf.mxu1 }
 0x116   :  { %7537 = vst [vmem:[#allocation96_spill] sm:$0xff] %v5392_v14  ;;  %7538 = vst [vmem:[#allocation97_spill] sm:$0xff] %v5395_v6  ;;  %v5398_v17 = vadd.f32 %v275_v24, %v5329_v5  ;;  %v501_v4 = vpop.f32.mrf.mxu0  ;;  %v122_v6 = vsub.s32 3, %v5304_v32 }
 0x117   :  { %v5401_v3 = vadd.f32 %v501_v4, %v5314_v23  ;;  %v277_v21 = vpop.f32.mrf.mxu1 }
 0x118   :  { %7539 = vst [vmem:[#allocation98_spill] sm:$0xff] %v5398_v17  ;;  %v5404_v22 = vadd.f32 %v277_v21, %v5335_v19  ;;  %v503_v13 = vpop.f32.mrf.mxu0  ;;  %v118_v17 = vsub.s32 2, %v5304_v32 }
 0x119   :  { %7540 = vst [vmem:[#allocation99_spill] sm:$0xff] %v5401_v3  ;;  %v5407_v15 = vadd.f32 %v503_v13, %v5320_v2  ;;  %v281_v27 = vpop.f32.mrf.mxu1 }
 0x11a   :  { %7541 = vst [vmem:[#allocation100_spill] sm:$0xff] %v5404_v22  ;;  %v5410_v63 = vadd.f32 %v281_v27, %v5329_v5  ;;  %v5422_v22 = vrot.slane %v5311_v38, %v118_v17 }
 0x11b   :  { %7542 = vst [vmem:[#allocation101_spill] sm:$0xff] %v5407_v15  ;;  %v283_v14 = vpop.f32.mrf.mxu1  ;;  %v5425_v15 = vrot.slane %v5311_v38, %v122_v6 }
 0x11c   :  { %7543 = vst [vmem:[#allocation102_spill] sm:$0xff] %v5410_v63  ;;  %v5413_v24 = vadd.f32 %v283_v14, %v5335_v19 }
 0x11d   :  { %v5416_v4 = vpop.f32.mrf.mxu1 }
 0x11e   :  { %7544 = vst [vmem:[#allocation103_spill] sm:$0xff] %v5413_v24 }
 0x11f   :  { %v5419_v21 = vpop.f32.mrf.mxu1 }
 0x121   :  { %v358_v13 = vpop.f32.mrf.mxu1 }
 0x122   :  { %v5428_v27 = vadd.f32 %v358_v13, %v5422_v22 }
 0x123   :  { %v360_v14 = vpop.f32.mrf.mxu1 }
 0x124   :  { %7545 = vst [vmem:[#allocation104_spill] sm:$0xff] %v5428_v27  ;;  %v5431_v24 = vadd.f32 %v360_v14, %v5425_v15 }
 0x125   :  { %v364_v63 = vpop.f32.mrf.mxu1 }
 0x126   :  { %7546 = vst [vmem:[#allocation105_spill] sm:$0xff] %v5431_v24  ;;  %v5434_v3 = vadd.f32 %v364_v63, %v5422_v22 }
 0x127   :  { %v366_v11 = vpop.f32.mrf.mxu1 }
 0x128   :  { %7547 = vst [vmem:[#allocation106_spill] sm:$0xff] %v5434_v3  ;;  %v5437_v7 = vadd.f32 %v366_v11, %v5425_v15 }
 0x129   :  { %v370_v17 = vpop.f32.mrf.mxu1 }
 0x12a   :  { %7548 = vst [vmem:[#allocation107_spill] sm:$0xff] %v5437_v7  ;;  %v5440_v16 = vadd.f32 %v370_v17, %v5422_v22  ;;  %v5454_v7 = vpop.f32.mrf.mxu0 }
 0x12b   :  { %v372_v6 = vpop.f32.mrf.mxu1 }
 0x12c   :  { %7549 = vst [vmem:[#allocation108_spill] sm:$0xff] %v5440_v16  ;;  %v5443_v13 = vadd.f32 %v372_v6, %v5425_v15 }
 0x12d   :  { %v376_v27 = vpop.f32.mrf.mxu1 }
 0x12e   :  { %7550 = vst [vmem:[#allocation109_spill] sm:$0xff] %v5443_v13  ;;  %v5446_v14 = vadd.f32 %v376_v27, %v5422_v22  ;;  %v134_v27 = vsub.s32 6, %v5304_v32 }
 0x12f   :  { %v378_v24 = vpop.f32.mrf.mxu1 }
 0x130   :  { %7551 = vst [vmem:[#allocation110_spill] sm:$0xff] %v5446_v14  ;;  %v5449_v63 = vadd.f32 %v378_v24, %v5425_v15  ;;  %v509_v14 = vpop.f32.mrf.mxu0 }
 0x131   :  { %v382_v3 = vpop.f32.mrf.mxu1 }
 0x132   :  { %7552 = vst [vmem:[#allocation111_spill] sm:$0xff] %v5449_v63  ;;  %v5452_v11 = vadd.f32 %v382_v3, %v5422_v22  ;;  %v138_v3 = vsub.s32 7, %v5304_v32 }
 0x133   :  { %v384_v17 = vpop.f32.mrf.mxu1 }
 0x134   :  { %7553 = vst [vmem:[#allocation112_spill] sm:$0xff] %v5452_v11  ;;  %v5457_v16 = vadd.f32 %v384_v17, %v5425_v15  ;;  %v5471_v17 = vrot.slane %v5311_v38, %v134_v27 }
 0x135   :  { %v388_v6 = vpop.f32.mrf.mxu1 }
 0x136   :  { %7554 = vst [vmem:[#allocation113_spill] sm:$0xff] %v5457_v16  ;;  %v5460_v13 = vadd.f32 %v388_v6, %v5422_v22  ;;  %v890_v16 = vpop.f32.mrf.mxu0 }
 0x137   :  { %v390_v8 = vpop.f32.mrf.mxu1 }
 0x138   :  { %7555 = vst [vmem:[#allocation114_spill] sm:$0xff] %v5460_v13  ;;  %v5464_v24 = vadd.f32 %v390_v8, %v5425_v15  ;;  %v5477_v13 = vrot.slane %v5311_v38, %v138_v3  ;;  %v892_v32 = vpop.f32.mrf.mxu0 }
 0x139   :  { %v394_v11 = vpop.f32.mrf.mxu1 }
 0x13a   :  { %7556 = vst [vmem:[#allocation115_spill] sm:$0xff] %v5464_v24  ;;  %v5468_v63 = vadd.f32 %v394_v11, %v5422_v22  ;;  %v242_v11 = vadd.f32 %v5326_v18, %v5335_v19 }
 0x13b   :  { %v396_v10 = vpop.f32.mrf.mxu1 }
 0x13c   :  { %7557 = vst [vmem:[#allocation116_spill] sm:$0xff] %v5468_v63  ;;  %v5474_v6 = vadd.f32 %v396_v10, %v5425_v15  ;;  %v240_v63 = vadd.f32 %v5317_v44, %v5329_v5 }
 0x13d   :  { %v578_v20 = vpop.f32.mrf.mxu1 }
 0x13e   :  { %7558 = vst [vmem:[#allocation117_spill] sm:$0xff] %v5474_v6  ;;  %v5480_v8 = vadd.f32 %v578_v20, %v5471_v17  ;;  %v967_v6 = vadd.f32 %v892_v32, %v242_v11  ;;  %v966_v3 = vadd.f32 %v890_v16, %v240_v63 }
 0x13f   :  { %v580_v24 = vpop.f32.mrf.mxu1 }
 0x140   :  { %7559 = vst [vmem:[#allocation118_spill] sm:$0xff] %v5480_v8  ;;  %v5485_v27 = vadd.f32 %v580_v24, %v5477_v13  ;;  %v3899_v12 = vmul.f32 -1.442695, %v967_v6  ;;  %v3898_v19 = vmul.f32 -1.442695, %v966_v3 }
 0x141   :  { %v584_v10 = vpop.f32.mrf.mxu1 }
 0x142   :  { %7560 = vst [vmem:[#allocation119_spill] sm:$0xff] %v5485_v27  ;;  %v5490_v38 = vadd.f32 %v584_v10, %v5471_v17  ;;  %4015 = vpow2.f32 %v3899_v12 }
 0x143   :  { %v586_v9 = vpop.f32.mrf.mxu1  ;;  %4017 = vpow2.f32 %v3898_v19 }
 0x144   :  { %7561 = vst [vmem:[#allocation120_spill] sm:$0xff] %v5490_v38  ;;  %v5493_v20 = vadd.f32 %v586_v9, %v5477_v13 }
 0x145   :  { %v590_v8 = vpop.f32.mrf.mxu1 }
 0x146   :  { %7562 = vst [vmem:[#allocation121_spill] sm:$0xff] %v5493_v20  ;;  %v5496_v18 = vadd.f32 %v590_v8, %v5471_v17 }
 0x147   :  { %v592_v24 = vpop.f32.mrf.mxu1 }
 0x148   :  { %7563 = vst [vmem:[#allocation122_spill] sm:$0xff] %v5496_v18  ;;  %v5499_v27 = vadd.f32 %v592_v24, %v5477_v13 }
 0x149   :  { %v596_v5 = vpop.f32.mrf.mxu1 }
 0x14a   :  { %7564 = vst [vmem:[#allocation123_spill] sm:$0xff] %v5499_v27  ;;  %v5502_v44 = vadd.f32 %v596_v5, %v5471_v17  ;;  %v1067_v27 = vpop.f32.mrf.mxu0 }
 0x14b   :  { %v598_v16 = vpop.f32.mrf.mxu1 }
 0x14c   :  { %7565 = vst [vmem:[#allocation124_spill] sm:$0xff] %v5502_v44  ;;  %v5505_v9 = vadd.f32 %v598_v16, %v5477_v13  ;;  %v353_v44 = vadd.f32 %v5416_v4, %v5422_v22 }
 0x14d   :  { %v602_v63 = vpop.f32.mrf.mxu1 }
 0x14e   :  { %7566 = vst [vmem:[#allocation125_spill] sm:$0xff] %v5505_v9  ;;  %v5508_v6 = vadd.f32 %v602_v63, %v5471_v17  ;;  %v510_v9 = vadd.f32 %v509_v14, %v5320_v2 }
 0x14f   :  { %v604_v8 = vpop.f32.mrf.mxu1  ;;  %v4016_v5 = vpop.eup %4015 }
 0x150   :  { %7567 = vst [vmem:[#allocation126_spill] sm:$0xff] %v5508_v6  ;;  %v5511_v32 = vadd.f32 %v604_v8, %v5477_v13  ;;  %v4018_v63 = vpop.eup %4017  ;;  %v979_v20 = vadd.f32 1.0, %v4016_v5 }
 0x151   :  { %v608_v11 = vpop.f32.mrf.mxu1  ;;  %v973_v18 = vadd.f32 1.0, %v4018_v63 }
 0x152   :  { %7568 = vst [vmem:[#allocation127_spill] sm:$0xff] %v5511_v32  ;;  %v5514_v10 = vadd.f32 %v608_v11, %v5471_v17  ;;  %4019 = vrcp.f32 %v979_v20  ;;  %v1069_v32 = vpop.f32.mrf.mxu0 }
 0x153   :  { %v610_v12 = vpop.f32.mrf.mxu1  ;;  %4021 = vrcp.f32 %v973_v18 }
 0x154   :  { %7569 = vst [vmem:[#allocation128_spill] sm:$0xff] %v5514_v10  ;;  %v5517_v3 = vadd.f32 %v610_v12, %v5477_v13  ;;  %v1144_v10 = vadd.f32 %v1069_v32, %v510_v9 }
 0x155   :  { %v614_v19 = vpop.f32.mrf.mxu1 }
 0x156   :  { %7570 = vst [vmem:[#allocation129_spill] sm:$0xff] %v5517_v3  ;;  %v5520_v24 = vadd.f32 %v614_v19, %v5471_v17  ;;  %v355_v19 = vadd.f32 %v5419_v21, %v5425_v15  ;;  %v3902_v22 = vmul.f32 -1.442695, %v1144_v10 }
 0x157   :  { %v616_v16 = vpop.f32.mrf.mxu1 }
 0x158   :  { %7571 = vst [vmem:[#allocation130_spill] sm:$0xff] %v5520_v24  ;;  %v5523_v38 = vadd.f32 %v616_v16, %v5477_v13  ;;  %v508_v16 = vadd.f32 %v5454_v7, %v5314_v23 }
 0x159   :  { %v620_v8 = vpop.f32.mrf.mxu1 }
 0x15a   :  { %v1143_v24 = vadd.f32 %v1067_v27, %v508_v16  ;;  %v621_v32 = vadd.f32 %v620_v8, %v5471_v17  ;;  %v7574_v17 = vld [vmem:[#allocation18_spill] sm:$0xff]  ;;  %v7580_v8 = vld [vmem:[#allocation24_spill] sm:$0xff] }
 0x15b   :  { %v622_v11 = vpop.f32.mrf.mxu1 }
 0x15c   :  { %v3901_v4 = vmul.f32 -1.442695, %v1143_v24 }
 0x15d   :  { %v961_v12 = vpop.f32.mrf.mxu1 }
 0x15e   :  { %v968_v6 = vadd.f32 %v961_v12, %v353_v44 }
 0x15f   :  { %v963_v5 = vpop.f32.mrf.mxu1  ;;  %v4020_v2 = vpop.eup %4019 }
 0x160   :  { %4023 = vtanh.f32 %v968_v6  ;;  %v969_v63 = vadd.f32 %v963_v5, %v355_v19  ;;  %v4022_v15 = vpop.eup %4021  ;;  %v989_v14 = vmul.f32 0.0, %v4020_v2  ;;  %v7586_v2 = vld [vmem:[#allocation71_spill] sm:$0xff] }
 0x162   :  { %v3900_v3 = vmul.f32 -1.442695, %v969_v63 }
 0x164   :  { %4025 = vpow2.f32 %v3900_v3  ;;  %v623_v3 = vadd.f32 %v622_v11, %v5477_v13  ;;  %v7573_v13 = vld [vmem:[#allocation17_spill] sm:$0xff] }
 0x165   :  { %4027 = vpow2.f32 %v3902_v22  ;;  %v7581_v11 = vld [vmem:[#allocation25_spill] sm:$0xff] }
 0x166   :  { %4029 = vpow2.f32 %v3901_v4  ;;  %v7582_v4 = vld [vmem:[#allocation26_spill] sm:$0xff] }
 0x16d   :  { %v4024_v21 = vpop.eup %4023 }
 0x16e   :  { %v990_v20 = vmul.f32 %v4024_v21, %v4022_v15  ;;  %v7589_v15 = vld [vmem:[#allocation72_spill] sm:$0xff] }
 0x16f   :  { %v7590_v21 = vld [vmem:[#allocation32_spill] sm:$0xff] }
 0x170   :  { %v5532_v44 = vadd.f32 %v990_v20, %v989_v14  ;;  %v7592_v14 = vld [vmem:[#allocation33_spill] sm:$0xff]  ;;  %v7593_v20 = vld [vmem:[#allocation74_spill] sm:$0xff] }
 0x171   :  { %v4026_v7 = vpop.eup %4025 }
 0x172   :  { %v986_v23 = vadd.f32 1.0, %v4026_v7  ;;  %4031 = vtanh.f32 %v5532_v44  ;;  %v4028_v18 = vpop.eup %4027  ;;  %v7595_v7 = vld [vmem:[#allocation35_spill] sm:$0xff] }
 0x173   :  { %v4030_v9 = vpop.eup %4029  ;;  %v1156_v27 = vadd.f32 1.0, %v4028_v18  ;;  %v7598_v18 = vld [vmem:[#allocation37_spill] sm:$0xff] }
 0x174   :  { %4033 = vrcp.f32 %v986_v23  ;;  %v1150_v6 = vadd.f32 1.0, %v4030_v9  ;;  %v7596_v23 = vld [vmem:[#allocation75_spill] sm:$0xff]  ;;  %v7599_v9 = vld [vmem:[#allocation38_spill] sm:$0xff] }
 0x175   :  { %4035 = vrcp.f32 %v1156_v27  ;;  %v7600_v27 = vld [vmem:[#allocation39_spill] sm:$0xff] }
 0x176   :  { %4037 = vrcp.f32 %v1150_v6  ;;  %v7601_v6 = vld [vmem:[#allocation40_spill] sm:$0xff] }
 0x17d   :  { %v1138_v10 = vpop.f32.mrf.mxu1 }
 0x17e   :  { %v1145_v24 = vadd.f32 %v1138_v10, %v621_v32  ;;  %v7602_v10 = vld [vmem:[#allocation41_spill] sm:$0xff] }
 0x17f   :  { %v1140_v12 = vpop.f32.mrf.mxu1  ;;  %v4032_v19 = vpop.eup %4031 }
 0x180   :  { %4039 = vtanh.f32 %v1145_v24  ;;  %v1146_v16 = vadd.f32 %v1140_v12, %v623_v3  ;;  %v5630_v3 = vld [vmem:[#allocation7 + $0x1a8] sm:$0xff]  ;;  %v5634_v24 = vld [vmem:[#allocation7 + $0x1a0] sm:$0xff] }
 0x181   :  { %v4034_v5 = vpop.eup %4033  ;;  %v5642_v12 = vld [vmem:[#allocation7 + $0x180] sm:$0xff] }
 0x182   :  { %v3903_v63 = vmul.f32 -1.442695, %v1146_v16  ;;  %v5537_v22 = vmul.f32 %v4034_v5, %v4032_v19  ;;  %v5646_v19 = vld [vmem:[#allocation7 + $0x168] sm:$0xff]  ;;  %v5650_v16 = vld [vmem:[#allocation7 + $0x160] sm:$0xff] }
 0x183   :  { %v5654_v5 = vld [vmem:[#allocation7 + $0x148] sm:$0xff] }
 0x184   :  { %7572 = vst [vmem:[#allocation131_spill] sm:$0xff] %v5537_v22  ;;  %4041 = vpow2.f32 %v3903_v63  ;;  %1251 = vmatmul.mubr.f32.vlgmr.msra.gmra.mxu0 %v5537_v22  ;;  %1322 = vmatmul.mubr.f32.vlgmr.msra.gmra.mxu1 %v5537_v22  ;;  %v7610_v63 = vld [vmem:[#allocation48_spill] sm:$0xff]  ;;  %v5824_v22 = vld [vmem:[#allocation9 + $0x140] sm:$0xff] }
 0x185   :  { %1364 = vmatpush1.msra.mxu0 %v4898_v56  ;;  %1435 = vmatpush1.msra.mxu1 %v5150_v25  ;;  %v4036_v56 = vpop.eup %4035  ;;  %v7576_v25 = vld [vmem:[#allocation20_spill] sm:$0xff]  ;;  %7659 = vst [vmem:[#allocation74_spill] sm:$0xff] %v5824_v22 }
 0x186   :  { %1365 = vmatprep.subr.mxu0 %v4901_v58  ;;  %1436 = vmatprep.subr.mxu1 %v5154_v26  ;;  %v7575_v58 = vld [vmem:[#allocation19_spill] sm:$0xff]  ;;  %v1166_v26 = vmul.f32 0.0, %v4036_v56  ;;  %v5662_v56 = vld [vmem:[#allocation7 + $0x128] sm:$0xff] }
 0x187   :  { %1366 = vmatpush1.msra.mxu0 %v4905_v59  ;;  %1437 = vmatpush1.msra.mxu1 %v5159_v49  ;;  %v4038_v59 = vpop.eup %4037 }
 0x188   :  { %1367 = vmatprep.subr.mxu0 %v4908_v60  ;;  %1438 = vmatprep.subr.mxu1 %v5162_v1  ;;  %v7577_v1 = vld [vmem:[#allocation21_spill] sm:$0xff] }
 0x189   :  { %1368 = vmatpush1.msra.mxu0 %v7573_v13  ;;  %1439 = vmatpush1.msra.mxu1 %v5166_v28  ;;  %v7578_v28 = vld [vmem:[#allocation22_spill] sm:$0xff]  ;;  %v5658_v13 = vld [vmem:[#allocation7 + $0x140] sm:$0xff] }
 0x18a   :  { %1369 = vmatprep.subr.mxu0 %v7574_v17  ;;  %1440 = vmatprep.subr.mxu1 %v5170_v29  ;;  %v7579_v29 = vld [vmem:[#allocation23_spill] sm:$0xff]  ;;  %v7611_v17 = vld [vmem:[#allocation49_spill] sm:$0xff] }
 0x18b   :  { %1370 = vmatpush1.msra.mxu0 %v7575_v58  ;;  %1441 = vmatpush1.msra.mxu1 %v5174_v62  ;;  %v7612_v58 = vld [vmem:[#allocation50_spill] sm:$0xff] }
 0x18c   :  { %1371 = vmatprep.subr.mxu0 %v7576_v25  ;;  %1442 = vmatprep.subr.mxu1 %v5178_v0  ;;  %v7613_v25 = vld [vmem:[#allocation51_spill] sm:$0xff] }
 0x18d   :  { %v4040_v60 = vpop.eup %4039  ;;  %1372 = vmatpush1.msra.mxu0 %v7577_v1  ;;  %1443 = vmatpush1.msra.mxu1 %v5182_v30  ;;  %v7614_v1 = vld [vmem:[#allocation52_spill] sm:$0xff] }
 0x18e   :  { %v1167_v49 = vmul.f32 %v4040_v60, %v4038_v59  ;;  %1373 = vmatprep.subr.mxu0 %v7578_v28  ;;  %1444 = vmatprep.subr.mxu1 %v5186_v31  ;;  %v7583_v31 = vld [vmem:[#allocation27_spill] sm:$0xff]  ;;  %v5666_v59 = vld [vmem:[#allocation7 + $0x120] sm:$0xff]  ;;  %v5670_v60 = vld [vmem:[#allocation7 + $0x108] sm:$0xff] }
 0x18f   :  { %1374 = vmatpush1.msra.mxu0 %v7579_v29  ;;  %1445 = vmatpush1.msra.mxu1 %v5190_v33  ;;  %v7584_v33 = vld [vmem:[#allocation28_spill] sm:$0xff]  ;;  %v5678_v28 = vld [vmem:[#allocation7 + $0xe8] sm:$0xff] }
 0x190   :  { %v5563_v62 = vadd.f32 %v1167_v49, %v1166_v26  ;;  %1375 = vmatprep.subr.mxu0 %v7580_v8  ;;  %1446 = vmatprep.subr.mxu1 %v5194_v35  ;;  %v7585_v35 = vld [vmem:[#allocation29_spill] sm:$0xff]  ;;  %v7616_v29 = vld [vmem:[#allocation54_spill] sm:$0xff] }
 0x191   :  { %v4042_v0 = vpop.eup %4041  ;;  %1376 = vmatpush1.msra.mxu0 %v7581_v11  ;;  %1447 = vmatpush1.msra.mxu1 %v5198_v36  ;;  %v7587_v36 = vld [vmem:[#allocation30_spill] sm:$0xff]  ;;  %v5674_v26 = vld [vmem:[#allocation7 + $0x100] sm:$0xff] }
 0x192   :  { %v1163_v30 = vadd.f32 1.0, %v4042_v0  ;;  %1377 = vmatprep.subr.mxu0 %v7582_v4  ;;  %1448 = vmatprep.subr.mxu1 %v5202_v37  ;;  %4043 = vtanh.f32 %v5563_v62  ;;  %v7588_v37 = vld [vmem:[#allocation31_spill] sm:$0xff]  ;;  %v7615_v49 = vld [vmem:[#allocation53_spill] sm:$0xff]  ;;  %v5686_v11 = vld [vmem:[#allocation7 + $0xc8] sm:$0xff] }
 0x193   :  { %1378 = vmatpush1.msra.mxu0 %v7583_v31  ;;  %1449 = vmatpush1.msra.mxu1 %v5206_v39  ;;  %v7591_v39 = vld [vmem:[#allocation73_spill] sm:$0xff]  ;;  %v7617_v0 = vld [vmem:[#allocation55_spill] sm:$0xff]  ;;  %7618 = vst [vmem:[#allocation18_spill] sm:$0xff] %v5686_v11 }
 0x194   :  { %4045 = vrcp.f32 %v1163_v30  ;;  %1379 = vmatprep.subr.mxu0 %v7584_v33  ;;  %1450 = vmatprep.subr.mxu1 %v5210_v40  ;;  %v7594_v40 = vld [vmem:[#allocation34_spill] sm:$0xff]  ;;  %v5682_v8 = vld [vmem:[#allocation7 + $0xe0] sm:$0xff]  ;;  %v7619_v30 = vld [vmem:[#allocation56_spill] sm:$0xff] }
 0x195   :  { %1380 = vmatpush1.msra.mxu0 %v7585_v35  ;;  %1451 = vmatpush1.msra.mxu1 %v7586_v2  ;;  %v5690_v4 = vld [vmem:[#allocation7 + $0xc0] sm:$0xff]  ;;  %v5694_v33 = vld [vmem:[#allocation7 + $0xa8] sm:$0xff] }
 0x196   :  { %1381 = vmatprep.subr.mxu0 %v7587_v36  ;;  %1452 = vmatprep.subr.mxu1 %v5218_v43  ;;  %v7597_v43 = vld [vmem:[#allocation36_spill] sm:$0xff]  ;;  %7620 = vst [vmem:[#allocation19_spill] sm:$0xff] %v5690_v4  ;;  %v7621_v31 = vld [vmem:[#allocation57_spill] sm:$0xff]  ;;  %7622 = vst [vmem:[#allocation20_spill] sm:$0xff] %v5694_v33 }
 0x197   :  { %1382 = vmatpush1.msra.mxu0 %v7588_v37  ;;  %1453 = vmatpush1.msra.mxu1 %v7589_v15  ;;  %v7623_v35 = vld [vmem:[#allocation58_spill] sm:$0xff]  ;;  %v5698_v2 = vld [vmem:[#allocation7 + $0xa0] sm:$0xff]  ;;  %v7625_v36 = vld [vmem:[#allocation59_spill] sm:$0xff] }
 0x198   :  { %1383 = vmatprep.subr.mxu0 %v7590_v21  ;;  %1454 = vmatprep.subr.mxu1 %v7591_v39  ;;  %7624 = vst [vmem:[#allocation21_spill] sm:$0xff] %v5698_v2  ;;  %v5702_v37 = vld [vmem:[#allocation7 + $0x88] sm:$0xff]  ;;  %v7627_v15 = vld [vmem:[#allocation60_spill] sm:$0xff]  ;;  %v5706_v21 = vld [vmem:[#allocation7 + $0x80] sm:$0xff] }
 0x199   :  { %1384 = vmatpush1.msra.mxu0 %v7592_v14  ;;  %1455 = vmatpush1.msra.mxu1 %v7593_v20  ;;  %7626 = vst [vmem:[#allocation22_spill] sm:$0xff] %v5702_v37  ;;  %7628 = vst [vmem:[#allocation23_spill] sm:$0xff] %v5706_v21  ;;  %v7629_v39 = vld [vmem:[#allocation61_spill] sm:$0xff]  ;;  %v5710_v14 = vld [vmem:[#allocation7 + $0x68] sm:$0xff] }
 0x19a   :  { %1385 = vmatprep.subr.mxu0 %v7594_v40  ;;  %1456 = vmatprep.subr.mxu1 %v5234_v48  ;;  %7630 = vst [vmem:[#allocation24_spill] sm:$0xff] %v5710_v14  ;;  %v7631_v20 = vld [vmem:[#allocation62_spill] sm:$0xff]  ;;  %v5714_v40 = vld [vmem:[#allocation7 + $0x60] sm:$0xff] }
 0x19b   :  { %1386 = vmatpush1.msra.mxu0 %v7595_v7  ;;  %1457 = vmatpush1.msra.mxu1 %v7596_v23  ;;  %7632 = vst [vmem:[#allocation25_spill] sm:$0xff] %v5714_v40  ;;  %v7633_v7 = vld [vmem:[#allocation63_spill] sm:$0xff]  ;;  %v5718_v23 = vld [vmem:[#allocation7 + $0x48] sm:$0xff] }
 0x19c   :  { %1387 = vmatprep.subr.mxu0 %v7597_v43  ;;  %1458 = vmatprep.subr.mxu1 %v5242_v51  ;;  %v7603_v51 = vld [vmem:[#allocation42_spill] sm:$0xff]  ;;  %7634 = vst [vmem:[#allocation26_spill] sm:$0xff] %v5718_v23  ;;  %v7635_v43 = vld [vmem:[#allocation64_spill] sm:$0xff] }
 0x19d   :  { %1388 = vmatpush1.msra.mxu0 %v7598_v18  ;;  %1459 = vmatpush1.msra.mxu1 %v5246_v52  ;;  %v5722_v18 = vld [vmem:[#allocation7 + $0x40] sm:$0xff] }
 0x19e   :  { %1389 = vmatprep.subr.mxu0 %v7599_v9  ;;  %1460 = vmatprep.subr.mxu1 %v5249_v45  ;;  %v7605_v45 = vld [vmem:[#allocation43_spill] sm:$0xff]  ;;  %7636 = vst [vmem:[#allocation27_spill] sm:$0xff] %v5722_v18  ;;  %v7637_v9 = vld [vmem:[#allocation65_spill] sm:$0xff] }
 0x19f   :  { %1390 = vmatpush1.msra.mxu0 %v7600_v27  ;;  %1461 = vmatpush1.msra.mxu1 %v5252_v53  ;;  %v4044_v48 = vpop.eup %4043  ;;  %v5618_v53 = vld [vmem:[#allocation7 + $0x1e0] sm:$0xff]  ;;  %v5726_v27 = vld [vmem:[#allocation7 + $0x28] sm:$0xff] }
 0x1a0   :  { %1391 = vmatprep.subr.mxu0 %v7601_v6  ;;  %1462 = vmatprep.subr.mxu1 %v5255_v46  ;;  %v5612_v46 = vld [vmem:[#allocation7 + $0x1e8] sm:$0xff]  ;;  %7638 = vst [vmem:[#allocation28_spill] sm:$0xff] %v5726_v27  ;;  %v5730_v6 = vld [vmem:[#allocation7 + $0x20] sm:$0xff] }
 0x1a1   :  { %v4046_v32 = vpop.eup %4045  ;;  %1392 = vmatpush1.msra.mxu0 %v7602_v10  ;;  %1463 = vmatpush1.msra.mxu1 %v5258_v47  ;;  %v5615_v47 = vld [vmem:[#allocation7 + $0x1f8] sm:$0xff]  ;;  %7640 = vst [vmem:[#allocation29_spill] sm:$0xff] %v5730_v6  ;;  %v5734_v10 = vld [vmem:[#allocation7 + $0x8] sm:$0xff] }
 0x1a2   :  { %1393 = vmatprep.subr.mxu0 %v7603_v51  ;;  %1464 = vmatprep.subr.mxu1 %v5261_v55  ;;  %v5604_v52 = vmul.f32 %v4046_v32, %v4044_v48  ;;  %v5626_v55 = vld [vmem:[#allocation7 + $0x1c0] sm:$0xff]  ;;  %v7639_v48 = vld [vmem:[#allocation66_spill] sm:$0xff]  ;;  %v7641_v32 = vld [vmem:[#allocation67_spill] sm:$0xff]  ;;  %7642 = vst [vmem:[#allocation71_spill] sm:$0xff] %v5734_v10 }
 0x1a3   :  { %1394 = vmatpush1.msra.mxu0 %v7605_v45  ;;  %1427 = vmatprep.mubr.f32.mxu0 %v7516_v41  ;;  %v7643_v51 = vld [vmem:[#allocation68_spill] sm:$0xff]  ;;  %v5738_v45 = vld [vmem:[#allocation7] sm:$0xff] }
 0x1a4   :  { %7604 = vst [vmem:[#allocation17_spill] sm:$0xff] %v5604_v52  ;;  %1465 = vmatpush1.msra.mxu1 %v5264_v50  ;;  %1498 = vmatprep.mubr.f32.mxu1 %v7516_v41  ;;  %v5622_v50 = vld [vmem:[#allocation7 + $0x1c8] sm:$0xff]  ;;  %7644 = vst [vmem:[#allocation30_spill] sm:$0xff] %v5738_v45 }
 0x1a5   :  { %1428 = vmatmul.mubr.f32.vlgmr.msra.gmra.mxu0 %v5604_v52  ;;  %1499 = vmatmul.mubr.f32.vlgmr.msra.gmra.mxu1 %v5604_v52 }
 0x1a6   :  { %1548 = vmatprep.subr.mxu0 %v5612_v46  ;;  %1619 = vmatprep.subr.mxu1 %v5615_v47 }
 0x1a7   :  { %1549 = vmatpush1.msra.mxu0 %v5618_v53  ;;  %1620 = vmatpush1.msra.mxu1 %v5013_v34  ;;  %v5638_v34 = vld [vmem:[#allocation7 + $0x188] sm:$0xff] }
 0x1a8   :  { %1550 = vmatprep.subr.mxu0 %v5622_v50  ;;  %1621 = vmatprep.subr.mxu1 %v5016_v42  ;;  %v7606_v42 = vld [vmem:[#allocation44_spill] sm:$0xff] }
 0x1a9   :  { %1551 = vmatpush1.msra.mxu0 %v5626_v55  ;;  %1622 = vmatpush1.msra.mxu1 %v5023_v54  ;;  %v7607_v54 = vld [vmem:[#allocation45_spill] sm:$0xff] }
 0x1aa   :  { %1552 = vmatprep.subr.mxu0 %v5630_v3  ;;  %1623 = vmatprep.subr.mxu1 %v5028_v57  ;;  %v7608_v57 = vld [vmem:[#allocation46_spill] sm:$0xff] }
 0x1ab   :  { %1553 = vmatpush1.msra.mxu0 %v5634_v24  ;;  %1624 = vmatpush1.msra.mxu1 %v5031_v61  ;;  %v7609_v61 = vld [vmem:[#allocation47_spill] sm:$0xff] }
 0x1ac   :  { %1554 = vmatprep.subr.mxu0 %v5638_v34  ;;  %1625 = vmatprep.subr.mxu1 %v7606_v42  ;;  %v7645_v42 = vld [vmem:[#allocation69_spill] sm:$0xff] }
 0x1ad   :  { %1555 = vmatpush1.msra.mxu0 %v5642_v12  ;;  %1626 = vmatpush1.msra.mxu1 %v7607_v54  ;;  %v5744_v54 = vld [vmem:[#allocation9 + $0x1e8] sm:$0xff] }
 0x1ae   :  { %1556 = vmatprep.subr.mxu0 %v5646_v19  ;;  %1627 = vmatprep.subr.mxu1 %v7608_v57  ;;  %7646 = vst [vmem:[#allocation31_spill] sm:$0xff] %v5744_v54  ;;  %v7647_v57 = vld [vmem:[#allocation70_spill] sm:$0xff] }
 0x1af   :  { %1557 = vmatpush1.msra.mxu0 %v5650_v16  ;;  %1628 = vmatpush1.msra.mxu1 %v7609_v61 }
 0x1b0   :  { %1558 = vmatprep.subr.mxu0 %v5654_v5  ;;  %1629 = vmatprep.subr.mxu1 %v7610_v63  ;;  %v7648_v63 = vld [vmem:[#allocation78_spill] sm:$0xff] }
 0x1b1   :  { %1559 = vmatpush1.msra.mxu0 %v5658_v13  ;;  %1630 = vmatpush1.msra.mxu1 %v7611_v17 }
 0x1b2   :  { %1560 = vmatprep.subr.mxu0 %v5662_v56  ;;  %1631 = vmatprep.subr.mxu1 %v7612_v58 }
 0x1b3   :  { %1561 = vmatpush1.msra.mxu0 %v5666_v59  ;;  %1632 = vmatpush1.msra.mxu1 %v7613_v25 }
 0x1b4   :  { %1562 = vmatprep.subr.mxu0 %v5670_v60  ;;  %1633 = vmatprep.subr.mxu1 %v7614_v1  ;;  %v7649_v1 = vld [vmem:[#allocation80_spill] sm:$0xff] }
 0x1b5   :  { %1563 = vmatpush1.msra.mxu0 %v5674_v26  ;;  %1634 = vmatpush1.msra.mxu1 %v7615_v49 }
 0x1b6   :  { %1564 = vmatprep.subr.mxu0 %v5678_v28  ;;  %1635 = vmatprep.subr.mxu1 %v7616_v29 }
 0x1b7   :  { %1565 = vmatpush1.msra.mxu0 %v5682_v8  ;;  %1636 = vmatpush1.msra.mxu1 %v7617_v0 }
 0x1b8   :  { %1566 = vmatprep.subr.mxu0 %v5686_v11  ;;  %1637 = vmatprep.subr.mxu1 %v7619_v30 }
 0x1b9   :  { %1567 = vmatpush1.msra.mxu0 %v5690_v4  ;;  %1638 = vmatpush1.msra.mxu1 %v7621_v31  ;;  %v7650_v31 = vld [vmem:[#allocation105_spill] sm:$0xff] }
 0x1ba   :  { %1568 = vmatprep.subr.mxu0 %v5694_v33  ;;  %1639 = vmatprep.subr.mxu1 %v7623_v35 }
 0x1bb   :  { %1569 = vmatpush1.msra.mxu0 %v5698_v2  ;;  %1640 = vmatpush1.msra.mxu1 %v7625_v36  ;;  %v7651_v36 = vld [vmem:[#allocation104_spill] sm:$0xff] }
 0x1bc   :  { %1570 = vmatprep.subr.mxu0 %v5702_v37  ;;  %1641 = vmatprep.subr.mxu1 %v7627_v15 }
 0x1bd   :  { %1571 = vmatpush1.msra.mxu0 %v5706_v21  ;;  %1642 = vmatpush1.msra.mxu1 %v7629_v39 }
 0x1be   :  { %1572 = vmatprep.subr.mxu0 %v5710_v14  ;;  %1643 = vmatprep.subr.mxu1 %v7631_v20 }
 0x1bf   :  { %1573 = vmatpush1.msra.mxu0 %v5714_v40  ;;  %1644 = vmatpush1.msra.mxu1 %v7633_v7 }
 0x1c0   :  { %1574 = vmatprep.subr.mxu0 %v5718_v23  ;;  %1645 = vmatprep.subr.mxu1 %v7635_v43 }
 0x1c1   :  { %1575 = vmatpush1.msra.mxu0 %v5722_v18  ;;  %1646 = vmatpush1.msra.mxu1 %v7637_v9 }
 0x1c2   :  { %1576 = vmatprep.subr.mxu0 %v5726_v27  ;;  %1647 = vmatprep.subr.mxu1 %v7639_v48 }
 0x1c3   :  { %1577 = vmatpush1.msra.mxu0 %v5730_v6  ;;  %1648 = vmatpush1.msra.mxu1 %v7641_v32 }
 0x1c4   :  { %1578 = vmatprep.subr.mxu0 %v5734_v10  ;;  %1649 = vmatprep.subr.mxu1 %v7643_v51 }
 0x1c5   :  { %1579 = vmatpush1.msra.mxu0 %v5738_v45  ;;  %1650 = vmatpush1.msra.mxu1 %v7645_v42 }
 0x1c6   :  { %1612 = vmatprep.mubr.f32.mxu0 %v7516_v41  ;;  %1683 = vmatprep.mubr.f32.mxu1 %v7516_v41 }
 0x1c7   :  { %1725 = vmatprep.subr.mxu0 %v5744_v54  ;;  %1796 = vmatprep.subr.mxu1 %v7647_v57  ;;  %v7652_v57 = vld [vmem:[#allocation99_spill] sm:$0xff] }
 0x244   :  { %v1252_v61 = vpop.f32.mrf.mxu0  ;;  %v1323_v29 = vpop.f32.mrf.mxu1 }
 0x245   :  { %v1328_v17 = vadd.f32 %v1252_v61, %v7648_v63  ;;  %v1330_v15 = vadd.f32 %v1323_v29, %v7651_v36 }
 0x246   :  { %v1254_v58 = vpop.f32.mrf.mxu0  ;;  %v1325_v30 = vpop.f32.mrf.mxu1 }
 0x247   :  { %v3904_v25 = vmul.f32 -1.442695, %v1328_v17  ;;  %v1329_v49 = vadd.f32 %v1254_v58, %v7649_v1  ;;  %v1331_v35 = vadd.f32 %v1325_v30, %v7650_v31  ;;  %v7653_v1 = vld [vmem:[#allocation101_spill] sm:$0xff] }
 0x249   :  { %4047 = vpow2.f32 %v3904_v25  ;;  %v3905_v0 = vmul.f32 -1.442695, %v1329_v49  ;;  %v3906_v39 = vmul.f32 -1.442695, %v1331_v35 }
 0x24b   :  { %4049 = vpow2.f32 %v3905_v0 }
 0x24c   :  { %4051 = vtanh.f32 %v1330_v15 }
 0x24d   :  { %4053 = vpow2.f32 %v3906_v39  ;;  %v7654_v39 = vld [vmem:[#allocation130_spill] sm:$0xff] }
 0x256   :  { %v4048_v20 = vpop.eup %4047 }
 0x257   :  { %v1335_v7 = vadd.f32 1.0, %v4048_v20 }
 0x258   :  { %v4050_v43 = vpop.eup %4049 }
 0x259   :  { %4055 = vrcp.f32 %v1335_v7  ;;  %v1341_v9 = vadd.f32 1.0, %v4050_v43  ;;  %v4052_v48 = vpop.eup %4051 }
 0x25a   :  { %v4054_v32 = vpop.eup %4053 }
 0x25b   :  { %4057 = vrcp.f32 %v1341_v9  ;;  %v1348_v0 = vadd.f32 1.0, %v4054_v32 }
 0x265   :  { %v1429_v51 = vpop.f32.mrf.mxu0  ;;  %v1500_v30 = vpop.f32.mrf.mxu1 }
 0x266   :  { %v4056_v42 = vpop.eup %4055  ;;  %v1505_v61 = vadd.f32 %v1429_v51, %v7652_v57  ;;  %v1507_v20 = vadd.f32 %v1500_v30, %v7654_v39  ;;  %v5767_v57 = vld [vmem:[#allocation9 + $0x1f0] sm:$0xff]  ;;  %v5797_v30 = vld [vmem:[#allocation9 + $0x198] sm:$0xff] }
 0x267   :  { %v1352_v63 = vmul.f32 %v4056_v42, %v4052_v48  ;;  %v1431_v17 = vpop.f32.mrf.mxu0  ;;  %v1502_v36 = vpop.f32.mrf.mxu1 }
 0x268   :  { %v4058_v58 = vpop.eup %4057  ;;  %v3907_v25 = vmul.f32 -1.442695, %v1505_v61  ;;  %v1506_v49 = vadd.f32 %v1431_v17, %v7653_v1  ;;  %v1508_v15 = vadd.f32 %v1502_v36, %v5523_v38  ;;  %v5764_v38 = vld [vmem:[#allocation9 + $0x1e0] sm:$0xff]  ;;  %v5770_v61 = vld [vmem:[#allocation9 + $0x1c8] sm:$0xff]  ;;  %v5785_v1 = vld [vmem:[#allocation9 + $0x1b8] sm:$0xff] }
 0x269   :  { %v1351_v29 = vmul.f32 %v4058_v58, %v5532_v44  ;;  %v5776_v17 = vld [vmem:[#allocation9 + $0x1c0] sm:$0xff]  ;;  %v5779_v58 = vld [vmem:[#allocation9 + $0x1d0] sm:$0xff] }
 0x26a   :  { %4059 = vpow2.f32 %v3907_v25  ;;  %v3908_v31 = vmul.f32 -1.442695, %v1506_v49  ;;  %v3909_v7 = vmul.f32 -1.442695, %v1508_v15  ;;  %v5782_v25 = vld [vmem:[#allocation9 + $0x1a8] sm:$0xff]  ;;  %v5788_v49 = vld [vmem:[#allocation9 + $0x1a0] sm:$0xff] }
 0x26b   :  { %v5755_v35 = vadd.f32 %v1352_v63, %v1351_v29  ;;  %v5773_v63 = vld [vmem:[#allocation9 + $0x1d8] sm:$0xff]  ;;  %v5791_v29 = vld [vmem:[#allocation9 + $0x1b0] sm:$0xff]  ;;  %v5800_v36 = vld [vmem:[#allocation9 + $0x180] sm:$0xff] }
 0x26c   :  { %4061 = vpow2.f32 %v3908_v31  ;;  %v5803_v15 = vld [vmem:[#allocation9 + $0x190] sm:$0xff] }
 0x26d   :  { %4063 = vrcp.f32 %v1348_v0  ;;  %v5794_v0 = vld [vmem:[#allocation9 + $0x188] sm:$0xff] }
 0x26e   :  { %4065 = vtanh.f32 %v5755_v35 }
 0x26f   :  { %4067 = vtanh.f32 %v1507_v20  ;;  %v5806_v20 = vld [vmem:[#allocation9 + $0x168] sm:$0xff] }
 0x270   :  { %4069 = vpow2.f32 %v3909_v7  ;;  %v5809_v7 = vld [vmem:[#allocation9 + $0x178] sm:$0xff] }
 0x277   :  { %v4060_v43 = vpop.eup %4059 }
 0x278   :  { %v1512_v9 = vadd.f32 1.0, %v4060_v43 }
 0x279   :  { %v4062_v44 = vpop.eup %4061 }
 0x27a   :  { %v4064_v48 = vpop.eup %4063  ;;  %4071 = vrcp.f32 %v1512_v9  ;;  %v1518_v32 = vadd.f32 1.0, %v4062_v44  ;;  %v5812_v9 = vld [vmem:[#allocation9 + $0x160] sm:$0xff]  ;;  %v5815_v44 = vld [vmem:[#allocation9 + $0x170] sm:$0xff] }
 0x27b   :  { %v4066_v51 = vpop.eup %4065  ;;  %7656 = vst [vmem:[#allocation32_spill] sm:$0xff] %v5812_v9 }
 0x27c   :  { %4073 = vrcp.f32 %v1518_v32  ;;  %v5760_v42 = vmul.f32 %v4066_v51, %v4064_v48  ;;  %v4068_v31 = vpop.eup %4067  ;;  %v5818_v32 = vld [vmem:[#allocation9 + $0x148] sm:$0xff]  ;;  %v5821_v51 = vld [vmem:[#allocation9 + $0x158] sm:$0xff] }
 0x27d   :  { %v4070_v39 = vpop.eup %4069  ;;  %7657 = vst [vmem:[#allocation73_spill] sm:$0xff] %v5818_v32  ;;  %7658 = vst [vmem:[#allocation33_spill] sm:$0xff] %v5821_v51 }
 0x27e   :  { %7655 = vst [vmem:[#allocation72_spill] sm:$0xff] %v5760_v42  ;;  %1613 = vmatmul.mubr.f32.vlgmr.msra.gmra.mxu0 %v5760_v42  ;;  %1684 = vmatmul.mubr.f32.vlgmr.msra.gmra.mxu1 %v5760_v42  ;;  %v1525_v42 = vadd.f32 1.0, %v4070_v39  ;;  %v5840_v39 = vld [vmem:[#allocation9 + $0x130] sm:$0xff] }
 0x27f   :  { %1726 = vmatpush1.msra.mxu0 %v5764_v38  ;;  %1797 = vmatpush1.msra.mxu1 %v5767_v57  ;;  %7662 = vst [vmem:[#allocation75_spill] sm:$0xff] %v5840_v39 }
 0x280   :  { %1727 = vmatprep.subr.mxu0 %v5770_v61  ;;  %1798 = vmatprep.subr.mxu1 %v5773_v63  ;;  %4075 = vrcp.f32 %v1525_v42  ;;  %v5867_v42 = vld [vmem:[#allocation9 + $0xf0] sm:$0xff] }
 0x281   :  { %1728 = vmatpush1.msra.mxu0 %v5776_v17  ;;  %1799 = vmatpush1.msra.mxu1 %v5779_v58  ;;  %7670 = vst [vmem:[#allocation43_spill] sm:$0xff] %v5867_v42 }
 0x282   :  { %1729 = vmatprep.subr.mxu0 %v5782_v25  ;;  %1800 = vmatprep.subr.mxu1 %v5785_v1 }
 0x283   :  { %1730 = vmatpush1.msra.mxu0 %v5788_v49  ;;  %1801 = vmatpush1.msra.mxu1 %v5791_v29 }
 0x284   :  { %1731 = vmatprep.subr.mxu0 %v5794_v0  ;;  %1802 = vmatprep.subr.mxu1 %v5797_v30 }
 0x285   :  { %1732 = vmatpush1.msra.mxu0 %v5800_v36  ;;  %1803 = vmatpush1.msra.mxu1 %v5803_v15 }
 0x286   :  { %1733 = vmatprep.subr.mxu0 %v5806_v20  ;;  %1804 = vmatprep.subr.mxu1 %v5809_v7 }
 0x287   :  { %v4072_v43 = vpop.eup %4071  ;;  %1734 = vmatpush1.msra.mxu0 %v5812_v9  ;;  %1805 = vmatpush1.msra.mxu1 %v5815_v44  ;;  %v5827_v9 = vld [vmem:[#allocation9 + $0x150] sm:$0xff] }
 0x288   :  { %v1529_v48 = vmul.f32 %v4072_v43, %v4068_v31  ;;  %1735 = vmatprep.subr.mxu0 %v5818_v32  ;;  %1806 = vmatprep.subr.mxu1 %v5821_v51  ;;  %7660 = vst [vmem:[#allocation34_spill] sm:$0xff] %v5827_v9  ;;  %v5831_v43 = vld [vmem:[#allocation9 + $0x128] sm:$0xff]  ;;  %v5834_v32 = vld [vmem:[#allocation9 + $0x138] sm:$0xff]  ;;  %v5837_v51 = vld [vmem:[#allocation9 + $0x120] sm:$0xff] }
 0x289   :  { %v4074_v52 = vpop.eup %4073  ;;  %1736 = vmatpush1.msra.mxu0 %v5824_v22  ;;  %1807 = vmatpush1.msra.mxu1 %v5827_v9  ;;  %7661 = vst [vmem:[#allocation35_spill] sm:$0xff] %v5837_v51  ;;  %v5845_v9 = vld [vmem:[#allocation9 + $0x108] sm:$0xff] }
 0x28a   :  { %v1528_v31 = vmul.f32 %v4074_v52, %v5563_v62  ;;  %1737 = vmatprep.subr.mxu0 %v5831_v43  ;;  %1808 = vmatprep.subr.mxu1 %v5834_v32  ;;  %7663 = vst [vmem:[#allocation36_spill] sm:$0xff] %v5845_v9  ;;  %v5848_v62 = vld [vmem:[#allocation9 + $0x118] sm:$0xff]  ;;  %v5851_v52 = vld [vmem:[#allocation9 + $0x100] sm:$0xff] }
 0x28b   :  { %1738 = vmatpush1.msra.mxu0 %v5837_v51  ;;  %1809 = vmatpush1.msra.mxu1 %v5840_v39  ;;  %7664 = vst [vmem:[#allocation37_spill] sm:$0xff] %v5848_v62  ;;  %7665 = vst [vmem:[#allocation38_spill] sm:$0xff] %v5851_v52  ;;  %v5854_v51 = vld [vmem:[#allocation9 + $0x110] sm:$0xff]  ;;  %v5857_v39 = vld [vmem:[#allocation9 + $0xe8] sm:$0xff] }
 0x28c   :  { %v5843_v22 = vadd.f32 %v1529_v48, %v1528_v31  ;;  %1739 = vmatprep.subr.mxu0 %v5845_v9  ;;  %1810 = vmatprep.subr.mxu1 %v5848_v62  ;;  %7666 = vst [vmem:[#allocation39_spill] sm:$0xff] %v5854_v51  ;;  %7667 = vst [vmem:[#allocation40_spill] sm:$0xff] %v5857_v39  ;;  %v5860_v48 = vld [vmem:[#allocation9 + $0xf8] sm:$0xff]  ;;  %v5864_v31 = vld [vmem:[#allocation9 + $0xe0] sm:$0xff] }
 0x28d   :  { %1740 = vmatpush1.msra.mxu0 %v5851_v52  ;;  %1811 = vmatpush1.msra.mxu1 %v5854_v51  ;;  %7668 = vst [vmem:[#allocation41_spill] sm:$0xff] %v5860_v48  ;;  %7669 = vst [vmem:[#allocation42_spill] sm:$0xff] %v5864_v31  ;;  %v5870_v52 = vld [vmem:[#allocation9 + $0xc8] sm:$0xff]  ;;  %v5873_v51 = vld [vmem:[#allocation9 + $0xd8] sm:$0xff] }
 0x28e   :  { %1741 = vmatprep.subr.mxu0 %v5857_v39  ;;  %1812 = vmatprep.subr.mxu1 %v5860_v48  ;;  %4077 = vtanh.f32 %v5843_v22  ;;  %7671 = vst [vmem:[#allocation44_spill] sm:$0xff] %v5870_v52  ;;  %7672 = vst [vmem:[#allocation45_spill] sm:$0xff] %v5873_v51  ;;  %v5876_v39 = vld [vmem:[#allocation9 + $0xc0] sm:$0xff]  ;;  %v5879_v48 = vld [vmem:[#allocation9 + $0xd0] sm:$0xff] }
 0x28f   :  { %1742 = vmatpush1.msra.mxu0 %v5864_v31  ;;  %1813 = vmatpush1.msra.mxu1 %v5867_v42  ;;  %7673 = vst [vmem:[#allocation46_spill] sm:$0xff] %v5876_v39  ;;  %7674 = vst [vmem:[#allocation47_spill] sm:$0xff] %v5879_v48  ;;  %v5882_v31 = vld [vmem:[#allocation9 + $0xa8] sm:$0xff]  ;;  %v5885_v42 = vld [vmem:[#allocation9 + $0xb8] sm:$0xff] }
 0x290   :  { %1743 = vmatprep.subr.mxu0 %v5870_v52  ;;  %1814 = vmatprep.subr.mxu1 %v5873_v51  ;;  %7675 = vst [vmem:[#allocation48_spill] sm:$0xff] %v5882_v31  ;;  %7676 = vst [vmem:[#allocation49_spill] sm:$0xff] %v5885_v42  ;;  %v5888_v52 = vld [vmem:[#allocation9 + $0xa0] sm:$0xff]  ;;  %v5891_v51 = vld [vmem:[#allocation9 + $0xb0] sm:$0xff] }
 0x291   :  { %1744 = vmatpush1.msra.mxu0 %v5876_v39  ;;  %1815 = vmatpush1.msra.mxu1 %v5879_v48  ;;  %7677 = vst [vmem:[#allocation50_spill] sm:$0xff] %v5888_v52  ;;  %7678 = vst [vmem:[#allocation51_spill] sm:$0xff] %v5891_v51  ;;  %v5894_v39 = vld [vmem:[#allocation9 + $0x88] sm:$0xff]  ;;  %v5897_v48 = vld [vmem:[#allocation9 + $0x98] sm:$0xff] }
 0x292   :  { %1745 = vmatprep.subr.mxu0 %v5882_v31  ;;  %1816 = vmatprep.subr.mxu1 %v5885_v42  ;;  %7679 = vst [vmem:[#allocation52_spill] sm:$0xff] %v5894_v39  ;;  %7680 = vst [vmem:[#allocation53_spill] sm:$0xff] %v5897_v48  ;;  %v5900_v31 = vld [vmem:[#allocation9 + $0x80] sm:$0xff]  ;;  %v5903_v42 = vld [vmem:[#allocation9 + $0x90] sm:$0xff] }
 0x293   :  { %1746 = vmatpush1.msra.mxu0 %v5888_v52  ;;  %1817 = vmatpush1.msra.mxu1 %v5891_v51  ;;  %7681 = vst [vmem:[#allocation54_spill] sm:$0xff] %v5900_v31  ;;  %7682 = vst [vmem:[#allocation55_spill] sm:$0xff] %v5903_v42  ;;  %v5906_v52 = vld [vmem:[#allocation9 + $0x68] sm:$0xff]  ;;  %v5909_v51 = vld [vmem:[#allocation9 + $0x78] sm:$0xff] }
 0x294   :  { %1747 = vmatprep.subr.mxu0 %v5894_v39  ;;  %1818 = vmatprep.subr.mxu1 %v5897_v48  ;;  %7683 = vst [vmem:[#allocation56_spill] sm:$0xff] %v5906_v52  ;;  %7684 = vst [vmem:[#allocation57_spill] sm:$0xff] %v5909_v51  ;;  %v5912_v39 = vld [vmem:[#allocation9 + $0x60] sm:$0xff]  ;;  %v5915_v48 = vld [vmem:[#allocation9 + $0x70] sm:$0xff] }
 0x295   :  { %1748 = vmatpush1.msra.mxu0 %v5900_v31  ;;  %1819 = vmatpush1.msra.mxu1 %v5903_v42  ;;  %7685 = vst [vmem:[#allocation58_spill] sm:$0xff] %v5912_v39  ;;  %7686 = vst [vmem:[#allocation59_spill] sm:$0xff] %v5915_v48  ;;  %v5918_v31 = vld [vmem:[#allocation9 + $0x48] sm:$0xff]  ;;  %v5921_v42 = vld [vmem:[#allocation9 + $0x58] sm:$0xff] }
 0x296   :  { %1749 = vmatprep.subr.mxu0 %v5906_v52  ;;  %1820 = vmatprep.subr.mxu1 %v5909_v51  ;;  %7687 = vst [vmem:[#allocation60_spill] sm:$0xff] %v5918_v31  ;;  %7688 = vst [vmem:[#allocation61_spill] sm:$0xff] %v5921_v42  ;;  %v5924_v52 = vld [vmem:[#allocation9 + $0x40] sm:$0xff]  ;;  %v5927_v51 = vld [vmem:[#allocation9 + $0x50] sm:$0xff] }
 0x297   :  { %1750 = vmatpush1.msra.mxu0 %v5912_v39  ;;  %1821 = vmatpush1.msra.mxu1 %v5915_v48  ;;  %7689 = vst [vmem:[#allocation62_spill] sm:$0xff] %v5924_v52  ;;  %7690 = vst [vmem:[#allocation63_spill] sm:$0xff] %v5927_v51  ;;  %v4076_v39 = vpop.eup %4075  ;;  %v5930_v62 = vld [vmem:[#allocation9 + $0x28] sm:$0xff]  ;;  %v5933_v48 = vld [vmem:[#allocation9 + $0x38] sm:$0xff] }
 0x298   :  { %1751 = vmatprep.subr.mxu0 %v5918_v31  ;;  %1822 = vmatprep.subr.mxu1 %v5921_v42  ;;  %7691 = vst [vmem:[#allocation64_spill] sm:$0xff] %v5930_v62  ;;  %7692 = vst [vmem:[#allocation65_spill] sm:$0xff] %v5933_v48  ;;  %v5936_v9 = vld [vmem:[#allocation9 + $0x20] sm:$0xff]  ;;  %v5939_v42 = vld [vmem:[#allocation9 + $0x30] sm:$0xff] }
 0x299   :  { %1752 = vmatpush1.msra.mxu0 %v5924_v52  ;;  %1823 = vmatpush1.msra.mxu1 %v5927_v51  ;;  %7693 = vst [vmem:[#allocation66_spill] sm:$0xff] %v5936_v9  ;;  %v5942_v52 = vld [vmem:[#allocation9 + $0x8] sm:$0xff]  ;;  %v5945_v51 = vld [vmem:[#allocation9 + $0x18] sm:$0xff] }
 0x29a   :  { %1753 = vmatprep.subr.mxu0 %v5930_v62  ;;  %1824 = vmatprep.subr.mxu1 %v5933_v48  ;;  %v5950_v48 = vld [vmem:[#allocation9] sm:$0xff] }
 0x29b   :  { %v4078_v31 = vpop.eup %4077  ;;  %1754 = vmatpush1.msra.mxu0 %v5936_v9  ;;  %1825 = vmatpush1.msra.mxu1 %v5939_v42  ;;  %7695 = vst [vmem:[#allocation68_spill] sm:$0xff] %v5950_v48  ;;  %v5954_v9 = vld [vmem:[#allocation9 + $0x10] sm:$0xff] }
 0x29c   :  { %1755 = vmatprep.subr.mxu0 %v5942_v52  ;;  %1826 = vmatprep.subr.mxu1 %v5945_v51  ;;  %v5948_v62 = vmul.f32 %v4078_v31, %v4076_v39  ;;  %7696 = vst [vmem:[#allocation69_spill] sm:$0xff] %v5954_v9  ;;  %v5963_v39 = vld [vmem:[#allocation7 + $0x1f0] sm:$0xff]  ;;  %v5967_v31 = vld [vmem:[#allocation7 + $0x1d8] sm:$0xff] }
 0x29d   :  { %1756 = vmatpush1.msra.mxu0 %v5950_v48  ;;  %1789 = vmatprep.mubr.f32.mxu0 %v7516_v41  ;;  %7697 = vst [vmem:[#allocation70_spill] sm:$0xff] %v5963_v39  ;;  %7698 = vst [vmem:[#allocation78_spill] sm:$0xff] %v5967_v31 }
 0x29e   :  { %7694 = vst [vmem:[#allocation67_spill] sm:$0xff] %v5948_v62  ;;  %1827 = vmatpush1.msra.mxu1 %v5954_v9  ;;  %1860 = vmatprep.mubr.f32.mxu1 %v7516_v41  ;;  %v5971_v9 = vld [vmem:[#allocation7 + $0x1d0] sm:$0xff] }
 0x29f   :  { %1790 = vmatmul.mubr.f32.vlgmr.msra.gmra.mxu0 %v5948_v62  ;;  %1861 = vmatmul.mubr.f32.vlgmr.msra.gmra.mxu1 %v5948_v62  ;;  %7699 = vst [vmem:[#allocation80_spill] sm:$0xff] %v5971_v9  ;;  %v5975_v62 = vld [vmem:[#allocation7 + $0x1b8] sm:$0xff] }
 0x2a0   :  { %1910 = vmatprep.subr.mxu0 %v5612_v46  ;;  %1981 = vmatprep.subr.mxu1 %v5615_v47  ;;  %7700 = vst [vmem:[#allocation105_spill] sm:$0xff] %v5975_v62 }
 0x2a1   :  { %1911 = vmatpush1.msra.mxu0 %v5618_v53  ;;  %1982 = vmatpush1.msra.mxu1 %v5963_v39  ;;  %v5979_v39 = vld [vmem:[#allocation7 + $0x1b0] sm:$0xff] }
 0x2a2   :  { %1912 = vmatprep.subr.mxu0 %v5622_v50  ;;  %1983 = vmatprep.subr.mxu1 %v5967_v31  ;;  %7701 = vst [vmem:[#allocation104_spill] sm:$0xff] %v5979_v39  ;;  %v5983_v31 = vld [vmem:[#allocation7 + $0x198] sm:$0xff] }
 0x2a3   :  { %1913 = vmatpush1.msra.mxu0 %v5626_v55  ;;  %1984 = vmatpush1.msra.mxu1 %v5971_v9  ;;  %7702 = vst [vmem:[#allocation99_spill] sm:$0xff] %v5983_v31  ;;  %v5987_v9 = vld [vmem:[#allocation7 + $0x190] sm:$0xff] }
 0x2a4   :  { %1914 = vmatprep.subr.mxu0 %v5630_v3  ;;  %1985 = vmatprep.subr.mxu1 %v5975_v62  ;;  %7703 = vst [vmem:[#allocation101_spill] sm:$0xff] %v5987_v9  ;;  %v5991_v62 = vld [vmem:[#allocation7 + $0x178] sm:$0xff] }
 0x2a5   :  { %1915 = vmatpush1.msra.mxu0 %v5634_v24  ;;  %1986 = vmatpush1.msra.mxu1 %v5979_v39  ;;  %7704 = vst [vmem:[#allocation130_spill] sm:$0xff] %v5991_v62  ;;  %v5995_v39 = vld [vmem:[#allocation7 + $0x170] sm:$0xff] }
 0x2a6   :  { %1916 = vmatprep.subr.mxu0 %v5638_v34  ;;  %1987 = vmatprep.subr.mxu1 %v5983_v31  ;;  %7705 = vst [vmem:[#allocation132_spill] sm:$0xff] %v5995_v39  ;;  %v5999_v31 = vld [vmem:[#allocation7 + $0x158] sm:$0xff] }
 0x2a7   :  { %1917 = vmatpush1.msra.mxu0 %v5642_v12  ;;  %1988 = vmatpush1.msra.mxu1 %v5987_v9  ;;  %7706 = vst [vmem:[#allocation133_spill] sm:$0xff] %v5999_v31  ;;  %v6003_v9 = vld [vmem:[#allocation7 + $0x150] sm:$0xff] }
 0x2a8   :  { %1918 = vmatprep.subr.mxu0 %v5646_v19  ;;  %1989 = vmatprep.subr.mxu1 %v5991_v62  ;;  %7707 = vst [vmem:[#allocation134_spill] sm:$0xff] %v6003_v9  ;;  %v6007_v62 = vld [vmem:[#allocation7 + $0x138] sm:$0xff] }
 0x2a9   :  { %1919 = vmatpush1.msra.mxu0 %v5650_v16  ;;  %1990 = vmatpush1.msra.mxu1 %v5995_v39  ;;  %7708 = vst [vmem:[#allocation135_spill] sm:$0xff] %v6007_v62  ;;  %v6011_v39 = vld [vmem:[#allocation7 + $0x130] sm:$0xff] }
 0x2aa   :  { %1920 = vmatprep.subr.mxu0 %v5654_v5  ;;  %1991 = vmatprep.subr.mxu1 %v5999_v31  ;;  %7709 = vst [vmem:[#allocation136_spill] sm:$0xff] %v6011_v39  ;;  %v6015_v31 = vld [vmem:[#allocation7 + $0x118] sm:$0xff] }
 0x2ab   :  { %1921 = vmatpush1.msra.mxu0 %v5658_v13  ;;  %1992 = vmatpush1.msra.mxu1 %v6003_v9  ;;  %7710 = vst [vmem:[#allocation137_spill] sm:$0xff] %v6015_v31  ;;  %v6019_v9 = vld [vmem:[#allocation7 + $0x110] sm:$0xff] }
 0x2ac   :  { %1922 = vmatprep.subr.mxu0 %v5662_v56  ;;  %1993 = vmatprep.subr.mxu1 %v6007_v62  ;;  %7711 = vst [vmem:[#allocation138_spill] sm:$0xff] %v6019_v9  ;;  %v6023_v62 = vld [vmem:[#allocation7 + $0xf8] sm:$0xff] }
 0x2ad   :  { %1923 = vmatpush1.msra.mxu0 %v5666_v59  ;;  %1994 = vmatpush1.msra.mxu1 %v6011_v39  ;;  %7712 = vst [vmem:[#allocation139_spill] sm:$0xff] %v6023_v62  ;;  %v6027_v39 = vld [vmem:[#allocation7 + $0xf0] sm:$0xff] }
 0x2ae   :  { %1924 = vmatprep.subr.mxu0 %v5670_v60  ;;  %1995 = vmatprep.subr.mxu1 %v6015_v31  ;;  %7713 = vst [vmem:[#allocation140_spill] sm:$0xff] %v6027_v39  ;;  %v6031_v31 = vld [vmem:[#allocation7 + $0xd8] sm:$0xff] }
 0x2af   :  { %1925 = vmatpush1.msra.mxu0 %v5674_v26  ;;  %1996 = vmatpush1.msra.mxu1 %v6019_v9  ;;  %7714 = vst [vmem:[#allocation141_spill] sm:$0xff] %v6031_v31  ;;  %v6035_v9 = vld [vmem:[#allocation7 + $0xd0] sm:$0xff] }
 0x2b0   :  { %1926 = vmatprep.subr.mxu0 %v5678_v28  ;;  %1997 = vmatprep.subr.mxu1 %v6023_v62  ;;  %7715 = vst [vmem:[#allocation142_spill] sm:$0xff] %v6035_v9  ;;  %v6039_v62 = vld [vmem:[#allocation7 + $0xb8] sm:$0xff] }
 0x2b1   :  { %1927 = vmatpush1.msra.mxu0 %v5682_v8  ;;  %1998 = vmatpush1.msra.mxu1 %v6027_v39  ;;  %7716 = vst [vmem:[#allocation143_spill] sm:$0xff] %v6039_v62  ;;  %v6043_v39 = vld [vmem:[#allocation7 + $0xb0] sm:$0xff] }
 0x2b2   :  { %1928 = vmatprep.subr.mxu0 %v5686_v11  ;;  %1999 = vmatprep.subr.mxu1 %v6031_v31  ;;  %7717 = vst [vmem:[#allocation144_spill] sm:$0xff] %v6043_v39  ;;  %v6047_v31 = vld [vmem:[#allocation7 + $0x98] sm:$0xff] }
 0x2b3   :  { %1929 = vmatpush1.msra.mxu0 %v5690_v4  ;;  %2000 = vmatpush1.msra.mxu1 %v6035_v9  ;;  %7718 = vst [vmem:[#allocation145_spill] sm:$0xff] %v6047_v31  ;;  %v6051_v9 = vld [vmem:[#allocation7 + $0x90] sm:$0xff] }
 0x2b4   :  { %1930 = vmatprep.subr.mxu0 %v5694_v33  ;;  %2001 = vmatprep.subr.mxu1 %v6039_v62  ;;  %7719 = vst [vmem:[#allocation146_spill] sm:$0xff] %v6051_v9  ;;  %v6055_v62 = vld [vmem:[#allocation7 + $0x78] sm:$0xff] }
 0x2b5   :  { %1931 = vmatpush1.msra.mxu0 %v5698_v2  ;;  %2002 = vmatpush1.msra.mxu1 %v6043_v39  ;;  %7720 = vst [vmem:[#allocation147_spill] sm:$0xff] %v6055_v62  ;;  %v6059_v39 = vld [vmem:[#allocation7 + $0x70] sm:$0xff] }
 0x2b6   :  { %1932 = vmatprep.subr.mxu0 %v5702_v37  ;;  %2003 = vmatprep.subr.mxu1 %v6047_v31  ;;  %7721 = vst [vmem:[#allocation148_spill] sm:$0xff] %v6059_v39  ;;  %v6063_v31 = vld [vmem:[#allocation7 + $0x58] sm:$0xff]  ;;  %v7732_v37 = vld [vmem:[#allocation106_spill] sm:$0xff] }
 0x2b7   :  { %1933 = vmatpush1.msra.mxu0 %v5706_v21  ;;  %2004 = vmatpush1.msra.mxu1 %v6051_v9  ;;  %7722 = vst [vmem:[#allocation149_spill] sm:$0xff] %v6063_v31  ;;  %v6067_v9 = vld [vmem:[#allocation7 + $0x50] sm:$0xff] }
 0x2b8   :  { %1934 = vmatprep.subr.mxu0 %v5710_v14  ;;  %2005 = vmatprep.subr.mxu1 %v6055_v62  ;;  %7723 = vst [vmem:[#allocation150_spill] sm:$0xff] %v6067_v9  ;;  %v6071_v62 = vld [vmem:[#allocation7 + $0x38] sm:$0xff]  ;;  %v7731_v14 = vld [vmem:[#allocation107_spill] sm:$0xff] }
 0x2b9   :  { %1935 = vmatpush1.msra.mxu0 %v5714_v40  ;;  %2006 = vmatpush1.msra.mxu1 %v6059_v39  ;;  %7724 = vst [vmem:[#allocation151_spill] sm:$0xff] %v6071_v62  ;;  %v6075_v39 = vld [vmem:[#allocation7 + $0x30] sm:$0xff] }
 0x2ba   :  { %1936 = vmatprep.subr.mxu0 %v5718_v23  ;;  %2007 = vmatprep.subr.mxu1 %v6063_v31  ;;  %7725 = vst [vmem:[#allocation152_spill] sm:$0xff] %v6075_v39  ;;  %v6079_v31 = vld [vmem:[#allocation7 + $0x18] sm:$0xff] }
 0x2bb   :  { %1937 = vmatpush1.msra.mxu0 %v5722_v18  ;;  %2008 = vmatpush1.msra.mxu1 %v6067_v9  ;;  %7726 = vst [vmem:[#allocation153_spill] sm:$0xff] %v6079_v31  ;;  %v6083_v9 = vld [vmem:[#allocation7 + $0x10] sm:$0xff] }
 0x2bc   :  { %1938 = vmatprep.subr.mxu0 %v5726_v27  ;;  %2009 = vmatprep.subr.mxu1 %v6071_v62  ;;  %7727 = vst [vmem:[#allocation154_spill] sm:$0xff] %v6083_v9 }
 0x2bd   :  { %1939 = vmatpush1.msra.mxu0 %v5730_v6  ;;  %2010 = vmatpush1.msra.mxu1 %v6075_v39  ;;  %v6089_v6 = vld [vmem:[#allocation9 + $0x1f8] sm:$0xff]  ;;  %v7729_v39 = vld [vmem:[#allocation82_spill] sm:$0xff] }
 0x2be   :  { %1940 = vmatprep.subr.mxu0 %v5734_v10  ;;  %2011 = vmatprep.subr.mxu1 %v6079_v31  ;;  %7728 = vst [vmem:[#allocation155_spill] sm:$0xff] %v6089_v6 }
 0x2bf   :  { %1941 = vmatpush1.msra.mxu0 %v5738_v45  ;;  %2012 = vmatpush1.msra.mxu1 %v6083_v9  ;;  %v7730_v45 = vld [vmem:[#allocation84_spill] sm:$0xff] }
 0x2c0   :  { %1974 = vmatprep.mubr.f32.mxu0 %v7516_v41  ;;  %2045 = vmatprep.mubr.f32.mxu1 %v7516_v41 }
 0x2c1   :  { %2087 = vmatprep.subr.mxu0 %v5744_v54  ;;  %2158 = vmatprep.subr.mxu1 %v6089_v6 }
 0x33e   :  { %v1614_v10 = vpop.f32.mrf.mxu0  ;;  %v1685_v23 = vpop.f32.mrf.mxu1 }
 0x33f   :  { %v1690_v62 = vadd.f32 %v1614_v10, %v7729_v39  ;;  %v1692_v54 = vadd.f32 %v1685_v23, %v7732_v37  ;;  %v7734_v37 = vld [vmem:[#allocation97_spill] sm:$0xff] }
 0x340   :  { %v1616_v31 = vpop.f32.mrf.mxu0  ;;  %v1687_v40 = vpop.f32.mrf.mxu1 }
 0x341   :  { %v3910_v27 = vmul.f32 -1.442695, %v1690_v62  ;;  %v1691_v18 = vadd.f32 %v1616_v31, %v7730_v45  ;;  %v1693_v21 = vadd.f32 %v1687_v40, %v7731_v14 }
 0x343   :  { %4079 = vpow2.f32 %v3910_v27  ;;  %v3911_v9 = vmul.f32 -1.442695, %v1691_v18  ;;  %v3912_v2 = vmul.f32 -1.442695, %v1693_v21  ;;  %v7733_v18 = vld [vmem:[#allocation95_spill] sm:$0xff] }
 0x345   :  { %4081 = vpow2.f32 %v3911_v9 }
 0x346   :  { %4083 = vtanh.f32 %v1692_v54 }
 0x347   :  { %4085 = vpow2.f32 %v3912_v2 }
 0x350   :  { %v4080_v33 = vpop.eup %4079 }
 0x351   :  { %v1697_v4 = vadd.f32 1.0, %v4080_v33 }
 0x352   :  { %v4082_v6 = vpop.eup %4081 }
 0x353   :  { %4087 = vrcp.f32 %v1697_v4  ;;  %v1703_v10 = vadd.f32 1.0, %v4082_v6  ;;  %v4084_v62 = vpop.eup %4083 }
 0x354   :  { %v4086_v45 = vpop.eup %4085 }
 0x355   :  { %4089 = vrcp.f32 %v1703_v10  ;;  %v1710_v23 = vadd.f32 1.0, %v4086_v45  ;;  %v7735_v10 = vld [vmem:[#allocation129_spill] sm:$0xff] }
 0x35f   :  { %v1791_v27 = vpop.f32.mrf.mxu0  ;;  %v1862_v2 = vpop.f32.mrf.mxu1 }
 0x360   :  { %v4088_v39 = vpop.eup %4087  ;;  %v1867_v9 = vadd.f32 %v1791_v27, %v7733_v18  ;;  %v7736_v27 = vld [vmem:[#allocation128_spill] sm:$0xff] }
 0x361   :  { %v1714_v31 = vmul.f32 %v4088_v39, %v4084_v62  ;;  %v1793_v11 = vpop.f32.mrf.mxu0  ;;  %v1864_v54 = vpop.f32.mrf.mxu1  ;;  %v1869_v39 = vadd.f32 %v1862_v2, %v7736_v27  ;;  %v7741_v27 = vld [vmem:[#allocation74_spill] sm:$0xff] }
 0x362   :  { %v4090_v14 = vpop.eup %4089  ;;  %v3913_v40 = vmul.f32 -1.442695, %v1867_v9  ;;  %v1868_v21 = vadd.f32 %v1793_v11, %v7734_v37  ;;  %v1870_v62 = vadd.f32 %v1864_v54, %v7735_v10  ;;  %v7740_v54 = vld [vmem:[#allocation33_spill] sm:$0xff] }
 0x363   :  { %v1713_v33 = vmul.f32 %v4090_v14, %v5755_v35 }
 0x364   :  { %4091 = vpow2.f32 %v3913_v40  ;;  %v3914_v4 = vmul.f32 -1.442695, %v1868_v21  ;;  %v3915_v18 = vmul.f32 -1.442695, %v1870_v62 }
 0x365   :  { %v6099_v6 = vadd.f32 %v1714_v31, %v1713_v33 }
 0x366   :  { %4093 = vpow2.f32 %v3914_v4  ;;  %v7739_v4 = vld [vmem:[#allocation73_spill] sm:$0xff] }
 0x367   :  { %4095 = vrcp.f32 %v1710_v23  ;;  %v7738_v23 = vld [vmem:[#allocation32_spill] sm:$0xff] }
 0x368   :  { %4097 = vtanh.f32 %v6099_v6 }
 0x369   :  { %4099 = vtanh.f32 %v1869_v39  ;;  %v7742_v39 = vld [vmem:[#allocation34_spill] sm:$0xff] }
 0x36a   :  { %4101 = vpow2.f32 %v3915_v18 }
 0x371   :  { %v4092_v9 = vpop.eup %4091 }
 0x372   :  { %v1874_v11 = vadd.f32 1.0, %v4092_v9  ;;  %v7743_v9 = vld [vmem:[#allocation35_spill] sm:$0xff] }
 0x373   :  { %v4094_v35 = vpop.eup %4093 }
 0x374   :  { %v4096_v45 = vpop.eup %4095  ;;  %4103 = vrcp.f32 %v1874_v11  ;;  %v1880_v14 = vadd.f32 1.0, %v4094_v35  ;;  %v7744_v11 = vld [vmem:[#allocation75_spill] sm:$0xff] }
 0x375   :  { %v4098_v31 = vpop.eup %4097 }
 0x376   :  { %4105 = vrcp.f32 %v1880_v14  ;;  %v6104_v40 = vmul.f32 %v4098_v31, %v4096_v45  ;;  %v4100_v37 = vpop.eup %4099  ;;  %v7745_v45 = vld [vmem:[#allocation36_spill] sm:$0xff]  ;;  %v7746_v14 = vld [vmem:[#allocation37_spill] sm:$0xff]  ;;  %v7747_v31 = vld [vmem:[#allocation38_spill] sm:$0xff] }
 0x377   :  { %v4102_v21 = vpop.eup %4101 }
 0x378   :  { %7737 = vst [vmem:[#allocation82_spill] sm:$0xff] %v6104_v40  ;;  %1975 = vmatmul.mubr.f32.vlgmr.msra.gmra.mxu0 %v6104_v40  ;;  %2046 = vmatmul.mubr.f32.vlgmr.msra.gmra.mxu1 %v6104_v40  ;;  %v1887_v62 = vadd.f32 1.0, %v4102_v21  ;;  %v7750_v21 = vld [vmem:[#allocation41_spill] sm:$0xff]  ;;  %v7755_v40 = vld [vmem:[#allocation46_spill] sm:$0xff] }
 0x379   :  { %2088 = vmatpush1.msra.mxu0 %v5764_v38  ;;  %2159 = vmatpush1.msra.mxu1 %v5767_v57 }
 0x37a   :  { %2089 = vmatprep.subr.mxu0 %v5770_v61  ;;  %2160 = vmatprep.subr.mxu1 %v5773_v63  ;;  %4107 = vrcp.f32 %v1887_v62  ;;  %v7756_v62 = vld [vmem:[#allocation47_spill] sm:$0xff] }
 0x37b   :  { %2090 = vmatpush1.msra.mxu0 %v5776_v17  ;;  %2161 = vmatpush1.msra.mxu1 %v5779_v58 }
 0x37c   :  { %2091 = vmatprep.subr.mxu0 %v5782_v25  ;;  %2162 = vmatprep.subr.mxu1 %v5785_v1 }
 0x37d   :  { %2092 = vmatpush1.msra.mxu0 %v5788_v49  ;;  %2163 = vmatpush1.msra.mxu1 %v5791_v29 }
 0x37e   :  { %2093 = vmatprep.subr.mxu0 %v5794_v0  ;;  %2164 = vmatprep.subr.mxu1 %v5797_v30 }
 0x37f   :  { %2094 = vmatpush1.msra.mxu0 %v5800_v36  ;;  %2165 = vmatpush1.msra.mxu1 %v5803_v15 }
 0x380   :  { %2095 = vmatprep.subr.mxu0 %v5806_v20  ;;  %2166 = vmatprep.subr.mxu1 %v5809_v7 }
 0x381   :  { %v4104_v33 = vpop.eup %4103  ;;  %2096 = vmatpush1.msra.mxu0 %v7738_v23  ;;  %2167 = vmatpush1.msra.mxu1 %v5815_v44 }
 0x382   :  { %v1891_v2 = vmul.f32 %v4104_v33, %v4100_v37  ;;  %2097 = vmatprep.subr.mxu0 %v7739_v4  ;;  %2168 = vmatprep.subr.mxu1 %v7740_v54  ;;  %v7748_v37 = vld [vmem:[#allocation39_spill] sm:$0xff]  ;;  %v7751_v33 = vld [vmem:[#allocation42_spill] sm:$0xff] }
 0x383   :  { %v4106_v10 = vpop.eup %4105  ;;  %2098 = vmatpush1.msra.mxu0 %v7741_v27  ;;  %2169 = vmatpush1.msra.mxu1 %v7742_v39 }
 0x384   :  { %v1890_v18 = vmul.f32 %v4106_v10, %v5843_v22  ;;  %2099 = vmatprep.subr.mxu0 %v5831_v43  ;;  %2170 = vmatprep.subr.mxu1 %v5834_v32  ;;  %v7749_v22 = vld [vmem:[#allocation40_spill] sm:$0xff]  ;;  %v7752_v10 = vld [vmem:[#allocation43_spill] sm:$0xff] }
 0x385   :  { %2100 = vmatpush1.msra.mxu0 %v7743_v9  ;;  %2171 = vmatpush1.msra.mxu1 %v7744_v11 }
 0x386   :  { %v6135_v35 = vadd.f32 %v1891_v2, %v1890_v18  ;;  %2101 = vmatprep.subr.mxu0 %v7745_v45  ;;  %2172 = vmatprep.subr.mxu1 %v7746_v14  ;;  %v7753_v2 = vld [vmem:[#allocation44_spill] sm:$0xff]  ;;  %v7754_v18 = vld [vmem:[#allocation45_spill] sm:$0xff]  ;;  %v7775_v45 = vld [vmem:[#allocation66_spill] sm:$0xff] }
 0x387   :  { %2102 = vmatpush1.msra.mxu0 %v7747_v31  ;;  %2173 = vmatpush1.msra.mxu1 %v7748_v37  ;;  %v7757_v31 = vld [vmem:[#allocation48_spill] sm:$0xff]  ;;  %v7758_v37 = vld [vmem:[#allocation49_spill] sm:$0xff] }
 0x388   :  { %2103 = vmatprep.subr.mxu0 %v7749_v22  ;;  %2174 = vmatprep.subr.mxu1 %v7750_v21  ;;  %4109 = vtanh.f32 %v6135_v35  ;;  %v7759_v22 = vld [vmem:[#allocation50_spill] sm:$0xff]  ;;  %v7760_v21 = vld [vmem:[#allocation51_spill] sm:$0xff]  ;;  %v7761_v14 = vld [vmem:[#allocation52_spill] sm:$0xff] }
 0x389   :  { %2104 = vmatpush1.msra.mxu0 %v7751_v33  ;;  %2175 = vmatpush1.msra.mxu1 %v7752_v10  ;;  %v7762_v33 = vld [vmem:[#allocation53_spill] sm:$0xff]  ;;  %v7763_v10 = vld [vmem:[#allocation54_spill] sm:$0xff] }
 0x38a   :  { %2105 = vmatprep.subr.mxu0 %v7753_v2  ;;  %2176 = vmatprep.subr.mxu1 %v7754_v18  ;;  %v7764_v2 = vld [vmem:[#allocation55_spill] sm:$0xff]  ;;  %v7765_v18 = vld [vmem:[#allocation56_spill] sm:$0xff] }
 0x38b   :  { %2106 = vmatpush1.msra.mxu0 %v7755_v40  ;;  %2177 = vmatpush1.msra.mxu1 %v7756_v62  ;;  %v7766_v40 = vld [vmem:[#allocation57_spill] sm:$0xff]  ;;  %v7767_v62 = vld [vmem:[#allocation58_spill] sm:$0xff] }
 0x38c   :  { %2107 = vmatprep.subr.mxu0 %v7757_v31  ;;  %2178 = vmatprep.subr.mxu1 %v7758_v37  ;;  %v7768_v31 = vld [vmem:[#allocation59_spill] sm:$0xff]  ;;  %v7769_v37 = vld [vmem:[#allocation60_spill] sm:$0xff] }
 0x38d   :  { %2108 = vmatpush1.msra.mxu0 %v7759_v22  ;;  %2179 = vmatpush1.msra.mxu1 %v7760_v21  ;;  %v7770_v22 = vld [vmem:[#allocation61_spill] sm:$0xff]  ;;  %v7771_v21 = vld [vmem:[#allocation62_spill] sm:$0xff] }
 0x38e   :  { %2109 = vmatprep.subr.mxu0 %v7761_v14  ;;  %2180 = vmatprep.subr.mxu1 %v7762_v33  ;;  %v7772_v14 = vld [vmem:[#allocation63_spill] sm:$0xff]  ;;  %v4108_v33 = vpop.eup %4107 }
 0x38f   :  { %2110 = vmatpush1.msra.mxu0 %v7763_v10  ;;  %2181 = vmatpush1.msra.mxu1 %v7764_v2  ;;  %v7773_v10 = vld [vmem:[#allocation64_spill] sm:$0xff]  ;;  %v7774_v2 = vld [vmem:[#allocation65_spill] sm:$0xff] }
 0x390   :  { %2111 = vmatprep.subr.mxu0 %v7765_v18  ;;  %2182 = vmatprep.subr.mxu1 %v7766_v40 }
 0x391   :  { %2112 = vmatpush1.msra.mxu0 %v7767_v62  ;;  %2183 = vmatpush1.msra.mxu1 %v7768_v31 }
 0x392   :  { %2113 = vmatprep.subr.mxu0 %v7769_v37  ;;  %2184 = vmatprep.subr.mxu1 %v7770_v22 }
 0x393   :  { %2114 = vmatpush1.msra.mxu0 %v7771_v21  ;;  %2185 = vmatpush1.msra.mxu1 %v7772_v14  ;;  %v7777_v14 = vld [vmem:[#allocation69_spill] sm:$0xff] }
 0x394   :  { %2115 = vmatprep.subr.mxu0 %v7773_v10  ;;  %2186 = vmatprep.subr.mxu1 %v7774_v2 }
 0x395   :  { %v4110_v18 = vpop.eup %4109  ;;  %2116 = vmatpush1.msra.mxu0 %v7775_v45  ;;  %2187 = vmatpush1.msra.mxu1 %v5939_v42 }
 0x396   :  { %2117 = vmatprep.subr.mxu0 %v5942_v52  ;;  %2188 = vmatprep.subr.mxu1 %v5945_v51  ;;  %v6172_v37 = vmul.f32 %v4110_v18, %v4108_v33  ;;  %v7778_v33 = vld [vmem:[#allocation70_spill] sm:$0xff] }
 0x397   :  { %2118 = vmatpush1.msra.mxu0 %v5950_v48  ;;  %2151 = vmatprep.mubr.f32.mxu0 %v7516_v41  ;;  %v7779_v18 = vld [vmem:[#allocation78_spill] sm:$0xff]  ;;  %v7781_v48 = vld [vmem:[#allocation105_spill] sm:$0xff] }
 0x398   :  { %7776 = vst [vmem:[#allocation84_spill] sm:$0xff] %v6172_v37  ;;  %2189 = vmatpush1.msra.mxu1 %v7777_v14  ;;  %2222 = vmatprep.mubr.f32.mxu1 %v7516_v41  ;;  %v7780_v14 = vld [vmem:[#allocation80_spill] sm:$0xff] }
 0x399   :  { %2152 = vmatmul.mubr.f32.vlgmr.msra.gmra.mxu0 %v6172_v37  ;;  %2223 = vmatmul.mubr.f32.vlgmr.msra.gmra.mxu1 %v6172_v37  ;;  %v7797_v37 = vld [vmem:[#allocation19_spill] sm:$0xff] }
 0x39a   :  { %2269 = vmatprep.subr.mxu0 %v5612_v46  ;;  %2340 = vmatprep.subr.mxu1 %v5615_v47  ;;  %v7782_v46 = vld [vmem:[#allocation104_spill] sm:$0xff]  ;;  %v7783_v47 = vld [vmem:[#allocation99_spill] sm:$0xff] }
 0x39b   :  { %2270 = vmatpush1.msra.mxu0 %v5618_v53  ;;  %2341 = vmatpush1.msra.mxu1 %v7778_v33  ;;  %v7784_v53 = vld [vmem:[#allocation101_spill] sm:$0xff] }
 0x39c   :  { %2271 = vmatprep.subr.mxu0 %v5622_v50  ;;  %2342 = vmatprep.subr.mxu1 %v7779_v18  ;;  %v7785_v50 = vld [vmem:[#allocation130_spill] sm:$0xff] }
 0x39d   :  { %2272 = vmatpush1.msra.mxu0 %v5626_v55  ;;  %2343 = vmatpush1.msra.mxu1 %v7780_v14  ;;  %v7786_v55 = vld [vmem:[#allocation132_spill] sm:$0xff] }
 0x39e   :  { %2273 = vmatprep.subr.mxu0 %v5630_v3  ;;  %2344 = vmatprep.subr.mxu1 %v7781_v48  ;;  %v7787_v3 = vld [vmem:[#allocation133_spill] sm:$0xff] }
 0x39f   :  { %2274 = vmatpush1.msra.mxu0 %v5634_v24  ;;  %2345 = vmatpush1.msra.mxu1 %v7782_v46  ;;  %v7788_v24 = vld [vmem:[#allocation134_spill] sm:$0xff] }
 0x3a0   :  { %2275 = vmatprep.subr.mxu0 %v5638_v34  ;;  %2346 = vmatprep.subr.mxu1 %v7783_v47  ;;  %v7789_v34 = vld [vmem:[#allocation135_spill] sm:$0xff] }
 0x3a1   :  { %2276 = vmatpush1.msra.mxu0 %v5642_v12  ;;  %2347 = vmatpush1.msra.mxu1 %v7784_v53  ;;  %v7790_v12 = vld [vmem:[#allocation136_spill] sm:$0xff] }
 0x3a2   :  { %2277 = vmatprep.subr.mxu0 %v5646_v19  ;;  %2348 = vmatprep.subr.mxu1 %v7785_v50  ;;  %v7791_v19 = vld [vmem:[#allocation137_spill] sm:$0xff] }
 0x3a3   :  { %2278 = vmatpush1.msra.mxu0 %v5650_v16  ;;  %2349 = vmatpush1.msra.mxu1 %v7786_v55  ;;  %v7792_v16 = vld [vmem:[#allocation138_spill] sm:$0xff] }
 0x3a4   :  { %2279 = vmatprep.subr.mxu0 %v5654_v5  ;;  %2350 = vmatprep.subr.mxu1 %v7787_v3  ;;  %v7793_v5 = vld [vmem:[#allocation139_spill] sm:$0xff]  ;;  %v7828_v3 = vld [vmem:[#allocation108_spill] sm:$0xff] }
 0x3a5   :  { %2280 = vmatpush1.msra.mxu0 %v5658_v13  ;;  %2351 = vmatpush1.msra.mxu1 %v7788_v24  ;;  %v7794_v13 = vld [vmem:[#allocation140_spill] sm:$0xff] }
 0x3a6   :  { %2281 = vmatprep.subr.mxu0 %v5662_v56  ;;  %2352 = vmatprep.subr.mxu1 %v7789_v34  ;;  %v7795_v56 = vld [vmem:[#allocation18_spill] sm:$0xff]  ;;  %v7827_v34 = vld [vmem:[#allocation109_spill] sm:$0xff] }
 0x3a7   :  { %2282 = vmatpush1.msra.mxu0 %v5666_v59  ;;  %2353 = vmatpush1.msra.mxu1 %v7790_v12  ;;  %v7796_v59 = vld [vmem:[#allocation141_spill] sm:$0xff] }
 0x3a8   :  { %2283 = vmatprep.subr.mxu0 %v5670_v60  ;;  %2354 = vmatprep.subr.mxu1 %v7791_v19  ;;  %v7798_v60 = vld [vmem:[#allocation142_spill] sm:$0xff]  ;;  %v7799_v19 = vld [vmem:[#allocation20_spill] sm:$0xff] }
 0x3a9   :  { %2284 = vmatpush1.msra.mxu0 %v5674_v26  ;;  %2355 = vmatpush1.msra.mxu1 %v7792_v16  ;;  %v7800_v26 = vld [vmem:[#allocation143_spill] sm:$0xff]  ;;  %v7801_v16 = vld [vmem:[#allocation21_spill] sm:$0xff] }
 0x3aa   :  { %2285 = vmatprep.subr.mxu0 %v5678_v28  ;;  %2356 = vmatprep.subr.mxu1 %v7793_v5  ;;  %v7802_v28 = vld [vmem:[#allocation144_spill] sm:$0xff]  ;;  %v7803_v5 = vld [vmem:[#allocation22_spill] sm:$0xff] }
 0x3ab   :  { %2286 = vmatpush1.msra.mxu0 %v5682_v8  ;;  %2357 = vmatpush1.msra.mxu1 %v7794_v13  ;;  %v7804_v8 = vld [vmem:[#allocation145_spill] sm:$0xff]  ;;  %v7805_v13 = vld [vmem:[#allocation23_spill] sm:$0xff] }
 0x3ac   :  { %2287 = vmatprep.subr.mxu0 %v7795_v56  ;;  %2358 = vmatprep.subr.mxu1 %v7796_v59  ;;  %v7806_v56 = vld [vmem:[#allocation146_spill] sm:$0xff]  ;;  %v7807_v59 = vld [vmem:[#allocation24_spill] sm:$0xff] }
 0x3ad   :  { %2288 = vmatpush1.msra.mxu0 %v7797_v37  ;;  %2359 = vmatpush1.msra.mxu1 %v7798_v60  ;;  %v7808_v37 = vld [vmem:[#allocation147_spill] sm:$0xff]  ;;  %v7809_v60 = vld [vmem:[#allocation25_spill] sm:$0xff] }
 0x3ae   :  { %2289 = vmatprep.subr.mxu0 %v7799_v19  ;;  %2360 = vmatprep.subr.mxu1 %v7800_v26  ;;  %v7810_v19 = vld [vmem:[#allocation148_spill] sm:$0xff]  ;;  %v7811_v26 = vld [vmem:[#allocation26_spill] sm:$0xff] }
 0x3af   :  { %2290 = vmatpush1.msra.mxu0 %v7801_v16  ;;  %2361 = vmatpush1.msra.mxu1 %v7802_v28  ;;  %v7812_v16 = vld [vmem:[#allocation149_spill] sm:$0xff]  ;;  %v7813_v28 = vld [vmem:[#allocation27_spill] sm:$0xff] }
 0x3b0   :  { %2291 = vmatprep.subr.mxu0 %v7803_v5  ;;  %2362 = vmatprep.subr.mxu1 %v7804_v8  ;;  %v7814_v5 = vld [vmem:[#allocation150_spill] sm:$0xff]  ;;  %v7815_v8 = vld [vmem:[#allocation28_spill] sm:$0xff] }
 0x3b1   :  { %2292 = vmatpush1.msra.mxu0 %v7805_v13  ;;  %2363 = vmatpush1.msra.mxu1 %v7806_v56  ;;  %v7816_v13 = vld [vmem:[#allocation151_spill] sm:$0xff]  ;;  %v7817_v56 = vld [vmem:[#allocation29_spill] sm:$0xff] }
 0x3b2   :  { %2293 = vmatprep.subr.mxu0 %v7807_v59  ;;  %2364 = vmatprep.subr.mxu1 %v7808_v37  ;;  %v7818_v59 = vld [vmem:[#allocation152_spill] sm:$0xff]  ;;  %v7819_v37 = vld [vmem:[#allocation71_spill] sm:$0xff] }
 0x3b3   :  { %2294 = vmatpush1.msra.mxu0 %v7809_v60  ;;  %2365 = vmatpush1.msra.mxu1 %v7810_v19  ;;  %v7820_v60 = vld [vmem:[#allocation153_spill] sm:$0xff]  ;;  %v7821_v19 = vld [vmem:[#allocation30_spill] sm:$0xff] }
 0x3b4   :  { %2295 = vmatprep.subr.mxu0 %v7811_v26  ;;  %2366 = vmatprep.subr.mxu1 %v7812_v16  ;;  %v7822_v26 = vld [vmem:[#allocation154_spill] sm:$0xff] }
 0x3b5   :  { %2296 = vmatpush1.msra.mxu0 %v7813_v28  ;;  %2367 = vmatpush1.msra.mxu1 %v7814_v5  ;;  %v7823_v28 = vld [vmem:[#allocation31_spill] sm:$0xff] }
 0x3b6   :  { %2297 = vmatprep.subr.mxu0 %v7815_v8  ;;  %2368 = vmatprep.subr.mxu1 %v7816_v13  ;;  %v7824_v8 = vld [vmem:[#allocation155_spill] sm:$0xff] }
 0x3b7   :  { %2298 = vmatpush1.msra.mxu0 %v7817_v56  ;;  %2369 = vmatpush1.msra.mxu1 %v7818_v59  ;;  %v7825_v56 = vld [vmem:[#allocation86_spill] sm:$0xff] }
 0x3b8   :  { %2299 = vmatprep.subr.mxu0 %v7819_v37  ;;  %2370 = vmatprep.subr.mxu1 %v7820_v60  ;;  %v7826_v37 = vld [vmem:[#allocation88_spill] sm:$0xff] }
 0x3b9   :  { %2300 = vmatpush1.msra.mxu0 %v7821_v19  ;;  %2371 = vmatpush1.msra.mxu1 %v7822_v26 }
 0x3ba   :  { %2333 = vmatprep.mubr.f32.mxu0 %v7516_v41  ;;  %2404 = vmatprep.mubr.f32.mxu1 %v7516_v41 }
 0x3bb   :  { %2443 = vmatprep.subr.mxu0 %v7823_v28  ;;  %2514 = vmatprep.subr.mxu1 %v7824_v8 }
 0x438   :  { %v1976_v13 = vpop.f32.mrf.mxu0  ;;  %v2047_v60 = vpop.f32.mrf.mxu1 }
 0x439   :  { %v2052_v5 = vadd.f32 %v1976_v13, %v7825_v56  ;;  %v2054_v55 = vadd.f32 %v2047_v60, %v7828_v3  ;;  %v7830_v3 = vld [vmem:[#allocation93_spill] sm:$0xff] }
 0x43a   :  { %v1978_v59 = vpop.f32.mrf.mxu0  ;;  %v2049_v26 = vpop.f32.mrf.mxu1 }
 0x43b   :  { %v3916_v16 = vmul.f32 -1.442695, %v2052_v5  ;;  %v2053_v12 = vadd.f32 %v1978_v59, %v7826_v37  ;;  %v2055_v24 = vadd.f32 %v2049_v26, %v7827_v34 }
 0x43d   :  { %4111 = vpow2.f32 %v3916_v16  ;;  %v3917_v19 = vmul.f32 -1.442695, %v2053_v12  ;;  %v3918_v50 = vmul.f32 -1.442695, %v2055_v24  ;;  %v7829_v12 = vld [vmem:[#allocation91_spill] sm:$0xff] }
 0x43f   :  { %4113 = vpow2.f32 %v3917_v19 }
 0x440   :  { %4115 = vtanh.f32 %v2054_v55 }
 0x441   :  { %4117 = vpow2.f32 %v3918_v50 }
 0x44a   :  { %v4112_v28 = vpop.eup %4111 }
 0x44b   :  { %v2059_v53 = vadd.f32 1.0, %v4112_v28 }
 0x44c   :  { %v4114_v8 = vpop.eup %4113 }
 0x44d   :  { %4119 = vrcp.f32 %v2059_v53  ;;  %v2065_v13 = vadd.f32 1.0, %v4114_v8  ;;  %v4116_v5 = vpop.eup %4115 }
 0x44e   :  { %v4118_v59 = vpop.eup %4117 }
 0x44f   :  { %4121 = vrcp.f32 %v2065_v13  ;;  %v2072_v55 = vadd.f32 1.0, %v4118_v59  ;;  %v7831_v13 = vld [vmem:[#allocation127_spill] sm:$0xff] }
 0x459   :  { %v2153_v16 = vpop.f32.mrf.mxu0  ;;  %v2224_v50 = vpop.f32.mrf.mxu1 }
 0x45a   :  { %v4120_v56 = vpop.eup %4119  ;;  %v2229_v37 = vadd.f32 %v2153_v16, %v7829_v12  ;;  %v7832_v16 = vld [vmem:[#allocation126_spill] sm:$0xff] }
 0x45b   :  { %v2076_v19 = vmul.f32 %v4120_v56, %v4116_v5  ;;  %v2155_v47 = vpop.f32.mrf.mxu0  ;;  %v2226_v28 = vpop.f32.mrf.mxu1  ;;  %v2231_v56 = vadd.f32 %v2224_v50, %v7832_v16  ;;  %v7864_v16 = vld [vmem:[#allocation133_spill] sm:$0xff] }
 0x45c   :  { %v4122_v34 = vpop.eup %4121  ;;  %v3919_v26 = vmul.f32 -1.442695, %v2229_v37  ;;  %v2230_v24 = vadd.f32 %v2155_v47, %v7830_v3  ;;  %v2232_v5 = vadd.f32 %v2226_v28, %v7831_v13  ;;  %v7853_v3 = vld [vmem:[#allocation55_spill] sm:$0xff]  ;;  %v6370_v28 = vld [vmem:[#allocation7 + $0x168] sm:$0xff]  ;;  %v6374_v13 = vld [vmem:[#allocation7 + $0x160] sm:$0xff] }
 0x45d   :  { %v2075_v60 = vmul.f32 %v4122_v34, %v6099_v6 }
 0x45e   :  { %4123 = vpow2.f32 %v3919_v26  ;;  %v3920_v53 = vmul.f32 -1.442695, %v2230_v24  ;;  %v3921_v12 = vmul.f32 -1.442695, %v2232_v5  ;;  %v7854_v24 = vld [vmem:[#allocation56_spill] sm:$0xff]  ;;  %v6378_v5 = vld [vmem:[#allocation7 + $0x148] sm:$0xff] }
 0x45f   :  { %v6255_v8 = vadd.f32 %v2076_v19, %v2075_v60  ;;  %v7855_v60 = vld [vmem:[#allocation60_spill] sm:$0xff] }
 0x460   :  { %4125 = vpow2.f32 %v3920_v53 }
 0x461   :  { %4127 = vrcp.f32 %v2072_v55  ;;  %v7856_v55 = vld [vmem:[#allocation63_spill] sm:$0xff] }
 0x462   :  { %4129 = vtanh.f32 %v6255_v8 }
 0x463   :  { %4131 = vtanh.f32 %v2231_v56  ;;  %v6382_v56 = vld [vmem:[#allocation7 + $0x140] sm:$0xff] }
 0x464   :  { %4133 = vpow2.f32 %v3921_v12  ;;  %v7865_v12 = vld [vmem:[#allocation134_spill] sm:$0xff] }
 0x46b   :  { %v4124_v37 = vpop.eup %4123 }
 0x46c   :  { %v2236_v47 = vadd.f32 1.0, %v4124_v37  ;;  %v6386_v37 = vld [vmem:[#allocation7 + $0x128] sm:$0xff] }
 0x46d   :  { %v4126_v6 = vpop.eup %4125 }
 0x46e   :  { %v4128_v59 = vpop.eup %4127  ;;  %4135 = vrcp.f32 %v2236_v47  ;;  %v2242_v34 = vadd.f32 1.0, %v4126_v6  ;;  %v7866_v47 = vld [vmem:[#allocation135_spill] sm:$0xff]  ;;  %v6390_v6 = vld [vmem:[#allocation7 + $0x120] sm:$0xff] }
 0x46f   :  { %v4130_v19 = vpop.eup %4129 }
 0x470   :  { %4137 = vrcp.f32 %v2242_v34  ;;  %v6260_v26 = vmul.f32 %v4130_v19, %v4128_v59  ;;  %v7867_v59 = vld [vmem:[#allocation136_spill] sm:$0xff]  ;;  %v6394_v34 = vld [vmem:[#allocation7 + $0x108] sm:$0xff]  ;;  %v7868_v19 = vld [vmem:[#allocation137_spill] sm:$0xff] }
 0x472   :  { %7833 = vst [vmem:[#allocation107_spill] sm:$0xff] %v6260_v26  ;;  %2334 = vmatmul.mubr.f32.vlgmr.msra.gmra.mxu0 %v6260_v26  ;;  %2405 = vmatmul.mubr.f32.vlgmr.msra.gmra.mxu1 %v6260_v26  ;;  %v6548_v26 = vld [vmem:[#allocation9 + $0x140] sm:$0xff] }
 0x473   :  { %2444 = vmatpush1.msra.mxu0 %v5764_v38  ;;  %2515 = vmatpush1.msra.mxu1 %v5767_v57  ;;  %v4132_v38 = vpop.eup %4131  ;;  %7914 = vst [vmem:[#allocation70_spill] sm:$0xff] %v6548_v26 }
 0x474   :  { %2445 = vmatprep.subr.mxu0 %v5770_v61  ;;  %2516 = vmatprep.subr.mxu1 %v5773_v63  ;;  %v4134_v57 = vpop.eup %4133 }
 0x475   :  { %2446 = vmatpush1.msra.mxu0 %v5776_v17  ;;  %2517 = vmatpush1.msra.mxu1 %v5779_v58  ;;  %v2249_v58 = vadd.f32 1.0, %v4134_v57  ;;  %v7869_v57 = vld [vmem:[#allocation138_spill] sm:$0xff] }
 0x476   :  { %2447 = vmatprep.subr.mxu0 %v5782_v25  ;;  %2518 = vmatprep.subr.mxu1 %v5785_v1 }
 0x477   :  { %2448 = vmatpush1.msra.mxu0 %v5788_v49  ;;  %2519 = vmatpush1.msra.mxu1 %v5791_v29  ;;  %v7834_v49 = vld [vmem:[#allocation36_spill] sm:$0xff]  ;;  %v7835_v29 = vld [vmem:[#allocation37_spill] sm:$0xff]  ;;  %4139 = vrcp.f32 %v2249_v58 }
 0x478   :  { %2449 = vmatprep.subr.mxu0 %v5794_v0  ;;  %2520 = vmatprep.subr.mxu1 %v5797_v30  ;;  %v7836_v0 = vld [vmem:[#allocation38_spill] sm:$0xff]  ;;  %v7837_v30 = vld [vmem:[#allocation39_spill] sm:$0xff]  ;;  %v7871_v58 = vld [vmem:[#allocation140_spill] sm:$0xff] }
 0x479   :  { %2450 = vmatpush1.msra.mxu0 %v5800_v36  ;;  %2521 = vmatpush1.msra.mxu1 %v5803_v15  ;;  %v7838_v36 = vld [vmem:[#allocation40_spill] sm:$0xff]  ;;  %v7839_v15 = vld [vmem:[#allocation41_spill] sm:$0xff] }
 0x47a   :  { %2451 = vmatprep.subr.mxu0 %v5806_v20  ;;  %2522 = vmatprep.subr.mxu1 %v5809_v7  ;;  %v7840_v20 = vld [vmem:[#allocation42_spill] sm:$0xff]  ;;  %v7841_v7 = vld [vmem:[#allocation43_spill] sm:$0xff] }
 0x47b   :  { %v4136_v61 = vpop.eup %4135  ;;  %2452 = vmatpush1.msra.mxu0 %v7738_v23  ;;  %2523 = vmatpush1.msra.mxu1 %v5815_v44  ;;  %v7842_v44 = vld [vmem:[#allocation44_spill] sm:$0xff]  ;;  %v7845_v23 = vld [vmem:[#allocation47_spill] sm:$0xff] }
 0x47c   :  { %v2253_v63 = vmul.f32 %v4136_v61, %v4132_v38  ;;  %2453 = vmatprep.subr.mxu0 %v7739_v4  ;;  %2524 = vmatprep.subr.mxu1 %v7740_v54  ;;  %v7846_v4 = vld [vmem:[#allocation48_spill] sm:$0xff]  ;;  %v7847_v54 = vld [vmem:[#allocation49_spill] sm:$0xff]  ;;  %v6402_v61 = vld [vmem:[#allocation7 + $0xe8] sm:$0xff] }
 0x47d   :  { %v4138_v17 = vpop.eup %4137  ;;  %2454 = vmatpush1.msra.mxu0 %v7741_v27  ;;  %2525 = vmatpush1.msra.mxu1 %v7742_v39  ;;  %v7848_v27 = vld [vmem:[#allocation50_spill] sm:$0xff]  ;;  %v7849_v39 = vld [vmem:[#allocation51_spill] sm:$0xff]  ;;  %v6398_v38 = vld [vmem:[#allocation7 + $0x100] sm:$0xff] }
 0x47e   :  { %v2252_v25 = vmul.f32 %v4138_v17, %v6135_v35  ;;  %2455 = vmatprep.subr.mxu0 %v5831_v43  ;;  %2526 = vmatprep.subr.mxu1 %v5834_v32  ;;  %v7843_v32 = vld [vmem:[#allocation45_spill] sm:$0xff]  ;;  %v7844_v43 = vld [vmem:[#allocation46_spill] sm:$0xff] }
 0x47f   :  { %2456 = vmatpush1.msra.mxu0 %v7743_v9  ;;  %2527 = vmatpush1.msra.mxu1 %v7744_v11  ;;  %v7850_v9 = vld [vmem:[#allocation52_spill] sm:$0xff]  ;;  %v7851_v11 = vld [vmem:[#allocation53_spill] sm:$0xff]  ;;  %v7852_v35 = vld [vmem:[#allocation54_spill] sm:$0xff] }
 0x480   :  { %v6291_v1 = vadd.f32 %v2253_v63, %v2252_v25  ;;  %2457 = vmatprep.subr.mxu0 %v7834_v49  ;;  %2528 = vmatprep.subr.mxu1 %v7835_v29  ;;  %v7870_v63 = vld [vmem:[#allocation139_spill] sm:$0xff]  ;;  %v6406_v17 = vld [vmem:[#allocation7 + $0xe0] sm:$0xff]  ;;  %v6410_v25 = vld [vmem:[#allocation7 + $0xc8] sm:$0xff] }
 0x481   :  { %2458 = vmatpush1.msra.mxu0 %v7836_v0  ;;  %2529 = vmatpush1.msra.mxu1 %v7837_v30  ;;  %7872 = vst [vmem:[#allocation95_spill] sm:$0xff] %v6410_v25  ;;  %v7873_v49 = vld [vmem:[#allocation141_spill] sm:$0xff]  ;;  %v7875_v0 = vld [vmem:[#allocation142_spill] sm:$0xff] }
 0x482   :  { %2459 = vmatprep.subr.mxu0 %v7838_v36  ;;  %2530 = vmatprep.subr.mxu1 %v7839_v15  ;;  %4141 = vtanh.f32 %v6291_v1  ;;  %v6414_v29 = vld [vmem:[#allocation7 + $0xc0] sm:$0xff]  ;;  %v6418_v30 = vld [vmem:[#allocation7 + $0xa8] sm:$0xff]  ;;  %v7877_v36 = vld [vmem:[#allocation143_spill] sm:$0xff] }
 0x483   :  { %2460 = vmatpush1.msra.mxu0 %v7840_v20  ;;  %2531 = vmatpush1.msra.mxu1 %v7841_v7  ;;  %7874 = vst [vmem:[#allocation97_spill] sm:$0xff] %v6414_v29  ;;  %7876 = vst [vmem:[#allocation129_spill] sm:$0xff] %v6418_v30  ;;  %v6422_v15 = vld [vmem:[#allocation7 + $0xa0] sm:$0xff]  ;;  %v7879_v20 = vld [vmem:[#allocation144_spill] sm:$0xff] }
 0x484   :  { %2461 = vmatprep.subr.mxu0 %v7842_v44  ;;  %2532 = vmatprep.subr.mxu1 %v7843_v32  ;;  %v4140_v50 = vpop.eup %4139  ;;  %7878 = vst [vmem:[#allocation128_spill] sm:$0xff] %v6422_v15  ;;  %v6426_v7 = vld [vmem:[#allocation7 + $0x88] sm:$0xff]  ;;  %v7881_v44 = vld [vmem:[#allocation145_spill] sm:$0xff] }
 0x485   :  { %2462 = vmatpush1.msra.mxu0 %v7844_v43  ;;  %2533 = vmatpush1.msra.mxu1 %v7845_v23  ;;  %7880 = vst [vmem:[#allocation32_spill] sm:$0xff] %v6426_v7  ;;  %v6430_v32 = vld [vmem:[#allocation7 + $0x80] sm:$0xff]  ;;  %v7883_v43 = vld [vmem:[#allocation146_spill] sm:$0xff] }
 0x486   :  { %2463 = vmatprep.subr.mxu0 %v7846_v4  ;;  %2534 = vmatprep.subr.mxu1 %v7847_v54  ;;  %7882 = vst [vmem:[#allocation73_spill] sm:$0xff] %v6430_v32  ;;  %v6434_v23 = vld [vmem:[#allocation7 + $0x68] sm:$0xff]  ;;  %v7885_v4 = vld [vmem:[#allocation147_spill] sm:$0xff]  ;;  %v6438_v54 = vld [vmem:[#allocation7 + $0x60] sm:$0xff] }
 0x487   :  { %2464 = vmatpush1.msra.mxu0 %v7848_v27  ;;  %2535 = vmatpush1.msra.mxu1 %v7849_v39  ;;  %7884 = vst [vmem:[#allocation33_spill] sm:$0xff] %v6434_v23  ;;  %7886 = vst [vmem:[#allocation74_spill] sm:$0xff] %v6438_v54  ;;  %v7887_v27 = vld [vmem:[#allocation148_spill] sm:$0xff]  ;;  %v6442_v39 = vld [vmem:[#allocation7 + $0x48] sm:$0xff] }
 0x488   :  { %2465 = vmatprep.subr.mxu0 %v7850_v9  ;;  %2536 = vmatprep.subr.mxu1 %v7851_v11  ;;  %7888 = vst [vmem:[#allocation34_spill] sm:$0xff] %v6442_v39  ;;  %v7889_v9 = vld [vmem:[#allocation149_spill] sm:$0xff] }
 0x489   :  { %2466 = vmatpush1.msra.mxu0 %v7852_v35  ;;  %2537 = vmatpush1.msra.mxu1 %v7853_v3  ;;  %v6446_v11 = vld [vmem:[#allocation7 + $0x40] sm:$0xff]  ;;  %v7891_v35 = vld [vmem:[#allocation150_spill] sm:$0xff] }
 0x48a   :  { %2467 = vmatprep.subr.mxu0 %v7854_v24  ;;  %2538 = vmatprep.subr.mxu1 %v7766_v40  ;;  %7890 = vst [vmem:[#allocation35_spill] sm:$0xff] %v6446_v11  ;;  %v6450_v3 = vld [vmem:[#allocation7 + $0x28] sm:$0xff]  ;;  %v7893_v24 = vld [vmem:[#allocation151_spill] sm:$0xff] }
 0x48b   :  { %2468 = vmatpush1.msra.mxu0 %v7767_v62  ;;  %2539 = vmatpush1.msra.mxu1 %v7768_v31  ;;  %v7858_v31 = vld [vmem:[#allocation68_spill] sm:$0xff]  ;;  %v6362_v62 = vld [vmem:[#allocation7 + $0x188] sm:$0xff]  ;;  %7892 = vst [vmem:[#allocation75_spill] sm:$0xff] %v6450_v3 }
 0x48c   :  { %2469 = vmatprep.subr.mxu0 %v7855_v60  ;;  %2540 = vmatprep.subr.mxu1 %v7770_v22  ;;  %v7859_v22 = vld [vmem:[#allocation69_spill] sm:$0xff] }
 0x48d   :  { %2470 = vmatpush1.msra.mxu0 %v7771_v21  ;;  %2541 = vmatpush1.msra.mxu1 %v7856_v55  ;;  %v6350_v21 = vld [vmem:[#allocation7 + $0x1c0] sm:$0xff]  ;;  %v7895_v55 = vld [vmem:[#allocation152_spill] sm:$0xff] }
 0x48e   :  { %2471 = vmatprep.subr.mxu0 %v7773_v10  ;;  %2542 = vmatprep.subr.mxu1 %v7774_v2  ;;  %v6354_v10 = vld [vmem:[#allocation7 + $0x1a8] sm:$0xff]  ;;  %v6358_v2 = vld [vmem:[#allocation7 + $0x1a0] sm:$0xff] }
 0x48f   :  { %v4142_v53 = vpop.eup %4141  ;;  %2472 = vmatpush1.msra.mxu0 %v7775_v45  ;;  %2543 = vmatpush1.msra.mxu1 %v5939_v42  ;;  %v6336_v45 = vld [vmem:[#allocation7 + $0x1e8] sm:$0xff]  ;;  %v6454_v60 = vld [vmem:[#allocation7 + $0x20] sm:$0xff] }
 0x490   :  { %2473 = vmatprep.subr.mxu0 %v5942_v52  ;;  %2544 = vmatprep.subr.mxu1 %v5945_v51  ;;  %v6328_v40 = vmul.f32 %v4142_v53, %v4140_v50  ;;  %v6339_v52 = vld [vmem:[#allocation7 + $0x1f8] sm:$0xff]  ;;  %v6342_v51 = vld [vmem:[#allocation7 + $0x1e0] sm:$0xff]  ;;  %v6346_v42 = vld [vmem:[#allocation7 + $0x1c8] sm:$0xff]  ;;  %7894 = vst [vmem:[#allocation57_spill] sm:$0xff] %v6454_v60 }
 0x491   :  { %2474 = vmatpush1.msra.mxu0 %v7858_v31  ;;  %2507 = vmatprep.mubr.f32.mxu0 %v7516_v41  ;;  %v6458_v50 = vld [vmem:[#allocation7 + $0x8] sm:$0xff]  ;;  %v7897_v53 = vld [vmem:[#allocation153_spill] sm:$0xff] }
 0x492   :  { %7857 = vst [vmem:[#allocation106_spill] sm:$0xff] %v6328_v40  ;;  %2545 = vmatpush1.msra.mxu1 %v7859_v22  ;;  %2578 = vmatprep.mubr.f32.mxu1 %v7516_v41  ;;  %7896 = vst [vmem:[#allocation58_spill] sm:$0xff] %v6458_v50  ;;  %v6462_v31 = vld [vmem:[#allocation7] sm:$0xff]  ;;  %v7899_v22 = vld [vmem:[#allocation154_spill] sm:$0xff] }
 0x493   :  { %2508 = vmatmul.mubr.f32.vlgmr.msra.gmra.mxu0 %v6328_v40  ;;  %2579 = vmatmul.mubr.f32.vlgmr.msra.gmra.mxu1 %v6328_v40  ;;  %7898 = vst [vmem:[#allocation59_spill] sm:$0xff] %v6462_v31 }
 0x494   :  { %2619 = vmatprep.subr.mxu0 %v6336_v45  ;;  %2690 = vmatprep.subr.mxu1 %v6339_v52 }
 0x495   :  { %2620 = vmatpush1.msra.mxu0 %v6342_v51  ;;  %2691 = vmatpush1.msra.mxu1 %v7778_v33  ;;  %v7860_v33 = vld [vmem:[#allocation99_spill] sm:$0xff] }
 0x496   :  { %2621 = vmatprep.subr.mxu0 %v6346_v42  ;;  %2692 = vmatprep.subr.mxu1 %v7779_v18  ;;  %v6366_v18 = vld [vmem:[#allocation7 + $0x180] sm:$0xff] }
 0x497   :  { %2622 = vmatpush1.msra.mxu0 %v6350_v21  ;;  %2693 = vmatpush1.msra.mxu1 %v7780_v14  ;;  %v7861_v14 = vld [vmem:[#allocation101_spill] sm:$0xff] }
 0x498   :  { %2623 = vmatprep.subr.mxu0 %v6354_v10  ;;  %2694 = vmatprep.subr.mxu1 %v7781_v48  ;;  %v7862_v48 = vld [vmem:[#allocation130_spill] sm:$0xff] }
 0x499   :  { %2624 = vmatpush1.msra.mxu0 %v6358_v2  ;;  %2695 = vmatpush1.msra.mxu1 %v7782_v46  ;;  %v7863_v46 = vld [vmem:[#allocation132_spill] sm:$0xff] }
 0x49a   :  { %2625 = vmatprep.subr.mxu0 %v6362_v62  ;;  %2696 = vmatprep.subr.mxu1 %v7860_v33  ;;  %v6468_v33 = vld [vmem:[#allocation9 + $0x1e8] sm:$0xff] }
 0x49b   :  { %2626 = vmatpush1.msra.mxu0 %v6366_v18  ;;  %2697 = vmatpush1.msra.mxu1 %v7861_v14  ;;  %7900 = vst [vmem:[#allocation61_spill] sm:$0xff] %v6468_v33  ;;  %v7901_v14 = vld [vmem:[#allocation155_spill] sm:$0xff] }
 0x49c   :  { %2627 = vmatprep.subr.mxu0 %v6370_v28  ;;  %2698 = vmatprep.subr.mxu1 %v7862_v48 }
 0x49d   :  { %2628 = vmatpush1.msra.mxu0 %v6374_v13  ;;  %2699 = vmatpush1.msra.mxu1 %v7863_v46  ;;  %v7902_v46 = vld [vmem:[#allocation90_spill] sm:$0xff] }
 0x49e   :  { %2629 = vmatprep.subr.mxu0 %v6378_v5  ;;  %2700 = vmatprep.subr.mxu1 %v7864_v16 }
 0x49f   :  { %2630 = vmatpush1.msra.mxu0 %v6382_v56  ;;  %2701 = vmatpush1.msra.mxu1 %v7865_v12 }
 0x4a0   :  { %2631 = vmatprep.subr.mxu0 %v6386_v37  ;;  %2702 = vmatprep.subr.mxu1 %v7866_v47 }
 0x4a1   :  { %2632 = vmatpush1.msra.mxu0 %v6390_v6  ;;  %2703 = vmatpush1.msra.mxu1 %v7867_v59  ;;  %v7903_v59 = vld [vmem:[#allocation92_spill] sm:$0xff] }
 0x4a2   :  { %2633 = vmatprep.subr.mxu0 %v6394_v34  ;;  %2704 = vmatprep.subr.mxu1 %v7868_v19 }
 0x4a3   :  { %2634 = vmatpush1.msra.mxu0 %v6398_v38  ;;  %2705 = vmatpush1.msra.mxu1 %v7869_v57 }
 0x4a4   :  { %2635 = vmatprep.subr.mxu0 %v6402_v61  ;;  %2706 = vmatprep.subr.mxu1 %v7870_v63 }
 0x4a5   :  { %2636 = vmatpush1.msra.mxu0 %v6406_v17  ;;  %2707 = vmatpush1.msra.mxu1 %v7871_v58 }
 0x4a6   :  { %2637 = vmatprep.subr.mxu0 %v6410_v25  ;;  %2708 = vmatprep.subr.mxu1 %v7873_v49  ;;  %v7904_v49 = vld [vmem:[#allocation111_spill] sm:$0xff] }
 0x4a7   :  { %2638 = vmatpush1.msra.mxu0 %v6414_v29  ;;  %2709 = vmatpush1.msra.mxu1 %v7875_v0 }
 0x4a8   :  { %2639 = vmatprep.subr.mxu0 %v6418_v30  ;;  %2710 = vmatprep.subr.mxu1 %v7877_v36  ;;  %v7905_v36 = vld [vmem:[#allocation110_spill] sm:$0xff] }
 0x4a9   :  { %2640 = vmatpush1.msra.mxu0 %v6422_v15  ;;  %2711 = vmatpush1.msra.mxu1 %v7879_v20 }
 0x4aa   :  { %2641 = vmatprep.subr.mxu0 %v6426_v7  ;;  %2712 = vmatprep.subr.mxu1 %v7881_v44 }
 0x4ab   :  { %2642 = vmatpush1.msra.mxu0 %v6430_v32  ;;  %2713 = vmatpush1.msra.mxu1 %v7883_v43 }
 0x4ac   :  { %2643 = vmatprep.subr.mxu0 %v6434_v23  ;;  %2714 = vmatprep.subr.mxu1 %v7885_v4 }
 0x4ad   :  { %2644 = vmatpush1.msra.mxu0 %v6438_v54  ;;  %2715 = vmatpush1.msra.mxu1 %v7887_v27 }
 0x4ae   :  { %2645 = vmatprep.subr.mxu0 %v6442_v39  ;;  %2716 = vmatprep.subr.mxu1 %v7889_v9 }
 0x4af   :  { %2646 = vmatpush1.msra.mxu0 %v6446_v11  ;;  %2717 = vmatpush1.msra.mxu1 %v7891_v35 }
 0x4b0   :  { %2647 = vmatprep.subr.mxu0 %v6450_v3  ;;  %2718 = vmatprep.subr.mxu1 %v7893_v24 }
 0x4b1   :  { %2648 = vmatpush1.msra.mxu0 %v6454_v60  ;;  %2719 = vmatpush1.msra.mxu1 %v7895_v55 }
 0x4b2   :  { %2649 = vmatprep.subr.mxu0 %v6458_v50  ;;  %2720 = vmatprep.subr.mxu1 %v7897_v53 }
 0x4b3   :  { %2650 = vmatpush1.msra.mxu0 %v6462_v31  ;;  %2721 = vmatpush1.msra.mxu1 %v7899_v22  ;;  %v7906_v22 = vld [vmem:[#allocation87_spill] sm:$0xff] }
 0x4b4   :  { %2683 = vmatprep.mubr.f32.mxu0 %v7516_v41  ;;  %2754 = vmatprep.mubr.f32.mxu1 %v7516_v41 }
 0x4b5   :  { %2793 = vmatprep.subr.mxu0 %v6468_v33  ;;  %2864 = vmatprep.subr.mxu1 %v7901_v14 }
 0x532   :  { %v2335_v48 = vpop.f32.mrf.mxu0  ;;  %v2406_v57 = vpop.f32.mrf.mxu1 }
 0x533   :  { %v2411_v16 = vadd.f32 %v2335_v48, %v7902_v46  ;;  %v2413_v20 = vadd.f32 %v2406_v57, %v7905_v36  ;;  %v7908_v36 = vld [vmem:[#allocation125_spill] sm:$0xff] }
 0x534   :  { %v2337_v12 = vpop.f32.mrf.mxu0  ;;  %v2408_v58 = vpop.f32.mrf.mxu1 }
 0x535   :  { %v3922_v47 = vmul.f32 -1.442695, %v2411_v16  ;;  %v2412_v19 = vadd.f32 %v2337_v12, %v7903_v59  ;;  %v2414_v0 = vadd.f32 %v2408_v58, %v7904_v49 }
 0x537   :  { %4143 = vpow2.f32 %v3922_v47  ;;  %v3923_v63 = vmul.f32 -1.442695, %v2412_v19  ;;  %v3924_v44 = vmul.f32 -1.442695, %v2414_v0  ;;  %v7907_v47 = vld [vmem:[#allocation89_spill] sm:$0xff] }
 0x539   :  { %4145 = vpow2.f32 %v3923_v63 }
 0x53a   :  { %4147 = vtanh.f32 %v2413_v20 }
 0x53b   :  { %4149 = vpow2.f32 %v3924_v44  ;;  %v7909_v44 = vld [vmem:[#allocation124_spill] sm:$0xff] }
 0x544   :  { %v4144_v43 = vpop.eup %4143 }
 0x545   :  { %v2418_v4 = vadd.f32 1.0, %v4144_v43 }
 0x546   :  { %v4146_v27 = vpop.eup %4145 }
 0x547   :  { %4151 = vrcp.f32 %v2418_v4  ;;  %v2424_v9 = vadd.f32 1.0, %v4146_v27  ;;  %v4148_v35 = vpop.eup %4147 }
 0x548   :  { %v4150_v24 = vpop.eup %4149 }
 0x549   :  { %4153 = vrcp.f32 %v2424_v9  ;;  %v2431_v57 = vadd.f32 1.0, %v4150_v24 }
 0x553   :  { %v2509_v55 = vpop.f32.mrf.mxu0  ;;  %v2580_v63 = vpop.f32.mrf.mxu1 }
 0x554   :  { %v4152_v53 = vpop.eup %4151  ;;  %v2585_v14 = vadd.f32 %v2509_v55, %v7906_v22  ;;  %v2587_v43 = vadd.f32 %v2580_v63, %v7909_v44  ;;  %v6488_v22 = vld [vmem:[#allocation9 + $0x1e0] sm:$0xff]  ;;  %v6518_v63 = vld [vmem:[#allocation9 + $0x188] sm:$0xff] }
 0x555   :  { %v2435_v48 = vmul.f32 %v4152_v53, %v4148_v35  ;;  %v2511_v46 = vpop.f32.mrf.mxu0  ;;  %v2582_v0 = vpop.f32.mrf.mxu1 }
 0x556   :  { %v4154_v16 = vpop.eup %4153  ;;  %v3925_v12 = vmul.f32 -1.442695, %v2585_v14  ;;  %v2586_v59 = vadd.f32 %v2511_v46, %v7907_v47  ;;  %v2588_v20 = vadd.f32 %v2582_v0, %v7908_v36  ;;  %v6491_v14 = vld [vmem:[#allocation9 + $0x1f0] sm:$0xff]  ;;  %v6497_v46 = vld [vmem:[#allocation9 + $0x1d8] sm:$0xff]  ;;  %v6506_v47 = vld [vmem:[#allocation9 + $0x1a8] sm:$0xff] }
 0x557   :  { %v2434_v19 = vmul.f32 %v4154_v16, %v6255_v8  ;;  %v6500_v16 = vld [vmem:[#allocation9 + $0x1c0] sm:$0xff] }
 0x558   :  { %4155 = vpow2.f32 %v3925_v12  ;;  %v3926_v58 = vmul.f32 -1.442695, %v2586_v59  ;;  %v3927_v4 = vmul.f32 -1.442695, %v2588_v20  ;;  %v6503_v12 = vld [vmem:[#allocation9 + $0x1d0] sm:$0xff]  ;;  %v6509_v59 = vld [vmem:[#allocation9 + $0x1b8] sm:$0xff] }
 0x559   :  { %v6479_v49 = vadd.f32 %v2435_v48, %v2434_v19  ;;  %v6494_v48 = vld [vmem:[#allocation9 + $0x1c8] sm:$0xff]  ;;  %v6512_v19 = vld [vmem:[#allocation9 + $0x1a0] sm:$0xff]  ;;  %v6527_v20 = vld [vmem:[#allocation9 + $0x190] sm:$0xff] }
 0x55a   :  { %4157 = vpow2.f32 %v3926_v58  ;;  %v6521_v58 = vld [vmem:[#allocation9 + $0x198] sm:$0xff]  ;;  %v6524_v36 = vld [vmem:[#allocation9 + $0x180] sm:$0xff] }
 0x55b   :  { %4159 = vrcp.f32 %v2431_v57  ;;  %v6515_v57 = vld [vmem:[#allocation9 + $0x1b0] sm:$0xff] }
 0x55c   :  { %4161 = vtanh.f32 %v6479_v49 }
 0x55d   :  { %4163 = vtanh.f32 %v2587_v43  ;;  %v6530_v43 = vld [vmem:[#allocation9 + $0x168] sm:$0xff] }
 0x55e   :  { %4165 = vpow2.f32 %v3927_v4  ;;  %v6533_v4 = vld [vmem:[#allocation9 + $0x178] sm:$0xff] }
 0x565   :  { %v4156_v27 = vpop.eup %4155 }
 0x566   :  { %v2592_v9 = vadd.f32 1.0, %v4156_v27 }
 0x567   :  { %v4158_v8 = vpop.eup %4157 }
 0x568   :  { %v4160_v35 = vpop.eup %4159  ;;  %4167 = vrcp.f32 %v2592_v9  ;;  %v2598_v24 = vadd.f32 1.0, %v4158_v8  ;;  %v6536_v9 = vld [vmem:[#allocation9 + $0x160] sm:$0xff]  ;;  %v6539_v8 = vld [vmem:[#allocation9 + $0x170] sm:$0xff] }
 0x569   :  { %v4162_v55 = vpop.eup %4161  ;;  %7911 = vst [vmem:[#allocation64_spill] sm:$0xff] %v6536_v9 }
 0x56a   :  { %4169 = vrcp.f32 %v2598_v24  ;;  %v6484_v53 = vmul.f32 %v4162_v55, %v4160_v35  ;;  %v4164_v0 = vpop.eup %4163  ;;  %v6542_v24 = vld [vmem:[#allocation9 + $0x148] sm:$0xff]  ;;  %v6545_v55 = vld [vmem:[#allocation9 + $0x158] sm:$0xff] }
 0x56b   :  { %v4166_v44 = vpop.eup %4165  ;;  %7912 = vst [vmem:[#allocation65_spill] sm:$0xff] %v6542_v24  ;;  %7913 = vst [vmem:[#allocation66_spill] sm:$0xff] %v6545_v55 }
 0x56c   :  { %7910 = vst [vmem:[#allocation62_spill] sm:$0xff] %v6484_v53  ;;  %2684 = vmatmul.mubr.f32.vlgmr.msra.gmra.mxu0 %v6484_v53  ;;  %2755 = vmatmul.mubr.f32.vlgmr.msra.gmra.mxu1 %v6484_v53  ;;  %v2605_v40 = vadd.f32 1.0, %v4166_v44  ;;  %v6564_v44 = vld [vmem:[#allocation9 + $0x130] sm:$0xff] }
 0x56d   :  { %2794 = vmatpush1.msra.mxu0 %v6488_v22  ;;  %2865 = vmatpush1.msra.mxu1 %v6491_v14  ;;  %7917 = vst [vmem:[#allocation105_spill] sm:$0xff] %v6564_v44 }
 0x56e   :  { %2795 = vmatprep.subr.mxu0 %v6494_v48  ;;  %2866 = vmatprep.subr.mxu1 %v6497_v46  ;;  %4171 = vrcp.f32 %v2605_v40  ;;  %v6591_v40 = vld [vmem:[#allocation9 + $0xf0] sm:$0xff] }
 0x56f   :  { %2796 = vmatpush1.msra.mxu0 %v6500_v16  ;;  %2867 = vmatpush1.msra.mxu1 %v6503_v12  ;;  %7925 = vst [vmem:[#allocation24_spill] sm:$0xff] %v6591_v40 }
 0x570   :  { %2797 = vmatprep.subr.mxu0 %v6506_v47  ;;  %2868 = vmatprep.subr.mxu1 %v6509_v59 }
 0x571   :  { %2798 = vmatpush1.msra.mxu0 %v6512_v19  ;;  %2869 = vmatpush1.msra.mxu1 %v6515_v57 }
 0x572   :  { %2799 = vmatprep.subr.mxu0 %v6518_v63  ;;  %2870 = vmatprep.subr.mxu1 %v6521_v58 }
 0x573   :  { %2800 = vmatpush1.msra.mxu0 %v6524_v36  ;;  %2871 = vmatpush1.msra.mxu1 %v6527_v20 }
 0x574   :  { %2801 = vmatprep.subr.mxu0 %v6530_v43  ;;  %2872 = vmatprep.subr.mxu1 %v6533_v4 }
 0x575   :  { %v4168_v27 = vpop.eup %4167  ;;  %2802 = vmatpush1.msra.mxu0 %v6536_v9  ;;  %2873 = vmatpush1.msra.mxu1 %v6539_v8  ;;  %v6551_v9 = vld [vmem:[#allocation9 + $0x150] sm:$0xff] }
 0x576   :  { %v2609_v35 = vmul.f32 %v4168_v27, %v4164_v0  ;;  %2803 = vmatprep.subr.mxu0 %v6542_v24  ;;  %2874 = vmatprep.subr.mxu1 %v6545_v55  ;;  %7915 = vst [vmem:[#allocation78_spill] sm:$0xff] %v6551_v9  ;;  %v6555_v27 = vld [vmem:[#allocation9 + $0x128] sm:$0xff]  ;;  %v6558_v24 = vld [vmem:[#allocation9 + $0x138] sm:$0xff]  ;;  %v6561_v55 = vld [vmem:[#allocation9 + $0x120] sm:$0xff] }
 0x577   :  { %v4170_v53 = vpop.eup %4169  ;;  %2804 = vmatpush1.msra.mxu0 %v6548_v26  ;;  %2875 = vmatpush1.msra.mxu1 %v6551_v9  ;;  %7916 = vst [vmem:[#allocation80_spill] sm:$0xff] %v6561_v55  ;;  %v6569_v9 = vld [vmem:[#allocation9 + $0x108] sm:$0xff] }
 0x578   :  { %v2608_v0 = vmul.f32 %v4170_v53, %v6291_v1  ;;  %2805 = vmatprep.subr.mxu0 %v6555_v27  ;;  %2876 = vmatprep.subr.mxu1 %v6558_v24  ;;  %7918 = vst [vmem:[#allocation104_spill] sm:$0xff] %v6569_v9  ;;  %v6572_v1 = vld [vmem:[#allocation9 + $0x118] sm:$0xff]  ;;  %v6575_v53 = vld [vmem:[#allocation9 + $0x100] sm:$0xff] }
 0x579   :  { %2806 = vmatpush1.msra.mxu0 %v6561_v55  ;;  %2877 = vmatpush1.msra.mxu1 %v6564_v44  ;;  %7919 = vst [vmem:[#allocation18_spill] sm:$0xff] %v6572_v1  ;;  %7920 = vst [vmem:[#allocation19_spill] sm:$0xff] %v6575_v53  ;;  %v6578_v55 = vld [vmem:[#allocation9 + $0x110] sm:$0xff]  ;;  %v6581_v44 = vld [vmem:[#allocation9 + $0xe8] sm:$0xff] }
 0x57a   :  { %v6567_v26 = vadd.f32 %v2609_v35, %v2608_v0  ;;  %2807 = vmatprep.subr.mxu0 %v6569_v9  ;;  %2878 = vmatprep.subr.mxu1 %v6572_v1  ;;  %7921 = vst [vmem:[#allocation20_spill] sm:$0xff] %v6578_v55  ;;  %7922 = vst [vmem:[#allocation21_spill] sm:$0xff] %v6581_v44  ;;  %v6584_v35 = vld [vmem:[#allocation9 + $0xf8] sm:$0xff]  ;;  %v6588_v0 = vld [vmem:[#allocation9 + $0xe0] sm:$0xff] }
 0x57b   :  { %2808 = vmatpush1.msra.mxu0 %v6575_v53  ;;  %2879 = vmatpush1.msra.mxu1 %v6578_v55  ;;  %7923 = vst [vmem:[#allocation22_spill] sm:$0xff] %v6584_v35  ;;  %7924 = vst [vmem:[#allocation23_spill] sm:$0xff] %v6588_v0  ;;  %v6594_v53 = vld [vmem:[#allocation9 + $0xc8] sm:$0xff]  ;;  %v6597_v55 = vld [vmem:[#allocation9 + $0xd8] sm:$0xff] }
 0x57c   :  { %2809 = vmatprep.subr.mxu0 %v6581_v44  ;;  %2880 = vmatprep.subr.mxu1 %v6584_v35  ;;  %4173 = vtanh.f32 %v6567_v26  ;;  %7926 = vst [vmem:[#allocation25_spill] sm:$0xff] %v6594_v53  ;;  %7927 = vst [vmem:[#allocation26_spill] sm:$0xff] %v6597_v55  ;;  %v6600_v44 = vld [vmem:[#allocation9 + $0xc0] sm:$0xff]  ;;  %v6603_v35 = vld [vmem:[#allocation9 + $0xd0] sm:$0xff] }
 0x57d   :  { %2810 = vmatpush1.msra.mxu0 %v6588_v0  ;;  %2881 = vmatpush1.msra.mxu1 %v6591_v40  ;;  %7928 = vst [vmem:[#allocation27_spill] sm:$0xff] %v6600_v44  ;;  %7929 = vst [vmem:[#allocation28_spill] sm:$0xff] %v6603_v35  ;;  %v6606_v0 = vld [vmem:[#allocation9 + $0xa8] sm:$0xff]  ;;  %v6609_v40 = vld [vmem:[#allocation9 + $0xb8] sm:$0xff] }
 0x57e   :  { %2811 = vmatprep.subr.mxu0 %v6594_v53  ;;  %2882 = vmatprep.subr.mxu1 %v6597_v55  ;;  %7930 = vst [vmem:[#allocation29_spill] sm:$0xff] %v6606_v0  ;;  %7931 = vst [vmem:[#allocation71_spill] sm:$0xff] %v6609_v40  ;;  %v6612_v53 = vld [vmem:[#allocation9 + $0xa0] sm:$0xff]  ;;  %v6615_v55 = vld [vmem:[#allocation9 + $0xb0] sm:$0xff] }
 0x57f   :  { %2812 = vmatpush1.msra.mxu0 %v6600_v44  ;;  %2883 = vmatpush1.msra.mxu1 %v6603_v35  ;;  %7932 = vst [vmem:[#allocation30_spill] sm:$0xff] %v6612_v53  ;;  %7933 = vst [vmem:[#allocation31_spill] sm:$0xff] %v6615_v55  ;;  %v6618_v44 = vld [vmem:[#allocation9 + $0x88] sm:$0xff]  ;;  %v6621_v35 = vld [vmem:[#allocation9 + $0x98] sm:$0xff] }
 0x580   :  { %2813 = vmatprep.subr.mxu0 %v6606_v0  ;;  %2884 = vmatprep.subr.mxu1 %v6609_v40  ;;  %7934 = vst [vmem:[#allocation86_spill] sm:$0xff] %v6618_v44  ;;  %7935 = vst [vmem:[#allocation88_spill] sm:$0xff] %v6621_v35  ;;  %v6624_v0 = vld [vmem:[#allocation9 + $0x80] sm:$0xff]  ;;  %v6627_v40 = vld [vmem:[#allocation9 + $0x90] sm:$0xff] }
 0x581   :  { %2814 = vmatpush1.msra.mxu0 %v6612_v53  ;;  %2885 = vmatpush1.msra.mxu1 %v6615_v55  ;;  %7936 = vst [vmem:[#allocation109_spill] sm:$0xff] %v6624_v0  ;;  %7937 = vst [vmem:[#allocation108_spill] sm:$0xff] %v6627_v40  ;;  %v6630_v53 = vld [vmem:[#allocation9 + $0x68] sm:$0xff]  ;;  %v6633_v55 = vld [vmem:[#allocation9 + $0x78] sm:$0xff] }
 0x582   :  { %2815 = vmatprep.subr.mxu0 %v6618_v44  ;;  %2886 = vmatprep.subr.mxu1 %v6621_v35  ;;  %7938 = vst [vmem:[#allocation91_spill] sm:$0xff] %v6630_v53  ;;  %7939 = vst [vmem:[#allocation93_spill] sm:$0xff] %v6633_v55  ;;  %v6636_v44 = vld [vmem:[#allocation9 + $0x60] sm:$0xff]  ;;  %v6639_v35 = vld [vmem:[#allocation9 + $0x70] sm:$0xff] }
 0x583   :  { %2816 = vmatpush1.msra.mxu0 %v6624_v0  ;;  %2887 = vmatpush1.msra.mxu1 %v6627_v40  ;;  %7940 = vst [vmem:[#allocation127_spill] sm:$0xff] %v6636_v44  ;;  %7941 = vst [vmem:[#allocation126_spill] sm:$0xff] %v6639_v35  ;;  %v6642_v0 = vld [vmem:[#allocation9 + $0x48] sm:$0xff]  ;;  %v6645_v40 = vld [vmem:[#allocation9 + $0x58] sm:$0xff] }
 0x584   :  { %2817 = vmatprep.subr.mxu0 %v6630_v53  ;;  %2888 = vmatprep.subr.mxu1 %v6633_v55  ;;  %7942 = vst [vmem:[#allocation36_spill] sm:$0xff] %v6642_v0  ;;  %7943 = vst [vmem:[#allocation37_spill] sm:$0xff] %v6645_v40  ;;  %v6648_v53 = vld [vmem:[#allocation9 + $0x40] sm:$0xff]  ;;  %v6651_v55 = vld [vmem:[#allocation9 + $0x50] sm:$0xff] }
 0x585   :  { %2818 = vmatpush1.msra.mxu0 %v6636_v44  ;;  %2889 = vmatpush1.msra.mxu1 %v6639_v35  ;;  %7944 = vst [vmem:[#allocation38_spill] sm:$0xff] %v6648_v53  ;;  %7945 = vst [vmem:[#allocation39_spill] sm:$0xff] %v6651_v55  ;;  %v4172_v44 = vpop.eup %4171  ;;  %v6654_v1 = vld [vmem:[#allocation9 + $0x28] sm:$0xff]  ;;  %v6657_v35 = vld [vmem:[#allocation9 + $0x38] sm:$0xff] }
 0x586   :  { %2819 = vmatprep.subr.mxu0 %v6642_v0  ;;  %2890 = vmatprep.subr.mxu1 %v6645_v40  ;;  %7946 = vst [vmem:[#allocation40_spill] sm:$0xff] %v6654_v1  ;;  %7947 = vst [vmem:[#allocation41_spill] sm:$0xff] %v6657_v35  ;;  %v6660_v9 = vld [vmem:[#allocation9 + $0x20] sm:$0xff]  ;;  %v6663_v40 = vld [vmem:[#allocation9 + $0x30] sm:$0xff] }
 0x587   :  { %2820 = vmatpush1.msra.mxu0 %v6648_v53  ;;  %2891 = vmatpush1.msra.mxu1 %v6651_v55  ;;  %7948 = vst [vmem:[#allocation42_spill] sm:$0xff] %v6660_v9  ;;  %v6666_v53 = vld [vmem:[#allocation9 + $0x8] sm:$0xff]  ;;  %v6669_v55 = vld [vmem:[#allocation9 + $0x18] sm:$0xff] }
 0x588   :  { %2821 = vmatprep.subr.mxu0 %v6654_v1  ;;  %2892 = vmatprep.subr.mxu1 %v6657_v35  ;;  %v6674_v35 = vld [vmem:[#allocation9] sm:$0xff] }
 0x589   :  { %v4174_v0 = vpop.eup %4173  ;;  %2822 = vmatpush1.msra.mxu0 %v6660_v9  ;;  %2893 = vmatpush1.msra.mxu1 %v6663_v40  ;;  %7950 = vst [vmem:[#allocation44_spill] sm:$0xff] %v6674_v35  ;;  %v6678_v9 = vld [vmem:[#allocation9 + $0x10] sm:$0xff] }
 0x58a   :  { %2823 = vmatprep.subr.mxu0 %v6666_v53  ;;  %2894 = vmatprep.subr.mxu1 %v6669_v55  ;;  %v6672_v1 = vmul.f32 %v4174_v0, %v4172_v44  ;;  %7951 = vst [vmem:[#allocation45_spill] sm:$0xff] %v6678_v9  ;;  %v6687_v44 = vld [vmem:[#allocation7 + $0x1f0] sm:$0xff]  ;;  %v6691_v0 = vld [vmem:[#allocation7 + $0x1d8] sm:$0xff] }
 0x58b   :  { %2824 = vmatpush1.msra.mxu0 %v6674_v35  ;;  %2857 = vmatprep.mubr.f32.mxu0 %v7516_v41  ;;  %7952 = vst [vmem:[#allocation46_spill] sm:$0xff] %v6687_v44  ;;  %7953 = vst [vmem:[#allocation47_spill] sm:$0xff] %v6691_v0 }
 0x58c   :  { %7949 = vst [vmem:[#allocation43_spill] sm:$0xff] %v6672_v1  ;;  %2895 = vmatpush1.msra.mxu1 %v6678_v9  ;;  %2928 = vmatprep.mubr.f32.mxu1 %v7516_v41  ;;  %v6695_v9 = vld [vmem:[#allocation7 + $0x1d0] sm:$0xff] }
 0x58d   :  { %2858 = vmatmul.mubr.f32.vlgmr.msra.gmra.mxu0 %v6672_v1  ;;  %2929 = vmatmul.mubr.f32.vlgmr.msra.gmra.mxu1 %v6672_v1  ;;  %7954 = vst [vmem:[#allocation48_spill] sm:$0xff] %v6695_v9  ;;  %v6699_v1 = vld [vmem:[#allocation7 + $0x1b8] sm:$0xff] }
 0x58e   :  { %2969 = vmatprep.subr.mxu0 %v6336_v45  ;;  %3040 = vmatprep.subr.mxu1 %v6339_v52  ;;  %7955 = vst [vmem:[#allocation49_spill] sm:$0xff] %v6699_v1 }
 0x58f   :  { %2970 = vmatpush1.msra.mxu0 %v6342_v51  ;;  %3041 = vmatpush1.msra.mxu1 %v6687_v44  ;;  %v6703_v44 = vld [vmem:[#allocation7 + $0x1b0] sm:$0xff] }
 0x590   :  { %2971 = vmatprep.subr.mxu0 %v6346_v42  ;;  %3042 = vmatprep.subr.mxu1 %v6691_v0  ;;  %7956 = vst [vmem:[#allocation50_spill] sm:$0xff] %v6703_v44  ;;  %v6707_v0 = vld [vmem:[#allocation7 + $0x198] sm:$0xff] }
 0x591   :  { %2972 = vmatpush1.msra.mxu0 %v6350_v21  ;;  %3043 = vmatpush1.msra.mxu1 %v6695_v9  ;;  %7957 = vst [vmem:[#allocation51_spill] sm:$0xff] %v6707_v0  ;;  %v6711_v9 = vld [vmem:[#allocation7 + $0x190] sm:$0xff] }
 0x592   :  { %2973 = vmatprep.subr.mxu0 %v6354_v10  ;;  %3044 = vmatprep.subr.mxu1 %v6699_v1  ;;  %7958 = vst [vmem:[#allocation52_spill] sm:$0xff] %v6711_v9  ;;  %v6715_v1 = vld [vmem:[#allocation7 + $0x178] sm:$0xff] }
 0x593   :  { %2974 = vmatpush1.msra.mxu0 %v6358_v2  ;;  %3045 = vmatpush1.msra.mxu1 %v6703_v44  ;;  %7959 = vst [vmem:[#allocation53_spill] sm:$0xff] %v6715_v1  ;;  %v6719_v44 = vld [vmem:[#allocation7 + $0x170] sm:$0xff] }
 0x594   :  { %2975 = vmatprep.subr.mxu0 %v6362_v62  ;;  %3046 = vmatprep.subr.mxu1 %v6707_v0  ;;  %7960 = vst [vmem:[#allocation54_spill] sm:$0xff] %v6719_v44  ;;  %v6723_v0 = vld [vmem:[#allocation7 + $0x158] sm:$0xff] }
 0x595   :  { %2976 = vmatpush1.msra.mxu0 %v6366_v18  ;;  %3047 = vmatpush1.msra.mxu1 %v6711_v9  ;;  %7961 = vst [vmem:[#allocation55_spill] sm:$0xff] %v6723_v0  ;;  %v6727_v9 = vld [vmem:[#allocation7 + $0x150] sm:$0xff] }
 0x596   :  { %2977 = vmatprep.subr.mxu0 %v6370_v28  ;;  %3048 = vmatprep.subr.mxu1 %v6715_v1  ;;  %7962 = vst [vmem:[#allocation56_spill] sm:$0xff] %v6727_v9  ;;  %v6731_v1 = vld [vmem:[#allocation7 + $0x138] sm:$0xff] }
 0x597   :  { %2978 = vmatpush1.msra.mxu0 %v6374_v13  ;;  %3049 = vmatpush1.msra.mxu1 %v6719_v44  ;;  %7963 = vst [vmem:[#allocation60_spill] sm:$0xff] %v6731_v1  ;;  %v6735_v44 = vld [vmem:[#allocation7 + $0x130] sm:$0xff] }
 0x598   :  { %2979 = vmatprep.subr.mxu0 %v6378_v5  ;;  %3050 = vmatprep.subr.mxu1 %v6723_v0  ;;  %7964 = vst [vmem:[#allocation63_spill] sm:$0xff] %v6735_v44  ;;  %v6739_v0 = vld [vmem:[#allocation7 + $0x118] sm:$0xff] }
 0x599   :  { %2980 = vmatpush1.msra.mxu0 %v6382_v56  ;;  %3051 = vmatpush1.msra.mxu1 %v6727_v9  ;;  %7965 = vst [vmem:[#allocation68_spill] sm:$0xff] %v6739_v0  ;;  %v6743_v9 = vld [vmem:[#allocation7 + $0x110] sm:$0xff] }
 0x59a   :  { %2981 = vmatprep.subr.mxu0 %v6386_v37  ;;  %3052 = vmatprep.subr.mxu1 %v6731_v1  ;;  %7966 = vst [vmem:[#allocation69_spill] sm:$0xff] %v6743_v9  ;;  %v6747_v1 = vld [vmem:[#allocation7 + $0xf8] sm:$0xff] }
 0x59b   :  { %2982 = vmatpush1.msra.mxu0 %v6390_v6  ;;  %3053 = vmatpush1.msra.mxu1 %v6735_v44  ;;  %7967 = vst [vmem:[#allocation99_spill] sm:$0xff] %v6747_v1  ;;  %v6751_v44 = vld [vmem:[#allocation7 + $0xf0] sm:$0xff] }
 0x59c   :  { %2983 = vmatprep.subr.mxu0 %v6394_v34  ;;  %3054 = vmatprep.subr.mxu1 %v6739_v0  ;;  %7968 = vst [vmem:[#allocation101_spill] sm:$0xff] %v6751_v44  ;;  %v6755_v0 = vld [vmem:[#allocation7 + $0xd8] sm:$0xff] }
 0x59d   :  { %2984 = vmatpush1.msra.mxu0 %v6398_v38  ;;  %3055 = vmatpush1.msra.mxu1 %v6743_v9  ;;  %7969 = vst [vmem:[#allocation130_spill] sm:$0xff] %v6755_v0  ;;  %v6759_v9 = vld [vmem:[#allocation7 + $0xd0] sm:$0xff] }
 0x59e   :  { %2985 = vmatprep.subr.mxu0 %v6402_v61  ;;  %3056 = vmatprep.subr.mxu1 %v6747_v1  ;;  %7970 = vst [vmem:[#allocation132_spill] sm:$0xff] %v6759_v9  ;;  %v6763_v1 = vld [vmem:[#allocation7 + $0xb8] sm:$0xff] }
 0x59f   :  { %2986 = vmatpush1.msra.mxu0 %v6406_v17  ;;  %3057 = vmatpush1.msra.mxu1 %v6751_v44  ;;  %7971 = vst [vmem:[#allocation133_spill] sm:$0xff] %v6763_v1  ;;  %v6767_v44 = vld [vmem:[#allocation7 + $0xb0] sm:$0xff] }
 0x5a0   :  { %2987 = vmatprep.subr.mxu0 %v6410_v25  ;;  %3058 = vmatprep.subr.mxu1 %v6755_v0  ;;  %7972 = vst [vmem:[#allocation134_spill] sm:$0xff] %v6767_v44  ;;  %v6771_v0 = vld [vmem:[#allocation7 + $0x98] sm:$0xff] }
 0x5a1   :  { %2988 = vmatpush1.msra.mxu0 %v6414_v29  ;;  %3059 = vmatpush1.msra.mxu1 %v6759_v9  ;;  %7973 = vst [vmem:[#allocation135_spill] sm:$0xff] %v6771_v0  ;;  %v6775_v9 = vld [vmem:[#allocation7 + $0x90] sm:$0xff] }
 0x5a2   :  { %2989 = vmatprep.subr.mxu0 %v6418_v30  ;;  %3060 = vmatprep.subr.mxu1 %v6763_v1  ;;  %7974 = vst [vmem:[#allocation136_spill] sm:$0xff] %v6775_v9  ;;  %v6779_v1 = vld [vmem:[#allocation7 + $0x78] sm:$0xff] }
 0x5a3   :  { %2990 = vmatpush1.msra.mxu0 %v6422_v15  ;;  %3061 = vmatpush1.msra.mxu1 %v6767_v44  ;;  %7975 = vst [vmem:[#allocation137_spill] sm:$0xff] %v6779_v1  ;;  %v6783_v44 = vld [vmem:[#allocation7 + $0x70] sm:$0xff] }
 0x5a4   :  { %2991 = vmatprep.subr.mxu0 %v6426_v7  ;;  %3062 = vmatprep.subr.mxu1 %v6771_v0  ;;  %7976 = vst [vmem:[#allocation138_spill] sm:$0xff] %v6783_v44  ;;  %v6787_v0 = vld [vmem:[#allocation7 + $0x58] sm:$0xff] }
 0x5a5   :  { %2992 = vmatpush1.msra.mxu0 %v6430_v32  ;;  %3063 = vmatpush1.msra.mxu1 %v6775_v9  ;;  %7977 = vst [vmem:[#allocation139_spill] sm:$0xff] %v6787_v0  ;;  %v6791_v9 = vld [vmem:[#allocation7 + $0x50] sm:$0xff]  ;;  %v7987_v7 = vld [vmem:[#allocation112_spill] sm:$0xff] }
 0x5a6   :  { %2993 = vmatprep.subr.mxu0 %v6434_v23  ;;  %3064 = vmatprep.subr.mxu1 %v6779_v1  ;;  %7978 = vst [vmem:[#allocation140_spill] sm:$0xff] %v6791_v9  ;;  %v6795_v1 = vld [vmem:[#allocation7 + $0x38] sm:$0xff]  ;;  %v7986_v23 = vld [vmem:[#allocation113_spill] sm:$0xff] }
 0x5a7   :  { %2994 = vmatpush1.msra.mxu0 %v6438_v54  ;;  %3065 = vmatpush1.msra.mxu1 %v6783_v44  ;;  %7979 = vst [vmem:[#allocation141_spill] sm:$0xff] %v6795_v1  ;;  %v6799_v44 = vld [vmem:[#allocation7 + $0x30] sm:$0xff] }
 0x5a8   :  { %2995 = vmatprep.subr.mxu0 %v6442_v39  ;;  %3066 = vmatprep.subr.mxu1 %v6787_v0  ;;  %7980 = vst [vmem:[#allocation142_spill] sm:$0xff] %v6799_v44  ;;  %v6803_v0 = vld [vmem:[#allocation7 + $0x18] sm:$0xff] }
 0x5a9   :  { %2996 = vmatpush1.msra.mxu0 %v6446_v11  ;;  %3067 = vmatpush1.msra.mxu1 %v6791_v9  ;;  %7981 = vst [vmem:[#allocation143_spill] sm:$0xff] %v6803_v0  ;;  %v6807_v9 = vld [vmem:[#allocation7 + $0x10] sm:$0xff] }
 0x5aa   :  { %2997 = vmatprep.subr.mxu0 %v6450_v3  ;;  %3068 = vmatprep.subr.mxu1 %v6795_v1  ;;  %7982 = vst [vmem:[#allocation144_spill] sm:$0xff] %v6807_v9 }
 0x5ab   :  { %2998 = vmatpush1.msra.mxu0 %v6454_v60  ;;  %3069 = vmatpush1.msra.mxu1 %v6799_v44  ;;  %v6813_v60 = vld [vmem:[#allocation9 + $0x1f8] sm:$0xff]  ;;  %v7984_v44 = vld [vmem:[#allocation94_spill] sm:$0xff] }
 0x5ac   :  { %2999 = vmatprep.subr.mxu0 %v6458_v50  ;;  %3070 = vmatprep.subr.mxu1 %v6803_v0  ;;  %7983 = vst [vmem:[#allocation145_spill] sm:$0xff] %v6813_v60 }
 0x5ad   :  { %3000 = vmatpush1.msra.mxu0 %v6462_v31  ;;  %3071 = vmatpush1.msra.mxu1 %v6807_v9  ;;  %v7985_v31 = vld [vmem:[#allocation96_spill] sm:$0xff] }
 0x5ae   :  { %3033 = vmatprep.mubr.f32.mxu0 %v7516_v41  ;;  %3104 = vmatprep.mubr.f32.mxu1 %v7516_v41 }
 0x5af   :  { %3143 = vmatprep.subr.mxu0 %v6468_v33  ;;  %3214 = vmatprep.subr.mxu1 %v6813_v60 }
 0x62c   :  { %v2685_v50 = vpop.f32.mrf.mxu0  ;;  %v2756_v39 = vpop.f32.mrf.mxu1 }
 0x62d   :  { %v2761_v1 = vadd.f32 %v2685_v50, %v7984_v44  ;;  %v2763_v33 = vadd.f32 %v2756_v39, %v7987_v7  ;;  %v7989_v7 = vld [vmem:[#allocation85_spill] sm:$0xff] }
 0x62e   :  { %v2687_v0 = vpop.f32.mrf.mxu0  ;;  %v2758_v54 = vpop.f32.mrf.mxu1 }
 0x62f   :  { %v3928_v3 = vmul.f32 -1.442695, %v2761_v1  ;;  %v2762_v11 = vadd.f32 %v2687_v0, %v7985_v31  ;;  %v2764_v32 = vadd.f32 %v2758_v54, %v7986_v23 }
 0x631   :  { %4175 = vpow2.f32 %v3928_v3  ;;  %v3929_v9 = vmul.f32 -1.442695, %v2762_v11  ;;  %v3930_v15 = vmul.f32 -1.442695, %v2764_v32  ;;  %v7988_v11 = vld [vmem:[#allocation83_spill] sm:$0xff] }
 0x633   :  { %4177 = vpow2.f32 %v3929_v9 }
 0x634   :  { %4179 = vtanh.f32 %v2763_v33 }
 0x635   :  { %4181 = vpow2.f32 %v3930_v15 }
 0x63e   :  { %v4176_v30 = vpop.eup %4175 }
 0x63f   :  { %v2768_v29 = vadd.f32 1.0, %v4176_v30 }
 0x640   :  { %v4178_v60 = vpop.eup %4177 }
 0x641   :  { %4183 = vrcp.f32 %v2768_v29  ;;  %v2774_v50 = vadd.f32 1.0, %v4178_v60  ;;  %v4180_v1 = vpop.eup %4179 }
 0x642   :  { %v4182_v31 = vpop.eup %4181 }
 0x643   :  { %4185 = vrcp.f32 %v2774_v50  ;;  %v2781_v39 = vadd.f32 1.0, %v4182_v31  ;;  %v7990_v50 = vld [vmem:[#allocation123_spill] sm:$0xff] }
 0x64d   :  { %v2859_v3 = vpop.f32.mrf.mxu0  ;;  %v2930_v15 = vpop.f32.mrf.mxu1 }
 0x64e   :  { %v4184_v44 = vpop.eup %4183  ;;  %v2935_v9 = vadd.f32 %v2859_v3, %v7988_v11  ;;  %v7991_v3 = vld [vmem:[#allocation122_spill] sm:$0xff] }
 0x64f   :  { %v2785_v0 = vmul.f32 %v4184_v44, %v4180_v1  ;;  %v2861_v25 = vpop.f32.mrf.mxu0  ;;  %v2932_v33 = vpop.f32.mrf.mxu1  ;;  %v2937_v44 = vadd.f32 %v2930_v15, %v7991_v3  ;;  %v7996_v3 = vld [vmem:[#allocation70_spill] sm:$0xff] }
 0x650   :  { %v4186_v23 = vpop.eup %4185  ;;  %v3931_v54 = vmul.f32 -1.442695, %v2935_v9  ;;  %v2936_v32 = vadd.f32 %v2861_v25, %v7989_v7  ;;  %v2938_v1 = vadd.f32 %v2932_v33, %v7990_v50  ;;  %v7995_v33 = vld [vmem:[#allocation66_spill] sm:$0xff] }
 0x651   :  { %v2784_v30 = vmul.f32 %v4186_v23, %v6479_v49 }
 0x652   :  { %4187 = vpow2.f32 %v3931_v54  ;;  %v3932_v29 = vmul.f32 -1.442695, %v2936_v32  ;;  %v3933_v11 = vmul.f32 -1.442695, %v2938_v1 }
 0x653   :  { %v6823_v60 = vadd.f32 %v2785_v0, %v2784_v30 }
 0x654   :  { %4189 = vpow2.f32 %v3932_v29  ;;  %v7994_v29 = vld [vmem:[#allocation65_spill] sm:$0xff] }
 0x655   :  { %4191 = vrcp.f32 %v2781_v39  ;;  %v7993_v39 = vld [vmem:[#allocation64_spill] sm:$0xff] }
 0x656   :  { %4193 = vtanh.f32 %v6823_v60 }
 0x657   :  { %4195 = vtanh.f32 %v2937_v44  ;;  %v7997_v44 = vld [vmem:[#allocation78_spill] sm:$0xff] }
 0x658   :  { %4197 = vpow2.f32 %v3933_v11 }
 0x65f   :  { %v4188_v9 = vpop.eup %4187 }
 0x660   :  { %v2942_v25 = vadd.f32 1.0, %v4188_v9  ;;  %v7998_v9 = vld [vmem:[#allocation80_spill] sm:$0xff] }
 0x661   :  { %v4190_v49 = vpop.eup %4189 }
 0x662   :  { %v4192_v31 = vpop.eup %4191  ;;  %4199 = vrcp.f32 %v2942_v25  ;;  %v2948_v23 = vadd.f32 1.0, %v4190_v49  ;;  %v7999_v25 = vld [vmem:[#allocation105_spill] sm:$0xff] }
 0x663   :  { %v4194_v0 = vpop.eup %4193 }
 0x664   :  { %4201 = vrcp.f32 %v2948_v23  ;;  %v6828_v54 = vmul.f32 %v4194_v0, %v4192_v31  ;;  %v4196_v7 = vpop.eup %4195  ;;  %v8000_v31 = vld [vmem:[#allocation104_spill] sm:$0xff]  ;;  %v8001_v23 = vld [vmem:[#allocation18_spill] sm:$0xff]  ;;  %v8002_v0 = vld [vmem:[#allocation19_spill] sm:$0xff] }
 0x665   :  { %v4198_v32 = vpop.eup %4197 }
 0x666   :  { %7992 = vst [vmem:[#allocation146_spill] sm:$0xff] %v6828_v54  ;;  %3034 = vmatmul.mubr.f32.vlgmr.msra.gmra.mxu0 %v6828_v54  ;;  %3105 = vmatmul.mubr.f32.vlgmr.msra.gmra.mxu1 %v6828_v54  ;;  %v2955_v1 = vadd.f32 1.0, %v4198_v32  ;;  %v8005_v32 = vld [vmem:[#allocation22_spill] sm:$0xff]  ;;  %v8010_v54 = vld [vmem:[#allocation27_spill] sm:$0xff] }
 0x667   :  { %3144 = vmatpush1.msra.mxu0 %v6488_v22  ;;  %3215 = vmatpush1.msra.mxu1 %v6491_v14 }
 0x668   :  { %3145 = vmatprep.subr.mxu0 %v6494_v48  ;;  %3216 = vmatprep.subr.mxu1 %v6497_v46  ;;  %4203 = vrcp.f32 %v2955_v1  ;;  %v8011_v1 = vld [vmem:[#allocation28_spill] sm:$0xff] }
 0x669   :  { %3146 = vmatpush1.msra.mxu0 %v6500_v16  ;;  %3217 = vmatpush1.msra.mxu1 %v6503_v12 }
 0x66a   :  { %3147 = vmatprep.subr.mxu0 %v6506_v47  ;;  %3218 = vmatprep.subr.mxu1 %v6509_v59 }
 0x66b   :  { %3148 = vmatpush1.msra.mxu0 %v6512_v19  ;;  %3219 = vmatpush1.msra.mxu1 %v6515_v57 }
 0x66c   :  { %3149 = vmatprep.subr.mxu0 %v6518_v63  ;;  %3220 = vmatprep.subr.mxu1 %v6521_v58 }
 0x66d   :  { %3150 = vmatpush1.msra.mxu0 %v6524_v36  ;;  %3221 = vmatpush1.msra.mxu1 %v6527_v20 }
 0x66e   :  { %3151 = vmatprep.subr.mxu0 %v6530_v43  ;;  %3222 = vmatprep.subr.mxu1 %v6533_v4 }
 0x66f   :  { %v4200_v30 = vpop.eup %4199  ;;  %3152 = vmatpush1.msra.mxu0 %v7993_v39  ;;  %3223 = vmatpush1.msra.mxu1 %v6539_v8 }
 0x670   :  { %v2959_v15 = vmul.f32 %v4200_v30, %v4196_v7  ;;  %3153 = vmatprep.subr.mxu0 %v7994_v29  ;;  %3224 = vmatprep.subr.mxu1 %v7995_v33  ;;  %v8003_v7 = vld [vmem:[#allocation20_spill] sm:$0xff]  ;;  %v8006_v30 = vld [vmem:[#allocation23_spill] sm:$0xff] }
 0x671   :  { %v4202_v50 = vpop.eup %4201  ;;  %3154 = vmatpush1.msra.mxu0 %v7996_v3  ;;  %3225 = vmatpush1.msra.mxu1 %v7997_v44 }
 0x672   :  { %v2958_v11 = vmul.f32 %v4202_v50, %v6567_v26  ;;  %3155 = vmatprep.subr.mxu0 %v6555_v27  ;;  %3226 = vmatprep.subr.mxu1 %v6558_v24  ;;  %v8004_v26 = vld [vmem:[#allocation21_spill] sm:$0xff]  ;;  %v8007_v50 = vld [vmem:[#allocation24_spill] sm:$0xff] }
 0x673   :  { %3156 = vmatpush1.msra.mxu0 %v7998_v9  ;;  %3227 = vmatpush1.msra.mxu1 %v7999_v25 }
 0x674   :  { %v6859_v49 = vadd.f32 %v2959_v15, %v2958_v11  ;;  %3157 = vmatprep.subr.mxu0 %v8000_v31  ;;  %3228 = vmatprep.subr.mxu1 %v8001_v23  ;;  %v8008_v15 = vld [vmem:[#allocation25_spill] sm:$0xff]  ;;  %v8009_v11 = vld [vmem:[#allocation26_spill] sm:$0xff] }
 0x675   :  { %3158 = vmatpush1.msra.mxu0 %v8002_v0  ;;  %3229 = vmatpush1.msra.mxu1 %v8003_v7  ;;  %v8012_v0 = vld [vmem:[#allocation29_spill] sm:$0xff]  ;;  %v8013_v7 = vld [vmem:[#allocation71_spill] sm:$0xff]  ;;  %v8016_v23 = vld [vmem:[#allocation86_spill] sm:$0xff] }
 0x676   :  { %3159 = vmatprep.subr.mxu0 %v8004_v26  ;;  %3230 = vmatprep.subr.mxu1 %v8005_v32  ;;  %4205 = vtanh.f32 %v6859_v49  ;;  %v8014_v26 = vld [vmem:[#allocation30_spill] sm:$0xff]  ;;  %v8015_v32 = vld [vmem:[#allocation31_spill] sm:$0xff] }
 0x677   :  { %3160 = vmatpush1.msra.mxu0 %v8006_v30  ;;  %3231 = vmatpush1.msra.mxu1 %v8007_v50  ;;  %v8017_v30 = vld [vmem:[#allocation88_spill] sm:$0xff]  ;;  %v8018_v50 = vld [vmem:[#allocation109_spill] sm:$0xff]  ;;  %v8030_v31 = vld [vmem:[#allocation42_spill] sm:$0xff] }
 0x678   :  { %3161 = vmatprep.subr.mxu0 %v8008_v15  ;;  %3232 = vmatprep.subr.mxu1 %v8009_v11  ;;  %v8019_v15 = vld [vmem:[#allocation108_spill] sm:$0xff]  ;;  %v8020_v11 = vld [vmem:[#allocation91_spill] sm:$0xff] }
 0x679   :  { %3162 = vmatpush1.msra.mxu0 %v8010_v54  ;;  %3233 = vmatpush1.msra.mxu1 %v8011_v1  ;;  %v8021_v54 = vld [vmem:[#allocation93_spill] sm:$0xff]  ;;  %v8022_v1 = vld [vmem:[#allocation127_spill] sm:$0xff] }
 0x67a   :  { %3163 = vmatprep.subr.mxu0 %v8012_v0  ;;  %3234 = vmatprep.subr.mxu1 %v8013_v7  ;;  %v8023_v0 = vld [vmem:[#allocation126_spill] sm:$0xff]  ;;  %v8024_v7 = vld [vmem:[#allocation36_spill] sm:$0xff] }
 0x67b   :  { %3164 = vmatpush1.msra.mxu0 %v8014_v26  ;;  %3235 = vmatpush1.msra.mxu1 %v8015_v32  ;;  %v8025_v26 = vld [vmem:[#allocation37_spill] sm:$0xff]  ;;  %v8026_v32 = vld [vmem:[#allocation38_spill] sm:$0xff] }
 0x67c   :  { %3165 = vmatprep.subr.mxu0 %v8016_v23  ;;  %3236 = vmatprep.subr.mxu1 %v8017_v30  ;;  %v8027_v23 = vld [vmem:[#allocation39_spill] sm:$0xff]  ;;  %v4204_v30 = vpop.eup %4203 }
 0x67d   :  { %3166 = vmatpush1.msra.mxu0 %v8018_v50  ;;  %3237 = vmatpush1.msra.mxu1 %v8019_v15  ;;  %v8028_v50 = vld [vmem:[#allocation40_spill] sm:$0xff]  ;;  %v8029_v15 = vld [vmem:[#allocation41_spill] sm:$0xff] }
 0x67e   :  { %3167 = vmatprep.subr.mxu0 %v8020_v11  ;;  %3238 = vmatprep.subr.mxu1 %v8021_v54 }
 0x67f   :  { %3168 = vmatpush1.msra.mxu0 %v8022_v1  ;;  %3239 = vmatpush1.msra.mxu1 %v8023_v0 }
 0x680   :  { %3169 = vmatprep.subr.mxu0 %v8024_v7  ;;  %3240 = vmatprep.subr.mxu1 %v8025_v26 }
 0x681   :  { %3170 = vmatpush1.msra.mxu0 %v8026_v32  ;;  %3241 = vmatpush1.msra.mxu1 %v8027_v23  ;;  %v8031_v23 = vld [vmem:[#allocation45_spill] sm:$0xff] }
 0x682   :  { %3171 = vmatprep.subr.mxu0 %v8028_v50  ;;  %3242 = vmatprep.subr.mxu1 %v8029_v15 }
 0x683   :  { %v4206_v11 = vpop.eup %4205  ;;  %3172 = vmatpush1.msra.mxu0 %v8030_v31  ;;  %3243 = vmatpush1.msra.mxu1 %v6663_v40 }
 0x684   :  { %3173 = vmatprep.subr.mxu0 %v6666_v53  ;;  %3244 = vmatprep.subr.mxu1 %v6669_v55  ;;  %v6896_v7 = vmul.f32 %v4206_v11, %v4204_v30  ;;  %v8032_v30 = vld [vmem:[#allocation46_spill] sm:$0xff]  ;;  %v8033_v11 = vld [vmem:[#allocation47_spill] sm:$0xff] }
 0x685   :  { %3174 = vmatpush1.msra.mxu0 %v6674_v35  ;;  %3207 = vmatprep.mubr.f32.mxu0 %v7516_v41  ;;  %v8035_v35 = vld [vmem:[#allocation49_spill] sm:$0xff] }
 0x686   :  { %3245 = vmatpush1.msra.mxu1 %v8031_v23  ;;  %3278 = vmatprep.mubr.f32.mxu1 %v7516_v41  ;;  %v8034_v23 = vld [vmem:[#allocation48_spill] sm:$0xff] }
 0x687   :  { %3208 = vmatmul.mubr.f32.vlgmr.msra.gmra.mxu0 %v6896_v7  ;;  %3279 = vmatmul.mubr.f32.vlgmr.msra.gmra.mxu1 %v6896_v7 }
 0x688   :  { %3319 = vmatprep.subr.mxu0 %v6336_v45  ;;  %3390 = vmatprep.subr.mxu1 %v6339_v52  ;;  %v8036_v45 = vld [vmem:[#allocation50_spill] sm:$0xff]  ;;  %v8037_v52 = vld [vmem:[#allocation51_spill] sm:$0xff] }
 0x689   :  { %3320 = vmatpush1.msra.mxu0 %v6342_v51  ;;  %3391 = vmatpush1.msra.mxu1 %v8032_v30  ;;  %v8038_v51 = vld [vmem:[#allocation52_spill] sm:$0xff] }
 0x68a   :  { %3321 = vmatprep.subr.mxu0 %v6346_v42  ;;  %3392 = vmatprep.subr.mxu1 %v8033_v11  ;;  %v8039_v42 = vld [vmem:[#allocation53_spill] sm:$0xff]  ;;  %v8055_v30 = vld [vmem:[#allocation128_spill] sm:$0xff] }
 0x68b   :  { %3322 = vmatpush1.msra.mxu0 %v6350_v21  ;;  %3393 = vmatpush1.msra.mxu1 %v8034_v23  ;;  %v8040_v21 = vld [vmem:[#allocation54_spill] sm:$0xff]  ;;  %v8053_v23 = vld [vmem:[#allocation129_spill] sm:$0xff]  ;;  %v8057_v11 = vld [vmem:[#allocation32_spill] sm:$0xff] }
 0x68c   :  { %3323 = vmatprep.subr.mxu0 %v6354_v10  ;;  %3394 = vmatprep.subr.mxu1 %v8035_v35  ;;  %v8041_v10 = vld [vmem:[#allocation55_spill] sm:$0xff]  ;;  %v8051_v35 = vld [vmem:[#allocation97_spill] sm:$0xff] }
 0x68d   :  { %3324 = vmatpush1.msra.mxu0 %v6358_v2  ;;  %3395 = vmatpush1.msra.mxu1 %v8036_v45  ;;  %v8042_v2 = vld [vmem:[#allocation56_spill] sm:$0xff]  ;;  %v8059_v45 = vld [vmem:[#allocation73_spill] sm:$0xff] }
 0x68e   :  { %3325 = vmatprep.subr.mxu0 %v6362_v62  ;;  %3396 = vmatprep.subr.mxu1 %v8037_v52  ;;  %v8043_v62 = vld [vmem:[#allocation60_spill] sm:$0xff] }
 0x68f   :  { %3326 = vmatpush1.msra.mxu0 %v6366_v18  ;;  %3397 = vmatpush1.msra.mxu1 %v8038_v51  ;;  %v8044_v18 = vld [vmem:[#allocation63_spill] sm:$0xff]  ;;  %v8060_v52 = vld [vmem:[#allocation136_spill] sm:$0xff]  ;;  %v8061_v51 = vld [vmem:[#allocation33_spill] sm:$0xff] }
 0x690   :  { %3327 = vmatprep.subr.mxu0 %v6370_v28  ;;  %3398 = vmatprep.subr.mxu1 %v8039_v42  ;;  %v8045_v28 = vld [vmem:[#allocation68_spill] sm:$0xff]  ;;  %v8062_v42 = vld [vmem:[#allocation137_spill] sm:$0xff] }
 0x691   :  { %3328 = vmatpush1.msra.mxu0 %v6374_v13  ;;  %3399 = vmatpush1.msra.mxu1 %v8040_v21  ;;  %v8046_v13 = vld [vmem:[#allocation69_spill] sm:$0xff]  ;;  %v8063_v21 = vld [vmem:[#allocation74_spill] sm:$0xff] }
 0x692   :  { %3329 = vmatprep.subr.mxu0 %v6378_v5  ;;  %3400 = vmatprep.subr.mxu1 %v8041_v10  ;;  %v8047_v5 = vld [vmem:[#allocation99_spill] sm:$0xff]  ;;  %v8064_v10 = vld [vmem:[#allocation138_spill] sm:$0xff] }
 0x693   :  { %3330 = vmatpush1.msra.mxu0 %v6382_v56  ;;  %3401 = vmatpush1.msra.mxu1 %v8042_v2  ;;  %v8048_v56 = vld [vmem:[#allocation101_spill] sm:$0xff]  ;;  %v8065_v2 = vld [vmem:[#allocation34_spill] sm:$0xff] }
 0x694   :  { %3331 = vmatprep.subr.mxu0 %v6386_v37  ;;  %3402 = vmatprep.subr.mxu1 %v8043_v62  ;;  %v8049_v37 = vld [vmem:[#allocation95_spill] sm:$0xff] }
 0x695   :  { %3332 = vmatpush1.msra.mxu0 %v6390_v6  ;;  %3403 = vmatpush1.msra.mxu1 %v8044_v18  ;;  %v8050_v6 = vld [vmem:[#allocation130_spill] sm:$0xff]  ;;  %v8066_v62 = vld [vmem:[#allocation139_spill] sm:$0xff] }
 0x696   :  { %3333 = vmatprep.subr.mxu0 %v6394_v34  ;;  %3404 = vmatprep.subr.mxu1 %v8045_v28  ;;  %v8052_v34 = vld [vmem:[#allocation132_spill] sm:$0xff]  ;;  %v8067_v18 = vld [vmem:[#allocation35_spill] sm:$0xff] }
 0x697   :  { %3334 = vmatpush1.msra.mxu0 %v6398_v38  ;;  %3405 = vmatpush1.msra.mxu1 %v8046_v13  ;;  %v8054_v38 = vld [vmem:[#allocation133_spill] sm:$0xff]  ;;  %v8068_v28 = vld [vmem:[#allocation140_spill] sm:$0xff]  ;;  %v8069_v13 = vld [vmem:[#allocation75_spill] sm:$0xff] }
 0x698   :  { %3335 = vmatprep.subr.mxu0 %v6402_v61  ;;  %3406 = vmatprep.subr.mxu1 %v8047_v5  ;;  %v8056_v61 = vld [vmem:[#allocation134_spill] sm:$0xff]  ;;  %v8070_v5 = vld [vmem:[#allocation141_spill] sm:$0xff] }
 0x699   :  { %3336 = vmatpush1.msra.mxu0 %v6406_v17  ;;  %3407 = vmatpush1.msra.mxu1 %v8048_v56  ;;  %v8058_v17 = vld [vmem:[#allocation135_spill] sm:$0xff]  ;;  %v8071_v56 = vld [vmem:[#allocation57_spill] sm:$0xff] }
 0x69a   :  { %3337 = vmatprep.subr.mxu0 %v8049_v37  ;;  %3408 = vmatprep.subr.mxu1 %v8050_v6  ;;  %v8072_v37 = vld [vmem:[#allocation142_spill] sm:$0xff] }
 0x69b   :  { %3338 = vmatpush1.msra.mxu0 %v8051_v35  ;;  %3409 = vmatpush1.msra.mxu1 %v8052_v34  ;;  %v8073_v6 = vld [vmem:[#allocation58_spill] sm:$0xff]  ;;  %v8074_v35 = vld [vmem:[#allocation143_spill] sm:$0xff] }
 0x69c   :  { %3339 = vmatprep.subr.mxu0 %v8053_v23  ;;  %3410 = vmatprep.subr.mxu1 %v8054_v38  ;;  %v8075_v34 = vld [vmem:[#allocation59_spill] sm:$0xff]  ;;  %v8076_v23 = vld [vmem:[#allocation144_spill] sm:$0xff]  ;;  %v8077_v38 = vld [vmem:[#allocation61_spill] sm:$0xff] }
 0x69d   :  { %3340 = vmatpush1.msra.mxu0 %v8055_v30  ;;  %3411 = vmatpush1.msra.mxu1 %v8056_v61  ;;  %v8078_v30 = vld [vmem:[#allocation145_spill] sm:$0xff] }
 0x69e   :  { %3341 = vmatprep.subr.mxu0 %v8057_v11  ;;  %3412 = vmatprep.subr.mxu1 %v8058_v17  ;;  %v8079_v11 = vld [vmem:[#allocation98_spill] sm:$0xff] }
 0x69f   :  { %3342 = vmatpush1.msra.mxu0 %v8059_v45  ;;  %3413 = vmatpush1.msra.mxu1 %v8060_v52 }
 0x6a0   :  { %3343 = vmatprep.subr.mxu0 %v8061_v51  ;;  %3414 = vmatprep.subr.mxu1 %v8062_v42  ;;  %v8080_v51 = vld [vmem:[#allocation100_spill] sm:$0xff] }
 0x6a1   :  { %3344 = vmatpush1.msra.mxu0 %v8063_v21  ;;  %3415 = vmatpush1.msra.mxu1 %v8064_v10 }
 0x6a2   :  { %3345 = vmatprep.subr.mxu0 %v8065_v2  ;;  %3416 = vmatprep.subr.mxu1 %v8066_v62  ;;  %v8081_v62 = vld [vmem:[#allocation115_spill] sm:$0xff] }
 0x6a3   :  { %3346 = vmatpush1.msra.mxu0 %v8067_v18  ;;  %3417 = vmatpush1.msra.mxu1 %v8068_v28  ;;  %v8082_v28 = vld [vmem:[#allocation114_spill] sm:$0xff] }
 0x6a4   :  { %3347 = vmatprep.subr.mxu0 %v8069_v13  ;;  %3418 = vmatprep.subr.mxu1 %v8070_v5 }
 0x6a5   :  { %3348 = vmatpush1.msra.mxu0 %v8071_v56  ;;  %3419 = vmatpush1.msra.mxu1 %v8072_v37 }
 0x6a6   :  { %3349 = vmatprep.subr.mxu0 %v8073_v6  ;;  %3420 = vmatprep.subr.mxu1 %v8074_v35 }
 0x6a7   :  { %3350 = vmatpush1.msra.mxu0 %v8075_v34  ;;  %3421 = vmatpush1.msra.mxu1 %v8076_v23 }
 0x6a8   :  { %3383 = vmatprep.mubr.f32.mxu0 %v7516_v41  ;;  %3454 = vmatprep.mubr.f32.mxu1 %v7516_v41 }
 0x6a9   :  { %3493 = vmatprep.subr.mxu0 %v8077_v38  ;;  %3564 = vmatprep.subr.mxu1 %v8078_v30 }
 0x726   :  { %v3035_v61 = vpop.f32.mrf.mxu0  ;;  %v3106_v21 = vpop.f32.mrf.mxu1 }
 0x727   :  { %v3111_v17 = vadd.f32 %v3035_v61, %v8079_v11  ;;  %v3113_v13 = vadd.f32 %v3106_v21, %v8082_v28  ;;  %v8083_v61 = vld [vmem:[#allocation79_spill] sm:$0xff] }
 0x728   :  { %v3037_v45 = vpop.f32.mrf.mxu0  ;;  %v3108_v2 = vpop.f32.mrf.mxu1 }
 0x729   :  { %v3934_v52 = vmul.f32 -1.442695, %v3111_v17  ;;  %v3112_v42 = vadd.f32 %v3037_v45, %v8080_v51  ;;  %v3114_v18 = vadd.f32 %v3108_v2, %v8081_v62 }
 0x72b   :  { %4207 = vpow2.f32 %v3934_v52  ;;  %v3935_v10 = vmul.f32 -1.442695, %v3112_v42  ;;  %v3936_v5 = vmul.f32 -1.442695, %v3114_v18  ;;  %v8084_v42 = vld [vmem:[#allocation81_spill] sm:$0xff] }
 0x72d   :  { %4209 = vpow2.f32 %v3935_v10 }
 0x72e   :  { %4211 = vtanh.f32 %v3113_v13 }
 0x72f   :  { %4213 = vpow2.f32 %v3936_v5  ;;  %v8085_v5 = vld [vmem:[#allocation121_spill] sm:$0xff] }
 0x738   :  { %v4208_v56 = vpop.eup %4207 }
 0x739   :  { %v3118_v37 = vadd.f32 1.0, %v4208_v56 }
 0x73a   :  { %v4210_v6 = vpop.eup %4209 }
 0x73b   :  { %4215 = vrcp.f32 %v3118_v37  ;;  %v3124_v35 = vadd.f32 1.0, %v4210_v6  ;;  %v4212_v34 = vpop.eup %4211  ;;  %v8086_v37 = vld [vmem:[#allocation120_spill] sm:$0xff] }
 0x73c   :  { %v4214_v23 = vpop.eup %4213 }
 0x73d   :  { %4217 = vrcp.f32 %v3124_v35  ;;  %v3131_v2 = vadd.f32 1.0, %v4214_v23 }
 0x747   :  { %v3209_v38 = vpop.f32.mrf.mxu0  ;;  %v3280_v62 = vpop.f32.mrf.mxu1 }
 0x748   :  { %v4216_v30 = vpop.eup %4215  ;;  %v3285_v11 = vadd.f32 %v3209_v38, %v8083_v61  ;;  %v3287_v6 = vadd.f32 %v3280_v62, %v8086_v37  ;;  %v3691_v62 = vld [vmem:[#allocation10 + $0x50] sm:$0xff]  ;;  %v3704_v37 = vld [vmem:[#allocation10 + $0xb8] sm:$0xff] }
 0x749   :  { %v3135_v17 = vmul.f32 %v4216_v30, %v4212_v34  ;;  %v3211_v45 = vpop.f32.mrf.mxu0  ;;  %v3282_v13 = vpop.f32.mrf.mxu1 }
 0x74a   :  { %v4218_v52 = vpop.eup %4217  ;;  %v3937_v51 = vmul.f32 -1.442695, %v3285_v11  ;;  %v3286_v21 = vadd.f32 %v3211_v45, %v8084_v42  ;;  %v3288_v56 = vadd.f32 %v3282_v13, %v8085_v5  ;;  %v8107_v45 = vld [vmem:[#allocation91_spill] sm:$0xff]  ;;  %v3690_v13 = vld [vmem:[#allocation10 + $0x48] sm:$0xff]  ;;  %v3705_v5 = vld [vmem:[#allocation10 + $0xc0] sm:$0xff] }
 0x74b   :  { %v3134_v10 = vmul.f32 %v4218_v52, %v6823_v60  ;;  %v8108_v52 = vld [vmem:[#allocation36_spill] sm:$0xff] }
 0x74c   :  { %4219 = vpow2.f32 %v3937_v51  ;;  %v3938_v18 = vmul.f32 -1.442695, %v3286_v21  ;;  %v3939_v35 = vmul.f32 -1.442695, %v3288_v56  ;;  %v8109_v51 = vld [vmem:[#allocation39_spill] sm:$0xff]  ;;  %v3689_v56 = vld [vmem:[#allocation10 + $0x40] sm:$0xff] }
 0x74d   :  { %v6979_v28 = vadd.f32 %v3135_v17, %v3134_v10  ;;  %v8106_v17 = vld [vmem:[#allocation108_spill] sm:$0xff] }
 0x74e   :  { %4221 = vpow2.f32 %v3938_v18  ;;  %v3692_v10 = vld [vmem:[#allocation10 + $0x58] sm:$0xff]  ;;  %v3706_v18 = vld [vmem:[#allocation10 + $0xc8] sm:$0xff] }
 0x74f   :  { %4223 = vrcp.f32 %v3131_v2  ;;  %v3707_v2 = vld [vmem:[#allocation10 + $0xd0] sm:$0xff] }
 0x750   :  { %4225 = vtanh.f32 %v6979_v28 }
 0x751   :  { %4227 = vtanh.f32 %v3287_v6  ;;  %v3688_v6 = vld [vmem:[#allocation10 + $0x38] sm:$0xff] }
 0x752   :  { %4229 = vpow2.f32 %v3939_v35  ;;  %v3703_v35 = vld [vmem:[#allocation10 + $0xb0] sm:$0xff] }
 0x759   :  { %v4220_v34 = vpop.eup %4219 }
 0x75a   :  { %v3292_v38 = vadd.f32 1.0, %v4220_v34  ;;  %v3687_v34 = vld [vmem:[#allocation10 + $0x30] sm:$0xff] }
 0x75b   :  { %v4222_v60 = vpop.eup %4221 }
 0x75c   :  { %v4224_v23 = vpop.eup %4223  ;;  %4231 = vrcp.f32 %v3292_v38  ;;  %v3298_v30 = vadd.f32 1.0, %v4222_v60  ;;  %v3702_v38 = vld [vmem:[#allocation10 + $0xa8] sm:$0xff] }
 0x75d   :  { %v4226_v61 = vpop.eup %4225  ;;  %v3686_v60 = vld [vmem:[#allocation10 + $0x28] sm:$0xff] }
 0x75e   :  { %4233 = vrcp.f32 %v3298_v30  ;;  %v6984_v11 = vmul.f32 %v4226_v61, %v4224_v23  ;;  %v3701_v23 = vld [vmem:[#allocation10 + $0xa0] sm:$0xff]  ;;  %v3700_v61 = vld [vmem:[#allocation10 + $0x98] sm:$0xff] }
 0x75f   :  { %v3685_v30 = vld [vmem:[#allocation10 + $0x20] sm:$0xff] }
 0x760   :  { %3384 = vmatmul.mubr.f32.vlgmr.msra.gmra.mxu0 %v6984_v11  ;;  %3455 = vmatmul.mubr.f32.vlgmr.msra.gmra.mxu1 %v6984_v11 }
 0x761   :  { %3494 = vmatpush1.msra.mxu0 %v6488_v22  ;;  %3565 = vmatpush1.msra.mxu1 %v6491_v14  ;;  %v4228_v22 = vpop.eup %4227 }
 0x762   :  { %3495 = vmatprep.subr.mxu0 %v6494_v48  ;;  %3566 = vmatprep.subr.mxu1 %v6497_v46  ;;  %v4230_v14 = vpop.eup %4229 }
 0x763   :  { %3496 = vmatpush1.msra.mxu0 %v6500_v16  ;;  %3567 = vmatpush1.msra.mxu1 %v6503_v12  ;;  %v3305_v12 = vadd.f32 1.0, %v4230_v14  ;;  %v3699_v14 = vld [vmem:[#allocation10 + $0x90] sm:$0xff] }
 0x764   :  { %3497 = vmatprep.subr.mxu0 %v6506_v47  ;;  %3568 = vmatprep.subr.mxu1 %v6509_v59 }
 0x765   :  { %3498 = vmatpush1.msra.mxu0 %v6512_v19  ;;  %3569 = vmatpush1.msra.mxu1 %v6515_v57  ;;  %v8087_v19 = vld [vmem:[#allocation104_spill] sm:$0xff]  ;;  %v8088_v57 = vld [vmem:[#allocation18_spill] sm:$0xff]  ;;  %4235 = vrcp.f32 %v3305_v12  ;;  %v3697_v12 = vld [vmem:[#allocation10 + $0x80] sm:$0xff] }
 0x766   :  { %3499 = vmatprep.subr.mxu0 %v6518_v63  ;;  %3570 = vmatprep.subr.mxu1 %v6521_v58  ;;  %v8089_v63 = vld [vmem:[#allocation19_spill] sm:$0xff]  ;;  %v8090_v58 = vld [vmem:[#allocation20_spill] sm:$0xff] }
 0x767   :  { %3500 = vmatpush1.msra.mxu0 %v6524_v36  ;;  %3571 = vmatpush1.msra.mxu1 %v6527_v20  ;;  %v8091_v36 = vld [vmem:[#allocation21_spill] sm:$0xff]  ;;  %v8092_v20 = vld [vmem:[#allocation22_spill] sm:$0xff] }
 0x768   :  { %3501 = vmatprep.subr.mxu0 %v6530_v43  ;;  %3572 = vmatprep.subr.mxu1 %v6533_v4  ;;  %v8093_v43 = vld [vmem:[#allocation23_spill] sm:$0xff]  ;;  %v8094_v4 = vld [vmem:[#allocation24_spill] sm:$0xff] }
 0x769   :  { %v4232_v48 = vpop.eup %4231  ;;  %3502 = vmatpush1.msra.mxu0 %v7993_v39  ;;  %3573 = vmatpush1.msra.mxu1 %v6539_v8  ;;  %v8095_v8 = vld [vmem:[#allocation25_spill] sm:$0xff]  ;;  %v8098_v39 = vld [vmem:[#allocation28_spill] sm:$0xff] }
 0x76a   :  { %v3309_v46 = vmul.f32 %v4232_v48, %v4228_v22  ;;  %3503 = vmatprep.subr.mxu0 %v7994_v29  ;;  %3574 = vmatprep.subr.mxu1 %v7995_v33  ;;  %v8099_v29 = vld [vmem:[#allocation29_spill] sm:$0xff]  ;;  %v8100_v33 = vld [vmem:[#allocation71_spill] sm:$0xff]  ;;  %v3684_v22 = vld [vmem:[#allocation10 + $0x18] sm:$0xff] }
 0x76b   :  { %v4234_v16 = vpop.eup %4233  ;;  %3504 = vmatpush1.msra.mxu0 %v7996_v3  ;;  %3575 = vmatpush1.msra.mxu1 %v7997_v44  ;;  %v8101_v3 = vld [vmem:[#allocation30_spill] sm:$0xff]  ;;  %v8102_v44 = vld [vmem:[#allocation31_spill] sm:$0xff] }
 0x76c   :  { %v3308_v47 = vmul.f32 %v4234_v16, %v6859_v49  ;;  %3505 = vmatprep.subr.mxu0 %v6555_v27  ;;  %3576 = vmatprep.subr.mxu1 %v6558_v24  ;;  %v8096_v24 = vld [vmem:[#allocation26_spill] sm:$0xff]  ;;  %v8097_v27 = vld [vmem:[#allocation27_spill] sm:$0xff]  ;;  %v8105_v49 = vld [vmem:[#allocation109_spill] sm:$0xff] }
 0x76d   :  { %3506 = vmatpush1.msra.mxu0 %v7998_v9  ;;  %3577 = vmatpush1.msra.mxu1 %v7999_v25  ;;  %v8103_v9 = vld [vmem:[#allocation86_spill] sm:$0xff]  ;;  %v8104_v25 = vld [vmem:[#allocation88_spill] sm:$0xff]  ;;  %v3683_v48 = vld [vmem:[#allocation10 + $0x10] sm:$0xff] }
 0x76e   :  { %v7015_v59 = vadd.f32 %v3309_v46, %v3308_v47  ;;  %3507 = vmatprep.subr.mxu0 %v8087_v19  ;;  %3578 = vmatprep.subr.mxu1 %v8088_v57  ;;  %v3698_v46 = vld [vmem:[#allocation10 + $0x88] sm:$0xff]  ;;  %v3681_v47 = vld [vmem:[#allocation10] sm:$0xff] }
 0x76f   :  { %3508 = vmatpush1.msra.mxu0 %v8089_v63  ;;  %3579 = vmatpush1.msra.mxu1 %v8090_v58  ;;  %v3682_v16 = vld [vmem:[#allocation10 + $0x8] sm:$0xff] }
 0x770   :  { %3509 = vmatprep.subr.mxu0 %v8091_v36  ;;  %3580 = vmatprep.subr.mxu1 %v8092_v20  ;;  %4237 = vtanh.f32 %v7015_v59  ;;  %v8112_v57 = vld [vmem:[#allocation102_spill] sm:$0xff]  ;;  %v8113_v20 = vld [vmem:[#allocation103_spill] sm:$0xff] }
 0x771   :  { %3510 = vmatpush1.msra.mxu0 %v8093_v43  ;;  %3581 = vmatpush1.msra.mxu1 %v8094_v4 }
 0x772   :  { %3511 = vmatprep.subr.mxu0 %v8095_v8  ;;  %3582 = vmatprep.subr.mxu1 %v8096_v24  ;;  %v4236_v42 = vpop.eup %4235 }
 0x773   :  { %3512 = vmatpush1.msra.mxu0 %v8097_v27  ;;  %3583 = vmatpush1.msra.mxu1 %v8098_v39  ;;  %v8114_v27 = vld [vmem:[#allocation117_spill] sm:$0xff] }
 0x774   :  { %3513 = vmatprep.subr.mxu0 %v8099_v29  ;;  %3584 = vmatprep.subr.mxu1 %v8100_v33  ;;  %v8115_v29 = vld [vmem:[#allocation116_spill] sm:$0xff] }
 0x775   :  { %3514 = vmatpush1.msra.mxu0 %v8101_v3  ;;  %3585 = vmatpush1.msra.mxu1 %v8102_v44 }
 0x776   :  { %3515 = vmatprep.subr.mxu0 %v8103_v9  ;;  %3586 = vmatprep.subr.mxu1 %v8104_v25 }
 0x777   :  { %3516 = vmatpush1.msra.mxu0 %v8105_v49  ;;  %3587 = vmatpush1.msra.mxu1 %v8106_v17 }
 0x778   :  { %3517 = vmatprep.subr.mxu0 %v8107_v45  ;;  %3588 = vmatprep.subr.mxu1 %v8021_v54 }
 0x779   :  { %3518 = vmatpush1.msra.mxu0 %v8022_v1  ;;  %3589 = vmatpush1.msra.mxu1 %v8023_v0  ;;  %v8110_v0 = vld [vmem:[#allocation44_spill] sm:$0xff]  ;;  %v3693_v1 = vld [vmem:[#allocation10 + $0x60] sm:$0xff] }
 0x77a   :  { %3519 = vmatprep.subr.mxu0 %v8108_v52  ;;  %3590 = vmatprep.subr.mxu1 %v8025_v26  ;;  %v8111_v26 = vld [vmem:[#allocation45_spill] sm:$0xff] }
 0x77b   :  { %3520 = vmatpush1.msra.mxu0 %v8026_v32  ;;  %3591 = vmatpush1.msra.mxu1 %v8109_v51  ;;  %v3710_v32 = vld [vmem:[#allocation10 + $0xe8] sm:$0xff] }
 0x77c   :  { %3521 = vmatprep.subr.mxu0 %v8028_v50  ;;  %3592 = vmatprep.subr.mxu1 %v8029_v15  ;;  %v3694_v50 = vld [vmem:[#allocation10 + $0x68] sm:$0xff]  ;;  %v3709_v15 = vld [vmem:[#allocation10 + $0xe0] sm:$0xff] }
 0x77d   :  { %v4238_v21 = vpop.eup %4237  ;;  %3522 = vmatpush1.msra.mxu0 %v8030_v31  ;;  %3593 = vmatpush1.msra.mxu1 %v6663_v40  ;;  %v3712_v31 = vld [vmem:[#allocation10 + $0xf8] sm:$0xff] }
 0x77e   :  { %3523 = vmatprep.subr.mxu0 %v6666_v53  ;;  %3594 = vmatprep.subr.mxu1 %v6669_v55  ;;  %v7052_v54 = vmul.f32 %v4238_v21, %v4236_v42  ;;  %v3696_v40 = vld [vmem:[#allocation10 + $0x78] sm:$0xff]  ;;  %v3711_v53 = vld [vmem:[#allocation10 + $0xf0] sm:$0xff] }
 0x77f   :  { %3524 = vmatpush1.msra.mxu0 %v8110_v0  ;;  %3557 = vmatprep.mubr.f32.mxu0 %v7516_v41  ;;  %v3695_v55 = vld [vmem:[#allocation10 + $0x70] sm:$0xff]  ;;  %v8116_v42 = vld [vmem:[#allocation76_spill] sm:$0xff] }
 0x780   :  { %3595 = vmatpush1.msra.mxu1 %v8111_v26  ;;  %3628 = vmatprep.mubr.f32.mxu1 %v7516_v41  ;;  %v3708_v41 = vld [vmem:[#allocation10 + $0xd8] sm:$0xff] }
 0x781   :  { %3558 = vmatmul.mubr.f32.vlgmr.msra.gmra.mxu0 %v7052_v54  ;;  %3629 = vmatmul.mubr.f32.vlgmr.msra.gmra.mxu1 %v7052_v54 }
 0x782   :  { %3947 = vmatprep.subr.mxu0 %v3712_v31 }
 0x783   :  { %3948 = vmatpush3.msra.mxu0 %v3696_v40 }
 0x784   :  { %3949 = vmatprep.subr.mxu0 %v3711_v53  ;;  %v8117_v53 = vld [vmem:[#allocation77_spill] sm:$0xff] }
 0x785   :  { %3950 = vmatpush3.msra.mxu0 %v3695_v55 }
 0x786   :  { %3951 = vmatprep.subr.mxu0 %v3710_v32 }
 0x787   :  { %3952 = vmatpush3.msra.mxu0 %v3694_v50 }
 0x788   :  { %3953 = vmatprep.subr.mxu0 %v3709_v15 }
 0x789   :  { %3954 = vmatpush3.msra.mxu0 %v3693_v1 }
 0x78a   :  { %3955 = vmatprep.subr.mxu0 %v3708_v41 }
 0x78b   :  { %3956 = vmatpush3.msra.mxu0 %v3692_v10 }
 0x78c   :  { %3957 = vmatprep.subr.mxu0 %v3707_v2  ;;  %v8118_v2 = vld [vmem:[#allocation119_spill] sm:$0xff] }
 0x78d   :  { %3958 = vmatpush3.msra.mxu0 %v3691_v62 }
 0x78e   :  { %3959 = vmatprep.subr.mxu0 %v3706_v18  ;;  %v8119_v18 = vld [vmem:[#allocation118_spill] sm:$0xff] }
 0x78f   :  { %3960 = vmatpush3.msra.mxu0 %v3690_v13 }
 0x790   :  { %3961 = vmatprep.subr.mxu0 %v3705_v5 }
 0x791   :  { %3962 = vmatpush3.msra.mxu0 %v3689_v56 }
 0x792   :  { %3963 = vmatprep.subr.mxu0 %v3704_v37 }
 0x793   :  { %3964 = vmatpush3.msra.mxu0 %v3688_v6 }
 0x794   :  { %3965 = vmatprep.subr.mxu0 %v3703_v35 }
 0x795   :  { %3966 = vmatpush3.msra.mxu0 %v3687_v34 }
 0x796   :  { %3967 = vmatprep.subr.mxu0 %v3702_v38 }
 0x797   :  { %3968 = vmatpush3.msra.mxu0 %v3686_v60 }
 0x798   :  { %3969 = vmatprep.subr.mxu0 %v3701_v23 }
 0x799   :  { %3970 = vmatpush3.msra.mxu0 %v3685_v30 }
 0x79a   :  { %3971 = vmatprep.subr.mxu0 %v3700_v61 }
 0x79b   :  { %3972 = vmatpush3.msra.mxu0 %v3684_v22 }
 0x79c   :  { %3973 = vmatprep.subr.mxu0 %v3699_v14 }
 0x79d   :  { %3974 = vmatpush3.msra.mxu0 %v3683_v48 }
 0x79e   :  { %3975 = vmatprep.subr.mxu0 %v3698_v46 }
 0x79f   :  { %3976 = vmatpush3.msra.mxu0 %v3682_v16 }
 0x7a0   :  { %3977 = vmatprep.subr.mxu0 %v3697_v12 }
 0x7a1   :  { %3978 = vmatpush3.msra.mxu0 %v3681_v47 }
 0x820   :  { %v3385_v19 = vpop.f32.mrf.mxu0  ;;  %v3456_v4 = vpop.f32.mrf.mxu1 }
 0x821   :  { %v3461_v63 = vadd.f32 %v3385_v19, %v8112_v57  ;;  %v3463_v33 = vadd.f32 %v3456_v4, %v8115_v29  ;;  %v8120_v19 = vld [vmem:[#allocation131_spill] sm:$0xff]  ;;  %v8121_v57 = vld [vmem:[#allocation72_spill] sm:$0xff]  ;;  %v8128_v4 = vld [vmem:[#allocation146_spill] sm:$0xff] }
 0x822   :  { %v3387_v58 = vpop.f32.mrf.mxu0  ;;  %v3458_v24 = vpop.f32.mrf.mxu1 }
 0x823   :  { %v3940_v36 = vmul.f32 -1.442695, %v3461_v63  ;;  %v3462_v43 = vadd.f32 %v3387_v58, %v8113_v20  ;;  %v3464_v39 = vadd.f32 %v3458_v24, %v8114_v27  ;;  %v8122_v63 = vld [vmem:[#allocation82_spill] sm:$0xff]  ;;  %v8123_v58 = vld [vmem:[#allocation43_spill] sm:$0xff]  ;;  %v3946_v24 = vld [vmem:[%s7099_s6] ss:$0 sm:$0xff] }
 0x824   :  { %v8126_v20 = vld [vmem:[#allocation62_spill] sm:$0xff]  ;;  %s4646_s6 = smov [#allocation12]  }
 0x825   :  { %4239 = vpow2.f32 %v3940_v36  ;;  %v3941_v8 = vmul.f32 -1.442695, %v3462_v43  ;;  %v3942_v3 = vmul.f32 -1.442695, %v3464_v39  ;;  %v8125_v36 = vld [vmem:[#allocation106_spill] sm:$0xff]  ;;  %v8127_v43 = vld [vmem:[#allocation84_spill] sm:$0xff] }
 0x826   :  { %s3838_s3 = sshll.u32 %s4646_s6, 4  ;;  %s3839_s3 = int_to_ptr.vmem [resolvable:$true] %s3838_s3 }
 0x827   :  { %4241 = vpow2.f32 %v3941_v8  ;;  %v8129_v8 = vld [vmem:[#allocation67_spill] sm:$0xff]  ;;  %s4607_s18 = scalar_lea.vmem %s3839_s3, 1024  ;;  %p4612_p7 = scmp.lt.s32.totalorder %s3839_s3, %s3839_s3 }
 0x828   :  { %4243 = vtanh.f32 %v3463_v33  ;;  %p4608_p6 = scmp.ne.s32.totalorder %s3839_s3, %s4607_s18  ;;  %p4613_p8 = scmp.lt.s32.totalorder %s4607_s18, %s4607_s18 }
 0x829   :  { %4245 = vpow2.f32 %v3942_v3 }
 0x82a   :  { %p4614_p9 = por %p4613_p8, %p4612_p7 }
 0x82c   :  { %p4615_p10 = pnand %p4614_p9, %p4608_p6 }
 0x832   :  { %v4240_v44 = vpop.eup %4239 }
 0x833   :  { %v3468_v9 = vadd.f32 1.0, %v4240_v44 }
 0x834   :  { %v4242_v25 = vpop.eup %4241 }
 0x835   :  { %4247 = vrcp.f32 %v3468_v9  ;;  %v3474_v49 = vadd.f32 1.0, %v4242_v25  ;;  %v4244_v17 = vpop.eup %4243 }
 0x836   :  { %v4246_v45 = vpop.eup %4245 }
 0x837   :  { %4249 = vrcp.f32 %v3474_v49  ;;  %v3481_v50 = vadd.f32 1.0, %v4246_v45 }
 0x841   :  { %v3559_v52 = vpop.f32.mrf.mxu0  ;;  %v3630_v15 = vpop.f32.mrf.mxu1 }
 0x842   :  { %v4248_v51 = vpop.eup %4247  ;;  %v3635_v21 = vadd.f32 %v3559_v52, %v8116_v42  ;;  %v3637_v13 = vadd.f32 %v3630_v15, %v8119_v18 }
 0x843   :  { %v3485_v0 = vmul.f32 %v4248_v51, %v4244_v17  ;;  %v3561_v26 = vpop.f32.mrf.mxu0  ;;  %v3632_v10 = vpop.f32.mrf.mxu1 }
 0x844   :  { %v4250_v31 = vpop.eup %4249  ;;  %v3943_v40 = vmul.f32 -1.442695, %v3635_v21  ;;  %v3636_v55 = vadd.f32 %v3561_v26, %v8117_v53  ;;  %v3638_v62 = vadd.f32 %v3632_v10, %v8118_v2 }
 0x845   :  { %v3484_v32 = vmul.f32 %v4250_v31, %v6979_v28 }
 0x846   :  { %4251 = vpow2.f32 %v3943_v40  ;;  %v3944_v1 = vmul.f32 -1.442695, %v3636_v55  ;;  %v3945_v5 = vmul.f32 -1.442695, %v3638_v62 }
 0x847   :  { %v3486_v41 = vadd.f32 %v3485_v0, %v3484_v32 }
 0x848   :  { %4253 = vpow2.f32 %v3944_v1 }
 0x849   :  { %4255 = vrcp.f32 %v3481_v50 }
 0x84a   :  { %4257 = vtanh.f32 %v3486_v41 }
 0x84b   :  { %4259 = vtanh.f32 %v3637_v13 }
 0x84c   :  { %4261 = vpow2.f32 %v3945_v5 }
 0x853   :  { %v4252_v56 = vpop.eup %4251 }
 0x854   :  { %v3642_v37 = vadd.f32 1.0, %v4252_v56 }
 0x855   :  { %v4254_v6 = vpop.eup %4253 }
 0x856   :  { %v4256_v28 = vpop.eup %4255  ;;  %4263 = vrcp.f32 %v3642_v37  ;;  %v3648_v35 = vadd.f32 1.0, %v4254_v6 }
 0x857   :  { %v4258_v34 = vpop.eup %4257 }
 0x858   :  { %4265 = vrcp.f32 %v3648_v35  ;;  %v3488_v38 = vmul.f32 %v4258_v34, %v4256_v28  ;;  %v4260_v60 = vpop.eup %4259 }
 0x859   :  { %v4262_v23 = vpop.eup %4261 }
 0x85a   :  { %v3655_v14 = vadd.f32 1.0, %v4262_v23 }
 0x85c   :  { %4267 = vrcp.f32 %v3655_v14 }
 0x863   :  { %v4264_v30 = vpop.eup %4263 }
 0x864   :  { %v3659_v61 = vmul.f32 %v4264_v30, %v4260_v60 }
 0x865   :  { %v4266_v22 = vpop.eup %4265 }
 0x866   :  { %v3658_v48 = vmul.f32 %v4266_v22, %v7015_v59  ;;  %v8124_v59 = vld [vmem:[#allocation107_spill] sm:$0xff] }
 0x868   :  { %v3660_v46 = vadd.f32 %v3659_v61, %v3658_v48 }
 0x869   :  { %v4268_v16 = vpop.eup %4267 }
 0x86a   :  { %4269 = vtanh.f32 %v3660_v46 }
 0x877   :  { %v4270_v12 = vpop.eup %4269 }
 0x878   :  { %v3662_v47 = vmul.f32 %v4270_v12, %v4268_v16 }
 0x87a   :  { %3784 = vmatprep.mubr.f32.mxu0 %v3662_v47 }
 0x87b   :  { %3785 = vmatmul.mubr.f32.vlgmr.msra.gmra.mxu0 %v8120_v19 }
 0x87c   :  { %3789 = vmatprep.mubr.f32.mxu0 %v7052_v54  ;;  %v8130_v54 = vld [vmem:[#allocation17_spill] sm:$0xff] }
 0x87f   :  { %3790 = vmatmul.mubr.f32.gmra.mxu0 %v8121_v57 }
 0x880   :  { %3794 = vmatprep.mubr.f32.mxu0 %v6896_v7 }
 0x883   :  { %3795 = vmatmul.mubr.f32.gmra.mxu0 %v8122_v63 }
 0x884   :  { %3799 = vmatprep.mubr.f32.mxu0 %v8123_v58 }
 0x887   :  { %3800 = vmatmul.mubr.f32.gmra.mxu0 %v8124_v59 }
 0x888   :  { %3804 = vmatprep.mubr.f32.mxu0 %v8125_v36 }
 0x88b   :  { %3805 = vmatmul.mubr.f32.gmra.mxu0 %v8126_v20 }
 0x88c   :  { %3809 = vmatprep.mubr.f32.mxu0 %v8127_v43 }
 0x88f   :  { %3810 = vmatmul.mubr.f32.gmra.mxu0 %v8128_v4 }
 0x890   :  { %3814 = vmatprep.mubr.f32.mxu0 %v8129_v8 }
 0x893   :  { %3815 = vmatmul.mubr.f32.gmra.mxu0 %v6984_v11 }
 0x894   :  { %3819 = vmatprep.mubr.f32.mxu0 %v8130_v54 }
 0x897   :  { %3820 = vmatmul.mubr.f32.gmra.mxu0 %v3488_v38 }
 0x93b   :  { %v3979_v7 = vpop.f32.mrf.mxu0 }
 0x93d   :  { %v3980_v27 = vpop.f32.mrf.mxu0 }
 0x93e   :  { %v3981_v39 = vadd.f32 %v3980_v27, %v3979_v7 }
 0x93f   :  { %v3982_v29 = vpop.f32.mrf.mxu0 }
 0x940   :  { %v3787_v33 = vadd.f32 %v3981_v39, %v3946_v24 }
 0x941   :  { %v3983_v3 = vpop.f32.mrf.mxu0 }
 0x942   :  { %3825 = vst [vmem:[#allocation12] sm:$0xff] %v3787_v33  ;;  %v3984_v44 = vadd.f32 %v3983_v3, %v3982_v29 }
 0x943   :  { %v3985_v9 = vpop.f32.mrf.mxu0 }
 0x944   :  { %v3792_v25 = vadd.f32 %v3984_v44, %v3946_v24 }
 0x945   :  { %v3986_v49 = vpop.f32.mrf.mxu0 }
 0x946   :  { %3826 = vst [vmem:[#allocation12 + $0x8] sm:$0xff] %v3792_v25  ;;  %v3987_v11 = vadd.f32 %v3986_v49, %v3985_v9 }
 0x947   :  { %v3988_v17 = vpop.f32.mrf.mxu0 }
 0x948   :  { %v3797_v45 = vadd.f32 %v3987_v11, %v3946_v24 }
 0x949   :  { %v3989_v52 = vpop.f32.mrf.mxu0 }
 0x94a   :  { %3827 = vst [vmem:[#allocation12 + $0x10] sm:$0xff] %v3797_v45  ;;  %v3990_v51 = vadd.f32 %v3989_v52, %v3988_v17 }
 0x94b   :  { %v3991_v42 = vpop.f32.mrf.mxu0 }
 0x94c   :  { %v3802_v21 = vadd.f32 %v3990_v51, %v3946_v24 }
 0x94d   :  { %v3992_v0 = vpop.f32.mrf.mxu0 }
 0x94e   :  { %3828 = vst [vmem:[#allocation12 + $0x18] sm:$0xff] %v3802_v21  ;;  %v3993_v26 = vadd.f32 %v3992_v0, %v3991_v42 }
 0x94f   :  { %v3994_v31 = vpop.f32.mrf.mxu0 }
 0x950   :  { %v3807_v40 = vadd.f32 %v3993_v26, %v3946_v24 }
 0x951   :  { %v3995_v53 = vpop.f32.mrf.mxu0 }
 0x952   :  { %3829 = vst [vmem:[#allocation12 + $0x20] sm:$0xff] %v3807_v40  ;;  %v3996_v55 = vadd.f32 %v3995_v53, %v3994_v31 }
 0x953   :  { %v3997_v32 = vpop.f32.mrf.mxu0 }
 0x954   :  { %v3812_v50 = vadd.f32 %v3996_v55, %v3946_v24 }
 0x955   :  { %v3998_v15 = vpop.f32.mrf.mxu0 }
 0x956   :  { %3830 = vst [vmem:[#allocation12 + $0x28] sm:$0xff] %v3812_v50  ;;  %v3999_v1 = vadd.f32 %v3998_v15, %v3997_v32 }
 0x957   :  { %v4000_v41 = vpop.f32.mrf.mxu0 }
 0x958   :  { %v3817_v10 = vadd.f32 %v3999_v1, %v3946_v24 }
 0x959   :  { %v4001_v2 = vpop.f32.mrf.mxu0 }
 0x95a   :  { %3831 = vst [vmem:[#allocation12 + $0x30] sm:$0xff] %v3817_v10  ;;  %v4002_v62 = vadd.f32 %v4001_v2, %v4000_v41 }
 0x95c   :  { %v3822_v18 = vadd.f32 %v4002_v62, %v3946_v24 }
 0x95e   :  { %3832 = vst [vmem:[#allocation12 + $0x38] sm:$0xff] %v3822_v18 }
 0x95f   :  { %4618 = shalt.err (!%p4615_p10)
}
 0x960   :  { %3844 = dma.vmem_to_hbm [thread:$0]  %s3839_s3, 1024, %s7100_s7, [#allocation6], %s4643_s21, %s4643_s21, %s4644_s22  }
 0x961   :  { %4633 = dma.done.wait [#allocation6], 1024  }
 0x962   :  { %4634 = vsyncadd [#allocation6], 4294966272 }
 0x963   :  { %3848 = vsyncpa [#allocation5], 1 }
 0x964   :  { %3849 = vsyncpa [#allocation8], 1 }
 0x965   :  { %3850 = vsyncpa [#allocation11], 1 }
 0x966   :  { %3851 = vsyncpa [#allocation6], 1 }

</bundles_post_ra>
